<compile_context>
chip_gen: v7x
topology: tpu7x:2x2x1
jax: 0.10.0
libtpu: 0.0.40
codegen_flags: <defaults>
</compile_context>

<pallas_src>
import functools

import jax
import jax.numpy as jnp
from jax.experimental import pallas as pl
from jax.experimental.pallas import tpu as pltpu

CP = 128  # padded channel / class width -> lane-dense MXU operands and stores


# ----------------------------- Pallas kernels ------------------------------ #

def _conv3x3_kernel(xp_ref, w_ref, o_ref, *, H, W, relu):
    """3x3 / stride-1 conv for one image as 9 accumulated MXU matmuls.

    xp_ref: (1, H+2, W+2, CP) bf16   zero halo + zero channel pad
    w_ref : (9, CP, CP)       bf16   taps flattened (dh*3+dw), channel-padded
    o_ref : (1, H, W, CP)     bf16
    """
    x = xp_ref[...]                      # whole padded image resident in VMEM
    acc = None
    for t in range(9):                   # static unroll: 9 shifted-view matmuls
        dh, dw = divmod(t, 3)
        patch = x[0, dh:dh + H, dw:dw + W, :].reshape(H * W, CP)
        part = jnp.dot(patch, w_ref[t], preferred_element_type=jnp.float32)
        acc = part if acc is None else acc + part
    if relu:
        acc = jnp.maximum(acc, 0.0)
    o_ref[...] = acc.reshape(1, H, W, CP).astype(o_ref.dtype)


def _conv3x3_res_pool_kernel(xp_ref, w_ref, r_ref, o_ref, *, H, W):
    """conv3x3 + residual add + ReLU + global average pool, fused (one image).

    o_ref: (1, 8, CP) f32 -- pooled features broadcast over 8 sublanes (row 0 used).
    """
    x = xp_ref[...]
    acc = None
    for t in range(9):
        dh, dw = divmod(t, 3)
        patch = x[0, dh:dh + H, dw:dw + W, :].reshape(H * W, CP)
        part = jnp.dot(patch, w_ref[t], preferred_element_type=jnp.float32)
        acc = part if acc is None else acc + part
    res = r_ref[...].reshape(H * W, CP).astype(jnp.float32)
    h = jnp.maximum(acc + res, 0.0)                       # basic block: +skip, relu
    pooled = jnp.mean(h, axis=0, keepdims=True)           # (1, CP) global avg pool
    o_ref[...] = jnp.broadcast_to(pooled.reshape(1, 1, CP), (1, 8, CP))


def _sample_kl_kernel(mu_ref, rho_ref, eps_ref, klw_ref, w_ref, kl_ref):
    """All Bayesian layers at once: reparameterized sample + weighted KL sum.

    All refs are (rows, 128) f32; klw holds 1/p_layer per element (0 for padding),
    so sum(kl * klw) == sum over layers of mean-per-element KL (bayesian_torch kl_div).
    """
    mu = mu_ref[...]
    rho = rho_ref[...]
    # numerically stable softplus(rho)
    sigma = jnp.maximum(rho, 0.0) + jnp.log1p(jnp.exp(-jnp.abs(rho)))
    w_ref[...] = mu + sigma * eps_ref[...]
    # KL( N(mu, sigma^2) || N(0, 1) ) elementwise
    kl = -jnp.log(sigma) + 0.5 * (sigma * sigma + mu * mu) - 0.5
    kl_ref[...] = jnp.sum(kl * klw_ref[...]).reshape(1, 1)


def _clf_xent_kernel(phi_ref, w_ref, b_ref, onehot_ref, mask_ref, loss_ref):
    """Fused Bayesian classifier (phi @ W + b) + mean cross-entropy over the batch."""
    logits = jnp.dot(phi_ref[...].astype(jnp.bfloat16), w_ref[...],
                     preferred_element_type=jnp.float32)
    logits = logits + b_ref[...]
    # mask out padded class columns
    logits = jnp.where(mask_ref[...] > 0.0, logits, -1e30)
    m = jnp.max(logits, axis=-1, keepdims=True)
    lse = m + jnp.log(jnp.sum(jnp.exp(logits - m), axis=-1, keepdims=True))
    tgt = jnp.sum(logits * onehot_ref[...], axis=-1, keepdims=True)
    loss_ref[...] = jnp.mean(lse - tgt).reshape(1, 1)


# ------------------------------ pallas wrappers ----------------------------- #

def conv3x3(xp, w9, *, relu):
    """xp: (N, H+2, W+2, CP) bf16, w9: (9, CP, CP) bf16 -> (N, H, W, CP) bf16."""
    N, Hp2, Wp2, _ = xp.shape
    H, W = Hp2 - 2, Wp2 - 2
    return pl.pallas_call(
        functools.partial(_conv3x3_kernel, H=H, W=W, relu=relu),
        out_shape=jax.ShapeDtypeStruct((N, H, W, CP), jnp.bfloat16),
        grid=(N,),
        in_specs=[
            pl.BlockSpec((1, Hp2, Wp2, CP), lambda n: (n, 0, 0, 0)),
            pl.BlockSpec((9, CP, CP), lambda n: (0, 0, 0)),
        ],
        out_specs=pl.BlockSpec((1, H, W, CP), lambda n: (n, 0, 0, 0)),
        compiler_params=pltpu.CompilerParams(dimension_semantics=("parallel",)),
    )(xp, w9)


def conv3x3_residual_pool(xp, w9, res):
    """Fused conv + skip + relu + global avg pool. Returns phi: (N, CP) f32."""
    N, Hp2, Wp2, _ = xp.shape
    H, W = Hp2 - 2, Wp2 - 2
    out = pl.pallas_call(
        functools.partial(_conv3x3_res_pool_kernel, H=H, W=W),
        out_shape=jax.ShapeDtypeStruct((N, 8, CP), jnp.float32),
        grid=(N,),
        in_specs=[
            pl.BlockSpec((1, Hp2, Wp2, CP), lambda n: (n, 0, 0, 0)),
            pl.BlockSpec((9, CP, CP), lambda n: (0, 0, 0)),
            pl.BlockSpec((1, H, W, CP), lambda n: (n, 0, 0, 0)),
        ],
        out_specs=pl.BlockSpec((1, 8, CP), lambda n: (n, 0, 0)),
        compiler_params=pltpu.CompilerParams(dimension_semantics=("parallel",)),
    )(xp, w9, res)
    return out[:, 0, :]


def sample_all_params(params, eps_key):
    """One Pallas call samples every Bayesian layer and returns the summed
    per-layer-mean KL (matching sum over layers of bayesian_torch kl_div().mean())."""
    names = ["conv1", "conv2", "conv3", "fc_w", "fc_b"]
    mus, rhos, klws, sizes, shapes = [], [], [], [], []
    for nm in names:
        mu = params[nm]["mu"].astype(jnp.float32).reshape(-1)
        rho = params[nm]["rho"].astype(jnp.float32).reshape(-1)
        p = mu.shape[0]
        mus.append(mu)
        rhos.append(rho)
        klws.append(jnp.full((p,), 1.0 / p, jnp.float32))
        sizes.append(p)
        shapes.append(params[nm]["mu"].shape)

    mu_f = jnp.concatenate(mus)
    rho_f = jnp.concatenate(rhos)
    klw_f = jnp.concatenate(klws)
    total = mu_f.shape[0]
    rows = -(-total // 128)
    rows = ((rows + 7) // 8) * 8                       # sublane-dense (rows % 8 == 0)
    pad = rows * 128 - total

    mu2 = jnp.pad(mu_f, (0, pad)).reshape(rows, 128)
    rho2 = jnp.pad(rho_f, (0, pad)).reshape(rows, 128)
    klw2 = jnp.pad(klw_f, (0, pad)).reshape(rows, 128)
    eps2 = jax.random.normal(eps_key, (rows, 128), jnp.float32)

    w_flat, kl = pl.pallas_call(
        _sample_kl_kernel,
        out_shape=(jax.ShapeDtypeStruct((rows, 128), jnp.float32),
                   jax.ShapeDtypeStruct((1, 1), jnp.float32)),
    )(mu2, rho2, eps2, klw2)

    w_flat = w_flat.reshape(-1)
    sampled, off = {}, 0
    for nm, p, shp in zip(names, sizes, shapes):
        sampled[nm] = w_flat[off:off + p].reshape(shp)
        off += p
    return sampled, kl[0, 0]


def classifier_xent(phi, fcw, fcb, onehot, cls_mask):
    loss = pl.pallas_call(
        _clf_xent_kernel,
        out_shape=jax.ShapeDtypeStruct((1, 1), jnp.float32),
    )(phi, fcw, fcb, onehot, cls_mask)
    return loss[0, 0]


# ------------------------------- glue (JAX) --------------------------------- #

def pad_input_nhwc(x):
    """(N,H,W,c) f32 -> (N,H+2,W+2,CP) bf16 (zero halo + zero channel pad)."""
    c = x.shape[-1]
    xp = jnp.pad(x, ((0, 0), (1, 1), (1, 1), (0, CP - c)))
    return xp.astype(jnp.bfloat16)


def pad_halo(x):
    """(N,H,W,CP) bf16 -> (N,H+2,W+2,CP) bf16 (zero halo only)."""
    return jnp.pad(x, ((0, 0), (1, 1), (1, 1), (0, 0)))


def pad_conv_weight(w):
    """(3,3,cin,cout) f32 -> (9, CP, CP) bf16 (zero-padded channels)."""
    _, _, ci, co = w.shape
    w9 = jnp.zeros((9, CP, CP), jnp.float32).at[:, :ci, :co].set(w.reshape(9, ci, co))
    return w9.astype(jnp.bfloat16)


def pad_fc_weight(w):
    """(width, n_classes) f32 -> (CP, CP) bf16."""
    wi, co = w.shape
    wp = jnp.zeros((CP, CP), jnp.float32).at[:wi, :co].set(w)
    return wp.astype(jnp.bfloat16)


def pad_fc_bias(b):
    """(n_classes,) f32 -> (1, CP) f32."""
    return jnp.zeros((1, CP), jnp.float32).at[0, :b.shape[0]].set(b)


def init_params(key, *, in_ch, width, n_classes):
    """Deterministic Bayesian init (posterior_mu ~ small normal, rho = -3.0)."""
    ks = jax.random.split(key, 4)
    rho0 = -3.0  # posterior_rho_init from const_bnn_prior_parameters

    def mk(k, shape, scale=0.05):
        return {"mu": scale * jax.random.normal(k, shape, jnp.float32),
                "rho": jnp.full(shape, rho0, jnp.float32)}

    return {
        "conv1": mk(ks[0], (3, 3, in_ch, width)),
        "conv2": mk(ks[1], (3, 3, width, width)),
        "conv3": mk(ks[2], (3, 3, width, width)),
        "fc_w": mk(ks[3], (width, n_classes)),
        "fc_b": {"mu": jnp.zeros((n_classes,), jnp.float32),
                 "rho": jnp.full((n_classes,), rho0, jnp.float32)},
    }


def bayesian_resnet_split_forward(params, x_nchw, y, eps_key, *, n_classes):
    """forward(batch=(x, y)) -> total_loss = CE + KL(features)/B + KL(classifier)/B."""
    b = x_nchw.shape[0]
    x = jnp.transpose(x_nchw, (0, 2, 3, 1)).astype(jnp.float32)   # NCHW -> NHWC

    # sample every Bayesian layer + total KL (sum of per-layer means) in one kernel
    sampled, kl_total = sample_all_params(params, eps_key)

    w1 = pad_conv_weight(sampled["conv1"])
    w2 = pad_conv_weight(sampled["conv2"])
    w3 = pad_conv_weight(sampled["conv3"])
    fcw = pad_fc_weight(sampled["fc_w"])
    fcb = pad_fc_bias(sampled["fc_b"])

    # feature extractor (fc replaced by Identity -> phi is the pooled representation)
    h1 = conv3x3(pad_input_nhwc(x), w1, relu=True)        # stem
    h2 = conv3x3(pad_halo(h1), w2, relu=True)
    phi = conv3x3_residual_pool(pad_halo(h2), w3, h1)     # conv + skip + relu + pool

    # Bayesian classifier + cross-entropy, fused
    y_onehot = jax.nn.one_hot(y, CP, dtype=jnp.float32)   # padded classes -> 0
    cls_mask = (jnp.arange(CP) < n_classes).astype(jnp.float32).reshape(1, CP)
    ce = classifier_xent(phi, fcw, fcb, y_onehot, cls_mask)

    return ce + kl_total / b


# ---------------------------------- main ------------------------------------ #

if __name__ == "__main__":
    key = jax.random.PRNGKey(0)
    pkey, xkey, ykey, ekey = jax.random.split(key, 4)

    B, C, H, W = 2, 4, 16, 16
    WIDTH, N_CLASSES = 32, 8

    params = init_params(pkey, in_ch=C, width=WIDTH, n_classes=N_CLASSES)
    x = jax.random.normal(xkey, (B, C, H, W), jnp.float32)        # PyTorch NCHW input
    y = jax.random.randint(ykey, (B,), 0, N_CLASSES)

    fwd = jax.jit(functools.partial(bayesian_resnet_split_forward, n_classes=N_CLASSES))
    loss = fwd(params, x, y, ekey)
    loss = jax.block_until_ready(loss)
    assert loss.shape == () and bool(jnp.isfinite(loss))
    print("KERNEL_OK")
</pallas_src>

<mosaic_0001>
module attributes {stable_mosaic.version = 11 : i64} {
  func.func @_conv3x3_kernel(%arg0: i32, %arg1: memref<1x18x18x128xbf16, #tpu.memory_space<vmem>>, %arg2: memref<9x128x128xbf16, #tpu.memory_space<vmem>>, %arg3: memref<1x16x16x128xbf16, #tpu.memory_space<vmem>>) attributes {dimension_semantics = [#tpu.dimension_semantics<parallel>], iteration_bounds = array<i64: 2>, scalar_prefetch = 0 : i64, scratch_operands = 0 : i64, tpu.core_type = #tpu.core_type<tc>, window_params = [{transform_indices = @transform_0, window_bounds = array<i64: 1, 18, 18, 128>}, {pipeline_mode = #tpu.pipeline_mode<synchronous>, transform_indices = @transform_1, window_bounds = array<i64: 9, 128, 128>}, {transform_indices = @transform_2, window_bounds = array<i64: 1, 16, 16, 128>}]} {
    %c0 = arith.constant 0 : index
    %c0_0 = arith.constant 0 : index
    %c0_1 = arith.constant 0 : index
    %c0_2 = arith.constant 0 : index
    %0 = vector.load %arg1[%c0, %c0_0, %c0_1, %c0_2] : memref<1x18x18x128xbf16, #tpu.memory_space<vmem>>, vector<1x18x18x128xbf16>
    %1 = vector.extract_strided_slice %0 {offsets = [0, 0, 0, 0], sizes = [1, 16, 16, 128], strides = [1, 1, 1, 1]} : vector<1x18x18x128xbf16> to vector<1x16x16x128xbf16>
    %2 = vector.shape_cast %1 : vector<1x16x16x128xbf16> to vector<16x16x128xbf16>
    %3 = vector.shape_cast %2 : vector<16x16x128xbf16> to vector<256x128xbf16>
    %c0_3 = arith.constant 0 : index
    %c0_4 = arith.constant 0 : index
    %c0_5 = arith.constant 0 : index
    %4 = vector.load %arg2[%c0_3, %c0_4, %c0_5] : memref<9x128x128xbf16, #tpu.memory_space<vmem>>, vector<1x128x128xbf16>
    %5 = vector.shape_cast %4 : vector<1x128x128xbf16> to vector<128x128xbf16>
    %cst = arith.constant dense<0.000000e+00> : vector<256x128xf32>
    %6 = tpu.matmul %3, %5, %cst {dimension_numbers = #tpu.dot_dimension_numbers<[1], [0], [0], [1], [0, 0, 1, 1], [], []>} : vector<256x128xbf16>, vector<128x128xbf16>, vector<256x128xf32> -> vector<256x128xf32>
    %7 = vector.extract_strided_slice %0 {offsets = [0, 0, 1, 0], sizes = [1, 16, 16, 128], strides = [1, 1, 1, 1]} : vector<1x18x18x128xbf16> to vector<1x16x16x128xbf16>
    %8 = vector.shape_cast %7 : vector<1x16x16x128xbf16> to vector<16x16x128xbf16>
    %9 = vector.shape_cast %8 : vector<16x16x128xbf16> to vector<256x128xbf16>
    %c1 = arith.constant 1 : index
    %c0_6 = arith.constant 0 : index
    %c0_7 = arith.constant 0 : index
    %10 = vector.load %arg2[%c1, %c0_6, %c0_7] : memref<9x128x128xbf16, #tpu.memory_space<vmem>>, vector<1x128x128xbf16>
    %11 = vector.shape_cast %10 : vector<1x128x128xbf16> to vector<128x128xbf16>
    %cst_8 = arith.constant dense<0.000000e+00> : vector<256x128xf32>
    %12 = tpu.matmul %9, %11, %cst_8 {dimension_numbers = #tpu.dot_dimension_numbers<[1], [0], [0], [1], [0, 0, 1, 1], [], []>} : vector<256x128xbf16>, vector<128x128xbf16>, vector<256x128xf32> -> vector<256x128xf32>
    %13 = arith.addf %6, %12 : vector<256x128xf32>
    %14 = vector.extract_strided_slice %0 {offsets = [0, 0, 2, 0], sizes = [1, 16, 16, 128], strides = [1, 1, 1, 1]} : vector<1x18x18x128xbf16> to vector<1x16x16x128xbf16>
    %15 = vector.shape_cast %14 : vector<1x16x16x128xbf16> to vector<16x16x128xbf16>
    %16 = vector.shape_cast %15 : vector<16x16x128xbf16> to vector<256x128xbf16>
    %c2 = arith.constant 2 : index
    %c0_9 = arith.constant 0 : index
    %c0_10 = arith.constant 0 : index
    %17 = vector.load %arg2[%c2, %c0_9, %c0_10] : memref<9x128x128xbf16, #tpu.memory_space<vmem>>, vector<1x128x128xbf16>
    %18 = vector.shape_cast %17 : vector<1x128x128xbf16> to vector<128x128xbf16>
    %cst_11 = arith.constant dense<0.000000e+00> : vector<256x128xf32>
    %19 = tpu.matmul %16, %18, %cst_11 {dimension_numbers = #tpu.dot_dimension_numbers<[1], [0], [0], [1], [0, 0, 1, 1], [], []>} : vector<256x128xbf16>, vector<128x128xbf16>, vector<256x128xf32> -> vector<256x128xf32>
    %20 = arith.addf %13, %19 : vector<256x128xf32>
    %21 = vector.extract_strided_slice %0 {offsets = [0, 1, 0, 0], sizes = [1, 16, 16, 128], strides = [1, 1, 1, 1]} : vector<1x18x18x128xbf16> to vector<1x16x16x128xbf16>
    %22 = vector.shape_cast %21 : vector<1x16x16x128xbf16> to vector<16x16x128xbf16>
    %23 = vector.shape_cast %22 : vector<16x16x128xbf16> to vector<256x128xbf16>
    %c3 = arith.constant 3 : index
    %c0_12 = arith.constant 0 : index
    %c0_13 = arith.constant 0 : index
    %24 = vector.load %arg2[%c3, %c0_12, %c0_13] : memref<9x128x128xbf16, #tpu.memory_space<vmem>>, vector<1x128x128xbf16>
    %25 = vector.shape_cast %24 : vector<1x128x128xbf16> to vector<128x128xbf16>
    %cst_14 = arith.constant dense<0.000000e+00> : vector<256x128xf32>
    %26 = tpu.matmul %23, %25, %cst_14 {dimension_numbers = #tpu.dot_dimension_numbers<[1], [0], [0], [1], [0, 0, 1, 1], [], []>} : vector<256x128xbf16>, vector<128x128xbf16>, vector<256x128xf32> -> vector<256x128xf32>
    %27 = arith.addf %20, %26 : vector<256x128xf32>
    %28 = vector.extract_strided_slice %0 {offsets = [0, 1, 1, 0], sizes = [1, 16, 16, 128], strides = [1, 1, 1, 1]} : vector<1x18x18x128xbf16> to vector<1x16x16x128xbf16>
    %29 = vector.shape_cast %28 : vector<1x16x16x128xbf16> to vector<16x16x128xbf16>
    %30 = vector.shape_cast %29 : vector<16x16x128xbf16> to vector<256x128xbf16>
    %c4 = arith.constant 4 : index
    %c0_15 = arith.constant 0 : index
    %c0_16 = arith.constant 0 : index
    %31 = vector.load %arg2[%c4, %c0_15, %c0_16] : memref<9x128x128xbf16, #tpu.memory_space<vmem>>, vector<1x128x128xbf16>
    %32 = vector.shape_cast %31 : vector<1x128x128xbf16> to vector<128x128xbf16>
    %cst_17 = arith.constant dense<0.000000e+00> : vector<256x128xf32>
    %33 = tpu.matmul %30, %32, %cst_17 {dimension_numbers = #tpu.dot_dimension_numbers<[1], [0], [0], [1], [0, 0, 1, 1], [], []>} : vector<256x128xbf16>, vector<128x128xbf16>, vector<256x128xf32> -> vector<256x128xf32>
    %34 = arith.addf %27, %33 : vector<256x128xf32>
    %35 = vector.extract_strided_slice %0 {offsets = [0, 1, 2, 0], sizes = [1, 16, 16, 128], strides = [1, 1, 1, 1]} : vector<1x18x18x128xbf16> to vector<1x16x16x128xbf16>
    %36 = vector.shape_cast %35 : vector<1x16x16x128xbf16> to vector<16x16x128xbf16>
    %37 = vector.shape_cast %36 : vector<16x16x128xbf16> to vector<256x128xbf16>
    %c5 = arith.constant 5 : index
    %c0_18 = arith.constant 0 : index
    %c0_19 = arith.constant 0 : index
    %38 = vector.load %arg2[%c5, %c0_18, %c0_19] : memref<9x128x128xbf16, #tpu.memory_space<vmem>>, vector<1x128x128xbf16>
    %39 = vector.shape_cast %38 : vector<1x128x128xbf16> to vector<128x128xbf16>
    %cst_20 = arith.constant dense<0.000000e+00> : vector<256x128xf32>
    %40 = tpu.matmul %37, %39, %cst_20 {dimension_numbers = #tpu.dot_dimension_numbers<[1], [0], [0], [1], [0, 0, 1, 1], [], []>} : vector<256x128xbf16>, vector<128x128xbf16>, vector<256x128xf32> -> vector<256x128xf32>
    %41 = arith.addf %34, %40 : vector<256x128xf32>
    %42 = vector.extract_strided_slice %0 {offsets = [0, 2, 0, 0], sizes = [1, 16, 16, 128], strides = [1, 1, 1, 1]} : vector<1x18x18x128xbf16> to vector<1x16x16x128xbf16>
    %43 = vector.shape_cast %42 : vector<1x16x16x128xbf16> to vector<16x16x128xbf16>
    %44 = vector.shape_cast %43 : vector<16x16x128xbf16> to vector<256x128xbf16>
    %c6 = arith.constant 6 : index
    %c0_21 = arith.constant 0 : index
    %c0_22 = arith.constant 0 : index
    %45 = vector.load %arg2[%c6, %c0_21, %c0_22] : memref<9x128x128xbf16, #tpu.memory_space<vmem>>, vector<1x128x128xbf16>
    %46 = vector.shape_cast %45 : vector<1x128x128xbf16> to vector<128x128xbf16>
    %cst_23 = arith.constant dense<0.000000e+00> : vector<256x128xf32>
    %47 = tpu.matmul %44, %46, %cst_23 {dimension_numbers = #tpu.dot_dimension_numbers<[1], [0], [0], [1], [0, 0, 1, 1], [], []>} : vector<256x128xbf16>, vector<128x128xbf16>, vector<256x128xf32> -> vector<256x128xf32>
    %48 = arith.addf %41, %47 : vector<256x128xf32>
    %49 = vector.extract_strided_slice %0 {offsets = [0, 2, 1, 0], sizes = [1, 16, 16, 128], strides = [1, 1, 1, 1]} : vector<1x18x18x128xbf16> to vector<1x16x16x128xbf16>
    %50 = vector.shape_cast %49 : vector<1x16x16x128xbf16> to vector<16x16x128xbf16>
    %51 = vector.shape_cast %50 : vector<16x16x128xbf16> to vector<256x128xbf16>
    %c7 = arith.constant 7 : index
    %c0_24 = arith.constant 0 : index
    %c0_25 = arith.constant 0 : index
    %52 = vector.load %arg2[%c7, %c0_24, %c0_25] : memref<9x128x128xbf16, #tpu.memory_space<vmem>>, vector<1x128x128xbf16>
    %53 = vector.shape_cast %52 : vector<1x128x128xbf16> to vector<128x128xbf16>
    %cst_26 = arith.constant dense<0.000000e+00> : vector<256x128xf32>
    %54 = tpu.matmul %51, %53, %cst_26 {dimension_numbers = #tpu.dot_dimension_numbers<[1], [0], [0], [1], [0, 0, 1, 1], [], []>} : vector<256x128xbf16>, vector<128x128xbf16>, vector<256x128xf32> -> vector<256x128xf32>
    %55 = arith.addf %48, %54 : vector<256x128xf32>
    %56 = vector.extract_strided_slice %0 {offsets = [0, 2, 2, 0], sizes = [1, 16, 16, 128], strides = [1, 1, 1, 1]} : vector<1x18x18x128xbf16> to vector<1x16x16x128xbf16>
    %57 = vector.shape_cast %56 : vector<1x16x16x128xbf16> to vector<16x16x128xbf16>
    %58 = vector.shape_cast %57 : vector<16x16x128xbf16> to vector<256x128xbf16>
    %c8 = arith.constant 8 : index
    %c0_27 = arith.constant 0 : index
    %c0_28 = arith.constant 0 : index
    %59 = vector.load %arg2[%c8, %c0_27, %c0_28] : memref<9x128x128xbf16, #tpu.memory_space<vmem>>, vector<1x128x128xbf16>
    %60 = vector.shape_cast %59 : vector<1x128x128xbf16> to vector<128x128xbf16>
    %cst_29 = arith.constant dense<0.000000e+00> : vector<256x128xf32>
    %61 = tpu.matmul %58, %60, %cst_29 {dimension_numbers = #tpu.dot_dimension_numbers<[1], [0], [0], [1], [0, 0, 1, 1], [], []>} : vector<256x128xbf16>, vector<128x128xbf16>, vector<256x128xf32> -> vector<256x128xf32>
    %62 = arith.addf %55, %61 : vector<256x128xf32>
    %cst_30 = arith.constant 0.000000e+00 : f32
    %63 = vector.broadcast %cst_30 : f32 to vector<256x128xf32>
    %64 = arith.maximumf %62, %63 : vector<256x128xf32>
    %65 = vector.shape_cast %64 : vector<256x128xf32> to vector<1x16x16x128xf32>
    %66 = arith.truncf %65 : vector<1x16x16x128xf32> to vector<1x16x16x128xbf16>
    %c0_31 = arith.constant 0 : index
    %c0_32 = arith.constant 0 : index
    %c0_33 = arith.constant 0 : index
    %c0_34 = arith.constant 0 : index
    %67 = vector.load %arg3[%c0_31, %c0_32, %c0_33, %c0_34] : memref<1x16x16x128xbf16, #tpu.memory_space<vmem>>, vector<1x16x16x128xbf16>
    tpu.vector_store %arg3[%c0_31, %c0_32, %c0_33, %c0_34], %66 {strides = array<i32>} : memref<1x16x16x128xbf16, #tpu.memory_space<vmem>>, vector<1x16x16x128xbf16>,
    return
  }
  func.func @transform_0(%arg0: i32) -> (i32, i32, i32, i32) {
    %c0_i32 = arith.constant 0 : i32
    %c0_i32_0 = arith.constant 0 : i32
    %c0_i32_1 = arith.constant 0 : i32
    %c0_i32_2 = arith.constant 0 : i32
    return %arg0, %c0_i32, %c0_i32_0, %c0_i32_1 : i32, i32, i32, i32
  }
  func.func @transform_1(%arg0: i32) -> (i32, i32, i32) {
    %c0_i32 = arith.constant 0 : i32
    %c0_i32_0 = arith.constant 0 : i32
    %c0_i32_1 = arith.constant 0 : i32
    %c0_i32_2 = arith.constant 0 : i32
    return %c0_i32, %c0_i32_0, %c0_i32_1 : i32, i32, i32
  }
  func.func @transform_2(%arg0: i32) -> (i32, i32, i32, i32) {
    %c0_i32 = arith.constant 0 : i32
    %c0_i32_0 = arith.constant 0 : i32
    %c0_i32_1 = arith.constant 0 : i32
    %c0_i32_2 = arith.constant 0 : i32
    return %arg0, %c0_i32, %c0_i32_0, %c0_i32_1 : i32, i32, i32, i32
  }
}

module attributes {stable_mosaic.version = 11 : i64} {
  func.func @_sample_kl_kernel(%arg0: memref<160x128xf32, #tpu.memory_space<vmem>>, %arg1: memref<160x128xf32, #tpu.memory_space<vmem>>, %arg2: memref<160x128xf32, #tpu.memory_space<vmem>>, %arg3: memref<160x128xf32, #tpu.memory_space<vmem>>, %arg4: memref<160x128xf32, #tpu.memory_space<vmem>>, %arg5: memref<1x1xf32, #tpu.memory_space<vmem>>) attributes {dimension_semantics = [], scalar_prefetch = 0 : i64, scratch_operands = 0 : i64, tpu.core_type = #tpu.core_type<tc>} {
    %c0 = arith.constant 0 : index
    %c0_0 = arith.constant 0 : index
    %0 = vector.load %arg0[%c0, %c0_0] : memref<160x128xf32, #tpu.memory_space<vmem>>, vector<160x128xf32>
    %c0_1 = arith.constant 0 : index
    %c0_2 = arith.constant 0 : index
    %1 = vector.load %arg1[%c0_1, %c0_2] : memref<160x128xf32, #tpu.memory_space<vmem>>, vector<160x128xf32>
    %cst = arith.constant 0.000000e+00 : f32
    %2 = vector.broadcast %cst : f32 to vector<160x128xf32>
    %3 = arith.maximumf %1, %2 : vector<160x128xf32>
    %4 = math.absf %1 : vector<160x128xf32>
    %cst_3 = arith.constant 0.000000e+00 : f32
    %5 = vector.broadcast %cst_3 : f32 to vector<160x128xf32>
    %6 = arith.subf %5, %4 : vector<160x128xf32>
    %7 = math.exp %6 : vector<160x128xf32>
    %8 = math.log1p %7 : vector<160x128xf32>
    %9 = arith.addf %3, %8 : vector<160x128xf32>
    %c0_4 = arith.constant 0 : index
    %c0_5 = arith.constant 0 : index
    %10 = vector.load %arg2[%c0_4, %c0_5] : memref<160x128xf32, #tpu.memory_space<vmem>>, vector<160x128xf32>
    %11 = arith.mulf %9, %10 : vector<160x128xf32>
    %12 = arith.addf %0, %11 : vector<160x128xf32>
    %c0_6 = arith.constant 0 : index
    %c0_7 = arith.constant 0 : index
    %13 = vector.load %arg4[%c0_6, %c0_7] : memref<160x128xf32, #tpu.memory_space<vmem>>, vector<160x128xf32>
    tpu.vector_store %arg4[%c0_6, %c0_7], %12 {strides = array<i32>} : memref<160x128xf32, #tpu.memory_space<vmem>>, vector<160x128xf32>,
    %14 = math.log %9 : vector<160x128xf32>
    %cst_8 = arith.constant 0.000000e+00 : f32
    %15 = vector.broadcast %cst_8 : f32 to vector<160x128xf32>
    %16 = arith.subf %15, %14 : vector<160x128xf32>
    %17 = arith.mulf %9, %9 : vector<160x128xf32>
    %18 = arith.mulf %0, %0 : vector<160x128xf32>
    %19 = arith.addf %17, %18 : vector<160x128xf32>
    %cst_9 = arith.constant 5.000000e-01 : f32
    %20 = vector.broadcast %cst_9 : f32 to vector<160x128xf32>
    %21 = arith.mulf %20, %19 : vector<160x128xf32>
    %22 = arith.addf %16, %21 : vector<160x128xf32>
    %cst_10 = arith.constant 5.000000e-01 : f32
    %23 = vector.broadcast %cst_10 : f32 to vector<160x128xf32>
    %24 = arith.subf %22, %23 : vector<160x128xf32>
    %c0_11 = arith.constant 0 : index
    %c0_12 = arith.constant 0 : index
    %25 = vector.load %arg3[%c0_11, %c0_12] : memref<160x128xf32, #tpu.memory_space<vmem>>, vector<160x128xf32>
    %26 = arith.mulf %24, %25 : vector<160x128xf32>
    %27 = vector.shape_cast %26 : vector<160x128xf32> to vector<1x160x128xf32>
    %cst_13 = arith.constant dense<0.000000e+00> : vector<1xf32>
    %28 = vector.multi_reduction <add>, %27, %cst_13 [1, 2] : vector<1x160x128xf32> to vector<1xf32>
    %29 = vector.shape_cast %28 : vector<1xf32> to vector<1x1x1xf32>
    %30 = vector.extract %29[0, 0, 0] : f32 from vector<1x1x1xf32>
    %31 = vector.broadcast %30 : f32 to vector<1x1xf32>
    %c0_14 = arith.constant 0 : index
    %c0_15 = arith.constant 0 : index
    %32 = vector.load %arg5[%c0_14, %c0_15] : memref<1x1xf32, #tpu.memory_space<vmem>>, vector<1x1xf32>
    tpu.vector_store %arg5[%c0_14, %c0_15], %31 {strides = array<i32>} : memref<1x1xf32, #tpu.memory_space<vmem>>, vector<1x1xf32>,
    return
  }
}

module attributes {stable_mosaic.version = 11 : i64} {
  func.func @_conv3x3_res_pool_kernel(%arg0: i32, %arg1: memref<1x18x18x128xbf16, #tpu.memory_space<vmem>>, %arg2: memref<9x128x128xbf16, #tpu.memory_space<vmem>>, %arg3: memref<1x16x16x128xbf16, #tpu.memory_space<vmem>>, %arg4: memref<1x8x128xf32, #tpu.memory_space<vmem>>) attributes {dimension_semantics = [#tpu.dimension_semantics<parallel>], iteration_bounds = array<i64: 2>, scalar_prefetch = 0 : i64, scratch_operands = 0 : i64, tpu.core_type = #tpu.core_type<tc>, window_params = [{transform_indices = @transform_0, window_bounds = array<i64: 1, 18, 18, 128>}, {pipeline_mode = #tpu.pipeline_mode<synchronous>, transform_indices = @transform_1, window_bounds = array<i64: 9, 128, 128>}, {transform_indices = @transform_2, window_bounds = array<i64: 1, 16, 16, 128>}, {transform_indices = @transform_3, window_bounds = array<i64: 1, 8, 128>}]} {
    %c0 = arith.constant 0 : index
    %c0_0 = arith.constant 0 : index
    %c0_1 = arith.constant 0 : index
    %c0_2 = arith.constant 0 : index
    %0 = vector.load %arg1[%c0, %c0_0, %c0_1, %c0_2] : memref<1x18x18x128xbf16, #tpu.memory_space<vmem>>, vector<1x18x18x128xbf16>
    %1 = vector.extract_strided_slice %0 {offsets = [0, 0, 0, 0], sizes = [1, 16, 16, 128], strides = [1, 1, 1, 1]} : vector<1x18x18x128xbf16> to vector<1x16x16x128xbf16>
    %2 = vector.shape_cast %1 : vector<1x16x16x128xbf16> to vector<16x16x128xbf16>
    %3 = vector.shape_cast %2 : vector<16x16x128xbf16> to vector<256x128xbf16>
    %c0_3 = arith.constant 0 : index
    %c0_4 = arith.constant 0 : index
    %c0_5 = arith.constant 0 : index
    %4 = vector.load %arg2[%c0_3, %c0_4, %c0_5] : memref<9x128x128xbf16, #tpu.memory_space<vmem>>, vector<1x128x128xbf16>
    %5 = vector.shape_cast %4 : vector<1x128x128xbf16> to vector<128x128xbf16>
    %cst = arith.constant dense<0.000000e+00> : vector<256x128xf32>
    %6 = tpu.matmul %3, %5, %cst {dimension_numbers = #tpu.dot_dimension_numbers<[1], [0], [0], [1], [0, 0, 1, 1], [], []>} : vector<256x128xbf16>, vector<128x128xbf16>, vector<256x128xf32> -> vector<256x128xf32>
    %7 = vector.extract_strided_slice %0 {offsets = [0, 0, 1, 0], sizes = [1, 16, 16, 128], strides = [1, 1, 1, 1]} : vector<1x18x18x128xbf16> to vector<1x16x16x128xbf16>
    %8 = vector.shape_cast %7 : vector<1x16x16x128xbf16> to vector<16x16x128xbf16>
    %9 = vector.shape_cast %8 : vector<16x16x128xbf16> to vector<256x128xbf16>
    %c1 = arith.constant 1 : index
    %c0_6 = arith.constant 0 : index
    %c0_7 = arith.constant 0 : index
    %10 = vector.load %arg2[%c1, %c0_6, %c0_7] : memref<9x128x128xbf16, #tpu.memory_space<vmem>>, vector<1x128x128xbf16>
    %11 = vector.shape_cast %10 : vector<1x128x128xbf16> to vector<128x128xbf16>
    %cst_8 = arith.constant dense<0.000000e+00> : vector<256x128xf32>
    %12 = tpu.matmul %9, %11, %cst_8 {dimension_numbers = #tpu.dot_dimension_numbers<[1], [0], [0], [1], [0, 0, 1, 1], [], []>} : vector<256x128xbf16>, vector<128x128xbf16>, vector<256x128xf32> -> vector<256x128xf32>
    %13 = arith.addf %6, %12 : vector<256x128xf32>
    %14 = vector.extract_strided_slice %0 {offsets = [0, 0, 2, 0], sizes = [1, 16, 16, 128], strides = [1, 1, 1, 1]} : vector<1x18x18x128xbf16> to vector<1x16x16x128xbf16>
    %15 = vector.shape_cast %14 : vector<1x16x16x128xbf16> to vector<16x16x128xbf16>
    %16 = vector.shape_cast %15 : vector<16x16x128xbf16> to vector<256x128xbf16>
    %c2 = arith.constant 2 : index
    %c0_9 = arith.constant 0 : index
    %c0_10 = arith.constant 0 : index
    %17 = vector.load %arg2[%c2, %c0_9, %c0_10] : memref<9x128x128xbf16, #tpu.memory_space<vmem>>, vector<1x128x128xbf16>
    %18 = vector.shape_cast %17 : vector<1x128x128xbf16> to vector<128x128xbf16>
    %cst_11 = arith.constant dense<0.000000e+00> : vector<256x128xf32>
    %19 = tpu.matmul %16, %18, %cst_11 {dimension_numbers = #tpu.dot_dimension_numbers<[1], [0], [0], [1], [0, 0, 1, 1], [], []>} : vector<256x128xbf16>, vector<128x128xbf16>, vector<256x128xf32> -> vector<256x128xf32>
    %20 = arith.addf %13, %19 : vector<256x128xf32>
    %21 = vector.extract_strided_slice %0 {offsets = [0, 1, 0, 0], sizes = [1, 16, 16, 128], strides = [1, 1, 1, 1]} : vector<1x18x18x128xbf16> to vector<1x16x16x128xbf16>
    %22 = vector.shape_cast %21 : vector<1x16x16x128xbf16> to vector<16x16x128xbf16>
    %23 = vector.shape_cast %22 : vector<16x16x128xbf16> to vector<256x128xbf16>
    %c3 = arith.constant 3 : index
    %c0_12 = arith.constant 0 : index
    %c0_13 = arith.constant 0 : index
    %24 = vector.load %arg2[%c3, %c0_12, %c0_13] : memref<9x128x128xbf16, #tpu.memory_space<vmem>>, vector<1x128x128xbf16>
    %25 = vector.shape_cast %24 : vector<1x128x128xbf16> to vector<128x128xbf16>
    %cst_14 = arith.constant dense<0.000000e+00> : vector<256x128xf32>
    %26 = tpu.matmul %23, %25, %cst_14 {dimension_numbers = #tpu.dot_dimension_numbers<[1], [0], [0], [1], [0, 0, 1, 1], [], []>} : vector<256x128xbf16>, vector<128x128xbf16>, vector<256x128xf32> -> vector<256x128xf32>
    %27 = arith.addf %20, %26 : vector<256x128xf32>
    %28 = vector.extract_strided_slice %0 {offsets = [0, 1, 1, 0], sizes = [1, 16, 16, 128], strides = [1, 1, 1, 1]} : vector<1x18x18x128xbf16> to vector<1x16x16x128xbf16>
    %29 = vector.shape_cast %28 : vector<1x16x16x128xbf16> to vector<16x16x128xbf16>
    %30 = vector.shape_cast %29 : vector<16x16x128xbf16> to vector<256x128xbf16>
    %c4 = arith.constant 4 : index
    %c0_15 = arith.constant 0 : index
    %c0_16 = arith.constant 0 : index
    %31 = vector.load %arg2[%c4, %c0_15, %c0_16] : memref<9x128x128xbf16, #tpu.memory_space<vmem>>, vector<1x128x128xbf16>
    %32 = vector.shape_cast %31 : vector<1x128x128xbf16> to vector<128x128xbf16>
    %cst_17 = arith.constant dense<0.000000e+00> : vector<256x128xf32>
    %33 = tpu.matmul %30, %32, %cst_17 {dimension_numbers = #tpu.dot_dimension_numbers<[1], [0], [0], [1], [0, 0, 1, 1], [], []>} : vector<256x128xbf16>, vector<128x128xbf16>, vector<256x128xf32> -> vector<256x128xf32>
    %34 = arith.addf %27, %33 : vector<256x128xf32>
    %35 = vector.extract_strided_slice %0 {offsets = [0, 1, 2, 0], sizes = [1, 16, 16, 128], strides = [1, 1, 1, 1]} : vector<1x18x18x128xbf16> to vector<1x16x16x128xbf16>
    %36 = vector.shape_cast %35 : vector<1x16x16x128xbf16> to vector<16x16x128xbf16>
    %37 = vector.shape_cast %36 : vector<16x16x128xbf16> to vector<256x128xbf16>
    %c5 = arith.constant 5 : index
    %c0_18 = arith.constant 0 : index
    %c0_19 = arith.constant 0 : index
    %38 = vector.load %arg2[%c5, %c0_18, %c0_19] : memref<9x128x128xbf16, #tpu.memory_space<vmem>>, vector<1x128x128xbf16>
    %39 = vector.shape_cast %38 : vector<1x128x128xbf16> to vector<128x128xbf16>
    %cst_20 = arith.constant dense<0.000000e+00> : vector<256x128xf32>
    %40 = tpu.matmul %37, %39, %cst_20 {dimension_numbers = #tpu.dot_dimension_numbers<[1], [0], [0], [1], [0, 0, 1, 1], [], []>} : vector<256x128xbf16>, vector<128x128xbf16>, vector<256x128xf32> -> vector<256x128xf32>
    %41 = arith.addf %34, %40 : vector<256x128xf32>
    %42 = vector.extract_strided_slice %0 {offsets = [0, 2, 0, 0], sizes = [1, 16, 16, 128], strides = [1, 1, 1, 1]} : vector<1x18x18x128xbf16> to vector<1x16x16x128xbf16>
    %43 = vector.shape_cast %42 : vector<1x16x16x128xbf16> to vector<16x16x128xbf16>
    %44 = vector.shape_cast %43 : vector<16x16x128xbf16> to vector<256x128xbf16>
    %c6 = arith.constant 6 : index
    %c0_21 = arith.constant 0 : index
    %c0_22 = arith.constant 0 : index
    %45 = vector.load %arg2[%c6, %c0_21, %c0_22] : memref<9x128x128xbf16, #tpu.memory_space<vmem>>, vector<1x128x128xbf16>
    %46 = vector.shape_cast %45 : vector<1x128x128xbf16> to vector<128x128xbf16>
    %cst_23 = arith.constant dense<0.000000e+00> : vector<256x128xf32>
    %47 = tpu.matmul %44, %46, %cst_23 {dimension_numbers = #tpu.dot_dimension_numbers<[1], [0], [0], [1], [0, 0, 1, 1], [], []>} : vector<256x128xbf16>, vector<128x128xbf16>, vector<256x128xf32> -> vector<256x128xf32>
    %48 = arith.addf %41, %47 : vector<256x128xf32>
    %49 = vector.extract_strided_slice %0 {offsets = [0, 2, 1, 0], sizes = [1, 16, 16, 128], strides = [1, 1, 1, 1]} : vector<1x18x18x128xbf16> to vector<1x16x16x128xbf16>
    %50 = vector.shape_cast %49 : vector<1x16x16x128xbf16> to vector<16x16x128xbf16>
    %51 = vector.shape_cast %50 : vector<16x16x128xbf16> to vector<256x128xbf16>
    %c7 = arith.constant 7 : index
    %c0_24 = arith.constant 0 : index
    %c0_25 = arith.constant 0 : index
    %52 = vector.load %arg2[%c7, %c0_24, %c0_25] : memref<9x128x128xbf16, #tpu.memory_space<vmem>>, vector<1x128x128xbf16>
    %53 = vector.shape_cast %52 : vector<1x128x128xbf16> to vector<128x128xbf16>
    %cst_26 = arith.constant dense<0.000000e+00> : vector<256x128xf32>
    %54 = tpu.matmul %51, %53, %cst_26 {dimension_numbers = #tpu.dot_dimension_numbers<[1], [0], [0], [1], [0, 0, 1, 1], [], []>} : vector<256x128xbf16>, vector<128x128xbf16>, vector<256x128xf32> -> vector<256x128xf32>
    %55 = arith.addf %48, %54 : vector<256x128xf32>
    %56 = vector.extract_strided_slice %0 {offsets = [0, 2, 2, 0], sizes = [1, 16, 16, 128], strides = [1, 1, 1, 1]} : vector<1x18x18x128xbf16> to vector<1x16x16x128xbf16>
    %57 = vector.shape_cast %56 : vector<1x16x16x128xbf16> to vector<16x16x128xbf16>
    %58 = vector.shape_cast %57 : vector<16x16x128xbf16> to vector<256x128xbf16>
    %c8 = arith.constant 8 : index
    %c0_27 = arith.constant 0 : index
    %c0_28 = arith.constant 0 : index
    %59 = vector.load %arg2[%c8, %c0_27, %c0_28] : memref<9x128x128xbf16, #tpu.memory_space<vmem>>, vector<1x128x128xbf16>
    %60 = vector.shape_cast %59 : vector<1x128x128xbf16> to vector<128x128xbf16>
    %cst_29 = arith.constant dense<0.000000e+00> : vector<256x128xf32>
    %61 = tpu.matmul %58, %60, %cst_29 {dimension_numbers = #tpu.dot_dimension_numbers<[1], [0], [0], [1], [0, 0, 1, 1], [], []>} : vector<256x128xbf16>, vector<128x128xbf16>, vector<256x128xf32> -> vector<256x128xf32>
    %62 = arith.addf %55, %61 : vector<256x128xf32>
    %c0_30 = arith.constant 0 : index
    %c0_31 = arith.constant 0 : index
    %c0_32 = arith.constant 0 : index
    %c0_33 = arith.constant 0 : index
    %63 = vector.load %arg3[%c0_30, %c0_31, %c0_32, %c0_33] : memref<1x16x16x128xbf16, #tpu.memory_space<vmem>>, vector<1x16x16x128xbf16>
    %64 = vector.shape_cast %63 : vector<1x16x16x128xbf16> to vector<256x128xbf16>
    %65 = arith.extf %64 : vector<256x128xbf16> to vector<256x128xf32>
    %66 = arith.addf %62, %65 : vector<256x128xf32>
    %cst_34 = arith.constant 0.000000e+00 : f32
    %67 = vector.broadcast %cst_34 : f32 to vector<256x128xf32>
    %68 = arith.maximumf %66, %67 : vector<256x128xf32>
    %cst_35 = arith.constant dense<0.000000e+00> : vector<128xf32>
    %69 = vector.multi_reduction <add>, %68, %cst_35 [0] : vector<256x128xf32> to vector<128xf32>
    %70 = vector.shape_cast %69 : vector<128xf32> to vector<1x128xf32>
    %cst_36 = arith.constant 2.560000e+02 : f32
    %71 = vector.broadcast %cst_36 : f32 to vector<1x128xf32>
    %72 = arith.divf %70, %71 : vector<1x128xf32>
    %73 = vector.shape_cast %72 : vector<1x128xf32> to vector<1x1x128xf32>
    %74 = vector.shape_cast %73 : vector<1x1x128xf32> to vector<1x1x128xf32>
    %75 = vector.broadcast %74 : vector<1x1x128xf32> to vector<1x8x128xf32>
    %c0_37 = arith.constant 0 : index
    %c0_38 = arith.constant 0 : index
    %c0_39 = arith.constant 0 : index
    %76 = vector.load %arg4[%c0_37, %c0_38, %c0_39] : memref<1x8x128xf32, #tpu.memory_space<vmem>>, vector<1x8x128xf32>
    tpu.vector_store %arg4[%c0_37, %c0_38, %c0_39], %75 {strides = array<i32>} : memref<1x8x128xf32, #tpu.memory_space<vmem>>, vector<1x8x128xf32>,
    return
  }
  func.func @transform_0(%arg0: i32) -> (i32, i32, i32, i32) {
    %c0_i32 = arith.constant 0 : i32
    %c0_i32_0 = arith.constant 0 : i32
    %c0_i32_1 = arith.constant 0 : i32
    %c0_i32_2 = arith.constant 0 : i32
    return %arg0, %c0_i32, %c0_i32_0, %c0_i32_1 : i32, i32, i32, i32
  }
  func.func @transform_1(%arg0: i32) -> (i32, i32, i32) {
    %c0_i32 = arith.constant 0 : i32
    %c0_i32_0 = arith.constant 0 : i32
    %c0_i32_1 = arith.constant 0 : i32
    %c0_i32_2 = arith.constant 0 : i32
    return %c0_i32, %c0_i32_0, %c0_i32_1 : i32, i32, i32
  }
  func.func @transform_2(%arg0: i32) -> (i32, i32, i32, i32) {
    %c0_i32 = arith.constant 0 : i32
    %c0_i32_0 = arith.constant 0 : i32
    %c0_i32_1 = arith.constant 0 : i32
    %c0_i32_2 = arith.constant 0 : i32
    return %arg0, %c0_i32, %c0_i32_0, %c0_i32_1 : i32, i32, i32, i32
  }
  func.func @transform_3(%arg0: i32) -> (i32, i32, i32) {
    %c0_i32 = arith.constant 0 : i32
    %c0_i32_0 = arith.constant 0 : i32
    %c0_i32_1 = arith.constant 0 : i32
    return %arg0, %c0_i32, %c0_i32_0 : i32, i32, i32
  }
}

module attributes {stable_mosaic.version = 11 : i64} {
  func.func @_clf_xent_kernel(%arg0: memref<2x128xf32, #tpu.memory_space<vmem>>, %arg1: memref<128x128xbf16, #tpu.memory_space<vmem>>, %arg2: memref<1x128xf32, #tpu.memory_space<vmem>>, %arg3: memref<2x128xf32, #tpu.memory_space<vmem>>, %arg4: memref<1x128xf32, #tpu.memory_space<vmem>>, %arg5: memref<1x1xf32, #tpu.memory_space<vmem>>) attributes {dimension_semantics = [], scalar_prefetch = 0 : i64, scratch_operands = 0 : i64, tpu.core_type = #tpu.core_type<tc>} {
    %c0 = arith.constant 0 : index
    %c0_0 = arith.constant 0 : index
    %0 = vector.load %arg0[%c0, %c0_0] : memref<2x128xf32, #tpu.memory_space<vmem>>, vector<2x128xf32>
    %1 = arith.truncf %0 : vector<2x128xf32> to vector<2x128xbf16>
    %c0_1 = arith.constant 0 : index
    %c0_2 = arith.constant 0 : index
    %2 = vector.load %arg1[%c0_1, %c0_2] : memref<128x128xbf16, #tpu.memory_space<vmem>>, vector<128x128xbf16>
    %cst = arith.constant dense<0.000000e+00> : vector<2x128xf32>
    %3 = tpu.matmul %1, %2, %cst {dimension_numbers = #tpu.dot_dimension_numbers<[1], [0], [0], [1], [0, 0, 1, 1], [], []>} : vector<2x128xbf16>, vector<128x128xbf16>, vector<2x128xf32> -> vector<2x128xf32>
    %c0_3 = arith.constant 0 : index
    %c0_4 = arith.constant 0 : index
    %4 = vector.load %arg2[%c0_3, %c0_4] : memref<1x128xf32, #tpu.memory_space<vmem>>, vector<1x128xf32>
    %5 = vector.broadcast %4 : vector<1x128xf32> to vector<2x128xf32>
    %6 = arith.addf %3, %5 : vector<2x128xf32>
    %c0_5 = arith.constant 0 : index
    %c0_6 = arith.constant 0 : index
    %7 = vector.load %arg4[%c0_5, %c0_6] : memref<1x128xf32, #tpu.memory_space<vmem>>, vector<1x128xf32>
    %cst_7 = arith.constant 0.000000e+00 : f32
    %8 = vector.broadcast %cst_7 : f32 to vector<1x128xf32>
    %9 = arith.cmpf ogt, %7, %8 : vector<1x128xf32>
    %cst_8 = arith.constant -1.000000e+30 : f32
    %10 = vector.shape_cast %9 : vector<1x128xi1> to vector<1x128xi1>
    %11 = vector.broadcast %10 : vector<1x128xi1> to vector<2x128xi1>
    %12 = vector.broadcast %cst_8 : f32 to vector<2x128xf32>
    %13 = arith.select %11, %6, %12 : vector<2x128xi1>, vector<2x128xf32>
    %cst_9 = arith.constant dense<0xFF800000> : vector<2xf32>
    %14 = vector.multi_reduction <maximumf>, %13, %cst_9 [1] : vector<2x128xf32> to vector<2xf32>
    %15 = vector.shape_cast %14 : vector<2xf32> to vector<2x1xf32>
    %16 = vector.broadcast %15 : vector<2x1xf32> to vector<2x128xf32>
    %17 = arith.subf %13, %16 : vector<2x128xf32>
    %18 = math.exp %17 : vector<2x128xf32>
    %cst_10 = arith.constant dense<0.000000e+00> : vector<2xf32>
    %19 = vector.multi_reduction <add>, %18, %cst_10 [1] : vector<2x128xf32> to vector<2xf32>
    %20 = vector.shape_cast %19 : vector<2xf32> to vector<2x1xf32>
    %21 = math.log %20 : vector<2x1xf32>
    %22 = arith.addf %15, %21 : vector<2x1xf32>
    %c0_11 = arith.constant 0 : index
    %c0_12 = arith.constant 0 : index
    %23 = vector.load %arg3[%c0_11, %c0_12] : memref<2x128xf32, #tpu.memory_space<vmem>>, vector<2x128xf32>
    %24 = arith.mulf %13, %23 : vector<2x128xf32>
    %cst_13 = arith.constant dense<0.000000e+00> : vector<2xf32>
    %25 = vector.multi_reduction <add>, %24, %cst_13 [1] : vector<2x128xf32> to vector<2xf32>
    %26 = vector.shape_cast %25 : vector<2xf32> to vector<2x1xf32>
    %27 = arith.subf %22, %26 : vector<2x1xf32>
    %28 = vector.shape_cast %27 : vector<2x1xf32> to vector<1x2x1xf32>
    %cst_14 = arith.constant dense<0.000000e+00> : vector<1xf32>
    %29 = vector.multi_reduction <add>, %28, %cst_14 [1, 2] : vector<1x2x1xf32> to vector<1xf32>
    %30 = vector.shape_cast %29 : vector<1xf32> to vector<1x1x1xf32>
    %31 = vector.extract %30[0, 0, 0] : f32 from vector<1x1x1xf32>
    %cst_15 = arith.constant 2.000000e+00 : f32
    %32 = arith.divf %31, %cst_15 : f32
    %33 = vector.broadcast %32 : f32 to vector<1x1xf32>
    %c0_16 = arith.constant 0 : index
    %c0_17 = arith.constant 0 : index
    %34 = vector.load %arg5[%c0_16, %c0_17] : memref<1x1xf32, #tpu.memory_space<vmem>>, vector<1x1xf32>
    tpu.vector_store %arg5[%c0_16, %c0_17], %33 {strides = array<i32>} : memref<1x1xf32, #tpu.memory_space<vmem>>, vector<1x1xf32>,
    return
  }
}

</mosaic_0001>

<bundles_post_ra>
// kernel: custom-call.1
= control target key start
LH: loop header
LB: loop body
LE: loop exit
PB: predicated region body
PF: predicated region fallthrough
CT: control target
= control target key end

     0   :  { %s6_s0 = inlined_call_operand.vmem [shape: f32[19848], index: 0, kind: output, shape index: {}]  }

// kernel: bayesian_resnet_split_forward.5
= control target key start
LH: loop header
LB: loop body
LE: loop exit
PB: predicated region body
PF: predicated region fallthrough
CT: control target
= control target key end

     0   :  { %11 = vsyncpa [#allocation3], 0  ;;  %s1979_s0 = inlined_call_operand.vmem [shape: f32[160,128], index: 0, kind: input, shape index: {}]   ;;  %s1980_s1 = inlined_call_operand.vmem [shape: f32[160,128], index: 1, kind: input, shape index: {}]   ;;  %s1981_s2 = inlined_call_operand.vmem [shape: f32[160,128], index: 2, kind: input, shape index: {}]   ;;  %s1982_s3 = inlined_call_operand.vmem [shape: f32[160,128], index: 3, kind: input, shape index: {}]   ;;  %s1983_s4 = inlined_call_operand.vmem [shape: f32[160,128], index: 4, kind: output, shape index: {0}]   ;;  %s1984_s5 = inlined_call_operand.hbm [shape: f32[1,1], index: 5, kind: output, shape index: {1}]  }
   0x1   :  { %v910_v0 = vld [vmem:[%s1980_s1] sm:$0xff]  ;;  %v915_v1 = vld [vmem:[%s1980_s1 + $0x8] sm:$0xff]  ;;  %v920_v2 = vld [vmem:[%s1980_s1 + $0x10] sm:$0xff] }
   0x2   :  { %v925_v3 = vld [vmem:[%s1980_s1 + $0x18] sm:$0xff]  ;;  %v930_v4 = vld [vmem:[%s1980_s1 + $0x20] sm:$0xff]  ;;  %v935_v5 = vld [vmem:[%s1980_s1 + $0x28] sm:$0xff]  ;;  %v80_v8 = vand.u32 2147483647, %v910_v0 }
   0x3   :  { %v940_v6 = vld [vmem:[%s1980_s1 + $0x30] sm:$0xff]  ;;  %v81_v9 = vand.u32 2147483647, %v915_v1  ;;  %v82_v10 = vand.u32 2147483647, %v920_v2  ;;  %v949_v11 = vld [vmem:[%s1980_s1 + $0x38] sm:$0xff] }
   0x4   :  { %v954_v12 = vld [vmem:[%s1980_s1 + $0x40] sm:$0xff]  ;;  %v83_v15 = vand.u32 2147483647, %v925_v3  ;;  %v962_v16 = vld [vmem:[%s1980_s1 + $0x48] sm:$0xff]  ;;  %v84_v20 = vand.u32 2147483647, %v930_v4 }
   0x5   :  { %2003 = vst [vmem:[#allocation5_spill] sm:$0xff] %v962_v16  ;;  %v85_v23 = vand.u32 2147483647, %v935_v5  ;;  %v86_v24 = vand.u32 2147483647, %v940_v6  ;;  %v975_v25 = vld [vmem:[%s1980_s1 + $0x50] sm:$0xff] }
   0x6   :  { %2004 = vst [vmem:[#allocation6_spill] sm:$0xff] %v975_v25  ;;  %v980_v26 = vld [vmem:[%s1980_s1 + $0x58] sm:$0xff]  ;;  %v100_v28 = vsub.f32 0.0, %v80_v8  ;;  %v101_v29 = vsub.f32 0.0, %v81_v9  ;;  %v102_v30 = vsub.f32 0.0, %v82_v10  ;;  %v986_v31 = vld [vmem:[%s1980_s1 + $0x60] sm:$0xff] }
   0x7   :  { %2005 = vst [vmem:[#allocation7_spill] sm:$0xff] %v980_v26  ;;  %2006 = vst [vmem:[#allocation8_spill] sm:$0xff] %v986_v31  ;;  %v87_v34 = vand.u32 2147483647, %v949_v11  ;;  %v103_v35 = vsub.f32 0.0, %v83_v15  ;;  %v994_v36 = vld [vmem:[%s1980_s1 + $0x68] sm:$0xff] }
   0x8   :  { %2007 = vst [vmem:[#allocation9_spill] sm:$0xff] %v994_v36  ;;  %v88_v39 = vand.u32 2147483647, %v954_v12  ;;  %v104_v40 = vsub.f32 0.0, %v84_v20  ;;  %v1002_v41 = vld [vmem:[%s1980_s1 + $0x70] sm:$0xff]  ;;  %v105_v44 = vsub.f32 0.0, %v85_v23 }
   0x9   :  { %2008 = vst [vmem:[#allocation10_spill] sm:$0xff] %v1002_v41  ;;  %v89_v42 = vand.u32 2147483647, %v962_v16  ;;  %v90_v43 = vand.u32 2147483647, %v975_v25  ;;  %v106_v45 = vsub.f32 0.0, %v86_v24 }
   0xa   :  { %v120_v46 = vmul.f32 1.442695, %v100_v28  ;;  %v122_v47 = vmul.f32 1.442695, %v101_v29  ;;  %v124_v48 = vmul.f32 1.442695, %v102_v30 }
   0xb   :  { %v91_v50 = vand.u32 2147483647, %v980_v26  ;;  %v107_v51 = vsub.f32 0.0, %v87_v34  ;;  %v126_v52 = vmul.f32 1.442695, %v103_v35  ;;  %v1011_v53 = vld [vmem:[%s1980_s1 + $0x78] sm:$0xff] }
   0xc   :  { %2009 = vst [vmem:[#allocation11_spill] sm:$0xff] %v1011_v53  ;;  %v92_v54 = vand.u32 2147483647, %v986_v31  ;;  %v108_v55 = vsub.f32 0.0, %v88_v39  ;;  %732 = vpow2.f32 %v120_v46  ;;  %v128_v56 = vmul.f32 1.442695, %v104_v40 }
   0xd   :  { %v1017_v57 = vld [vmem:[%s1980_s1 + $0x80] sm:$0xff]  ;;  %v93_v58 = vand.u32 2147483647, %v994_v36  ;;  %v109_v59 = vsub.f32 0.0, %v89_v42  ;;  %734 = vpow2.f32 %v122_v47  ;;  %v130_v60 = vmul.f32 1.442695, %v105_v44 }
   0xe   :  { %2010 = vst [vmem:[#allocation12_spill] sm:$0xff] %v1017_v57  ;;  %v1023_v61 = vld [vmem:[%s1980_s1 + $0x88] sm:$0xff]  ;;  %v94_v62 = vand.u32 2147483647, %v1002_v41  ;;  %v110_v63 = vsub.f32 0.0, %v90_v43  ;;  %736 = vpow2.f32 %v124_v48  ;;  %v1029_v9 = vld [vmem:[%s1980_s1 + $0x90] sm:$0xff] }
   0xf   :  { %2011 = vst [vmem:[#allocation13_spill] sm:$0xff] %v1023_v61  ;;  %v132_v8 = vmul.f32 1.442695, %v106_v45  ;;  %2012 = vst [vmem:[#allocation14_spill] sm:$0xff] %v1029_v9  ;;  %v95_v10 = vand.u32 2147483647, %v1011_v53  ;;  %738 = vpow2.f32 %v126_v52 }
  0x10   :  { %v111_v15 = vsub.f32 0.0, %v91_v50  ;;  %v134_v20 = vmul.f32 1.442695, %v107_v51  ;;  %v1035_v23 = vld [vmem:[%s1980_s1 + $0x98] sm:$0xff]  ;;  %v96_v24 = vand.u32 2147483647, %v1017_v57  ;;  %740 = vpow2.f32 %v128_v56 }
  0x11   :  { %2013 = vst [vmem:[#allocation15_spill] sm:$0xff] %v1035_v23  ;;  %v112_v28 = vsub.f32 0.0, %v92_v54  ;;  %v136_v29 = vmul.f32 1.442695, %v108_v55  ;;  %v97_v30 = vand.u32 2147483647, %v1023_v61  ;;  %742 = vpow2.f32 %v130_v60 }
  0x12   :  { %v113_v34 = vsub.f32 0.0, %v93_v58  ;;  %v138_v35 = vmul.f32 1.442695, %v109_v59  ;;  %v98_v39 = vand.u32 2147483647, %v1029_v9  ;;  %v114_v40 = vsub.f32 0.0, %v94_v62 }
  0x13   :  { %744 = vpow2.f32 %v132_v8  ;;  %v140_v42 = vmul.f32 1.442695, %v110_v63  ;;  %v99_v43 = vand.u32 2147483647, %v1035_v23  ;;  %v115_v44 = vsub.f32 0.0, %v95_v10  ;;  %v1609_v37 = vld [vmem:[%s1979_s0 + $0x28] sm:$0xff] }
  0x14   :  { %746 = vpow2.f32 %v134_v20  ;;  %v142_v45 = vmul.f32 1.442695, %v111_v15  ;;  %v116_v47 = vsub.f32 0.0, %v96_v24  ;;  %v144_v48 = vmul.f32 1.442695, %v112_v28 }
  0x15   :  { %748 = vpow2.f32 %v136_v29  ;;  %v117_v51 = vsub.f32 0.0, %v97_v30  ;;  %v146_v52 = vmul.f32 1.442695, %v113_v34  ;;  %v118_v56 = vsub.f32 0.0, %v98_v39 }
  0x16   :  { %750 = vpow2.f32 %v138_v35  ;;  %v1043_v54 = vpop.eup %732  ;;  %v148_v58 = vmul.f32 1.442695, %v114_v40  ;;  %v119_v60 = vsub.f32 0.0, %v99_v43  ;;  %v150_v62 = vmul.f32 1.442695, %v115_v44 }
  0x17   :  { %752 = vpow2.f32 %v140_v42  ;;  %v735_v59 = vpop.eup %734  ;;  %v163_v63 = vmul.f32 -0.5, %v1043_v54  ;;  %v152_v15 = vmul.f32 1.442695, %v116_v47  ;;  %v154_v30 = vmul.f32 1.442695, %v117_v51 }
  0x18   :  { %754 = vpow2.f32 %v142_v45  ;;  %v1047_v8 = vpop.eup %736  ;;  %v172_v20 = vmul.f32 -0.5, %v735_v59  ;;  %v156_v35 = vmul.f32 1.442695, %v118_v56  ;;  %v158_v43 = vmul.f32 1.442695, %v119_v60 }
  0x19   :  { %756 = vpow2.f32 %v144_v48  ;;  %v1050_v24 = vpop.eup %738  ;;  %v164_v39 = vadd.f32 1.0, %v163_v63  ;;  %v181_v40 = vmul.f32 -0.5, %v1047_v8  ;;  %v160_v44 = vadd.f32 1.0, %v1043_v54 }
  0x1a   :  { %758 = vpow2.f32 %v146_v52  ;;  %v1054_v34 = vpop.eup %740  ;;  %v173_v45 = vadd.f32 1.0, %v172_v20  ;;  %v166_v48 = vand.u32 2147483647, %v1043_v54  ;;  %v169_v51 = vadd.f32 1.0, %v735_v59 }
  0x1b   :  { %760 = vpow2.f32 %v148_v58  ;;  %v1057_v42 = vpop.eup %742  ;;  %v190_v52 = vmul.f32 -0.5, %v1050_v24  ;;  %v175_v56 = vand.u32 2147483647, %v735_v59  ;;  %v178_v63 = vadd.f32 1.0, %v1047_v8 }
  0x1c   :  { %762 = vpow2.f32 %v150_v62  ;;  %v182_v29 = vadd.f32 1.0, %v181_v40  ;;  %v1070_v60 = vmul.f32 %v1043_v54, %v164_v39  ;;  %v199_v20 = vmul.f32 -0.5, %v1054_v34 }
  0x1d   :  { %v1060_v47 = vpop.eup %744  ;;  %764 = vpow2.f32 %v152_v15  ;;  %v184_v15 = vand.u32 2147483647, %v1047_v8  ;;  %v1076_v10 = vmul.f32 %v735_v59, %v173_v45  ;;  %v191_v55 = vadd.f32 1.0, %v190_v52 }
  0x1e   :  { %v1064_v58 = vpop.eup %746  ;;  %766 = vpow2.f32 %v154_v30  ;;  %v187_v30 = vadd.f32 1.0, %v1050_v24  ;;  %v196_v54 = vadd.f32 1.0, %v1054_v34  ;;  %v208_v39 = vmul.f32 -0.5, %v1057_v42 }
  0x1f   :  { %v1067_v62 = vpop.eup %748  ;;  %768 = vpow2.f32 %v156_v35  ;;  %v193_v35 = vand.u32 2147483647, %v1050_v24  ;;  %v1087_v46 = vmul.f32 %v1047_v8, %v182_v29  ;;  %v202_v59 = vand.u32 2147483647, %v1054_v34 }
  0x20   :  { %v1074_v28 = vpop.eup %750  ;;  %770 = vpow2.f32 %v158_v43  ;;  %v205_v43 = vadd.f32 1.0, %v1057_v42  ;;  %v214_v52 = vadd.f32 1.0, %v1060_v47  ;;  %v217_v49 = vmul.f32 -0.5, %v1060_v47 }
  0x21   :  { %v1079_v50 = vpop.eup %752  ;;  %772 = vlog2.f32 %v160_v44  ;;  %v200_v44 = vadd.f32 1.0, %v199_v20  ;;  %vm1097_vm0 = vcmp.lt.f32.partialorder %v166_v48, 0.0004427343  ;;  %vm1101_vm1 = vcmp.lt.f32.partialorder %v175_v56, 0.0004427343 }
  0x22   :  { %v1084_v40 = vpop.eup %754  ;;  %774 = vlog2.f32 %v169_v51  ;;  %v1106_v29 = vmul.f32 %v1050_v24, %v191_v55  ;;  %v209_v51 = vadd.f32 1.0, %v208_v39  ;;  %v211_v33 = vand.u32 2147483647, %v1057_v42 }
  0x23   :  { %v1091_v45 = vpop.eup %756  ;;  %776 = vlog2.f32 %v178_v63  ;;  %v223_v63 = vadd.f32 1.0, %v1064_v58  ;;  %v218_v48 = vadd.f32 1.0, %v217_v49  ;;  %v226_v32 = vmul.f32 -0.5, %v1064_v58 }
  0x24   :  { %v1095_v38 = vpop.eup %758  ;;  %778 = vlog2.f32 %v187_v30  ;;  %vm1115_vm2 = vcmp.lt.f32.partialorder %v184_v15, 0.0004427343  ;;  %vm1119_vm3 = vcmp.lt.f32.partialorder %v193_v35, 0.0004427343  ;;  %v220_v24 = vand.u32 2147483647, %v1060_v47 }
  0x25   :  { %v1109_v20 = vpop.eup %760  ;;  %780 = vlog2.f32 %v196_v54  ;;  %v229_v30 = vand.u32 2147483647, %v1064_v58  ;;  %v232_v54 = vadd.f32 1.0, %v1067_v62  ;;  %v1129_v39 = vmul.f32 %v1054_v34, %v200_v44 }
  0x26   :  { %v1113_v27 = vpop.eup %762  ;;  %782 = vlog2.f32 %v205_v43  ;;  %vm1131_vm4 = vcmp.lt.f32.partialorder %v202_v59, 0.0004427343  ;;  %v227_v35 = vadd.f32 1.0, %v226_v32  ;;  %v235_v22 = vmul.f32 -0.5, %v1067_v62 }
  0x27   :  { %v1126_v49 = vpop.eup %764  ;;  %784 = vlog2.f32 %v214_v52  ;;  %v1139_v21 = vmul.f32 %v1057_v42, %v209_v51  ;;  %v238_v19 = vand.u32 2147483647, %v1067_v62  ;;  %v241_v18 = vadd.f32 1.0, %v1074_v28 }
  0x28   :  { %v1136_v43 = vpop.eup %766  ;;  %786 = vlog2.f32 %v223_v63  ;;  %vm1145_vm5 = vcmp.lt.f32.partialorder %v211_v33, 0.0004427343  ;;  %v1150_v32 = vmul.f32 %v1060_v47, %v218_v48  ;;  %v236_v44 = vadd.f32 1.0, %v235_v22 }
  0x29   :  { %v1143_v34 = vpop.eup %768  ;;  %788 = vlog2.f32 %v232_v54  ;;  %v244_v52 = vmul.f32 -0.5, %v1074_v28  ;;  %vm1155_vm6 = vcmp.lt.f32.partialorder %v220_v24, 0.0004427343  ;;  %vm1159_vm7 = vcmp.lt.f32.partialorder %v229_v30, 0.0004427343  ;;  %v362_v30 = vld [vmem:[%s1981_s2 + $0x10] sm:$0xff] }
  0x2a   :  { %v1153_v42 = vpop.eup %770  ;;  %790 = vlog2.f32 %v241_v18  ;;  %v247_v33 = vand.u32 2147483647, %v1074_v28  ;;  %v250_v47 = vadd.f32 1.0, %v1079_v50  ;;  %v1166_v22 = vmul.f32 %v1064_v58, %v227_v35 }
  0x2b   :  { %v773_v48 = vpop.eup %772  ;;  %v245_v54 = vadd.f32 1.0, %v244_v52  ;;  %v253_v17 = vmul.f32 -0.5, %v1079_v50  ;;  %v256_v24 = vand.u32 2147483647, %v1079_v50  ;;  %vm1172_vm8 = vcmp.lt.f32.partialorder %v238_v19, 0.0004427343 }
  0x2c   :  { %v775_v14 = vpop.eup %774  ;;  %v1170_v13 = vmul.f32 0.6931472, %v773_v48  ;;  %792 = vlog2.f32 %v250_v47  ;;  %v259_v18 = vadd.f32 1.0, %v1084_v40  ;;  %v1180_v58 = vmul.f32 %v1067_v62, %v236_v44 }
  0x2d   :  { %v777_v7 = vpop.eup %776  ;;  %v1177_v23 = vmul.f32 0.6931472, %v775_v14  ;;  %vm1182_vm9 = vcmp.lt.f32.partialorder %v247_v33, 0.0004427343  ;;  %v254_v52 = vadd.f32 1.0, %v253_v17  ;;  %v1189_v19 = vmul.f32 %v1074_v28, %v245_v54 }
  0x2e   :  { %v779_v48 = vpop.eup %778  ;;  %v1186_v9 = vmul.f32 0.6931472, %v777_v7  ;;  %794 = vlog2.f32 %v259_v18  ;;  %v262_v47 = vmul.f32 -0.5, %v1084_v40  ;;  %vm1202_vm10 = vcmp.lt.f32.partialorder %v256_v24, 0.0004427343 }
  0x2f   :  { %2034 = vst [vmem:[#allocation16_spill] sm:$0xff] %v1189_v19  ;;  %v781_v61 = vpop.eup %780  ;;  %v1200_v62 = vmul.f32 0.6931472, %v779_v48  ;;  %v265_v28 = vand.u32 2147483647, %v1084_v40  ;;  %v1210_v54 = vmul.f32 %v1079_v50, %v254_v52  ;;  %v268_v14 = vadd.f32 1.0, %v1091_v45 }
  0x30   :  { %v783_v44 = vpop.eup %782  ;;  %v1207_v33 = vmul.f32 0.6931472, %v781_v61  ;;  %v263_v18 = vadd.f32 1.0, %v262_v47  ;;  %v271_v61 = vmul.f32 -0.5, %v1091_v45  ;;  %v2037_v53 = vmov 0 }
  0x31   :  { %v785_v57 = vpop.eup %784  ;;  %v1221_v17 = vmul.f32 0.6931472, %v783_v44  ;;  %vm1230_vm11 = vcmp.lt.f32.partialorder %v265_v28, 0.0004427343  ;;  %796 = vlog2.f32 %v268_v14  ;;  %v274_v36 = vand.u32 2147483647, %v1091_v45 }
  0x32   :  { %v787_v50 = vpop.eup %786  ;;  %v1228_v47 = vmul.f32 0.6931472, %v785_v57  ;;  %v2038_v53 = vsel %vm1230_vm11, 4294967295, %v2037_v53  ;;  %v1237_v44 = vmul.f32 %v1084_v40, %v263_v18  ;;  %v272_v48 = vadd.f32 1.0, %v271_v61 }
  0x33   :  { %2039 = vst [vmem:[#allocation17_spill] sm:$0xff] %v2038_v53  ;;  %v789_v24 = vpop.eup %788  ;;  %v1234_v41 = vmul.f32 0.6931472, %v787_v50  ;;  %v277_v52 = vadd.f32 1.0, %v1095_v38  ;;  %v280_v14 = vmul.f32 -0.5, %v1095_v38  ;;  %v295_v16 = vadd.f32 1.0, %v1113_v27 }
  0x34   :  { %2040 = vst [vmem:[#allocation18_spill] sm:$0xff] %v1237_v44  ;;  %v791_v31 = vpop.eup %790  ;;  %v1244_v28 = vmul.f32 0.6931472, %v789_v24  ;;  %v1259_v50 = vmul.f32 %v1091_v45, %v272_v48  ;;  %vm1261_vm12 = vcmp.lt.f32.partialorder %v274_v36, 0.0004427343  ;;  %v289_v45 = vmul.f32 -0.5, %v1109_v20 }
  0x35   :  { %v1256_v61 = vmul.f32 0.6931472, %v791_v31  ;;  %798 = vlog2.f32 %v277_v52  ;;  %v281_v26 = vadd.f32 1.0, %v280_v14  ;;  %v283_v25 = vand.u32 2147483647, %v1095_v38  ;;  %v2084_v44 = vld [vmem:[#allocation6_spill] sm:$0xff] }
  0x36   :  { %2041 = vst [vmem:[#allocation19_spill] sm:$0xff] %v1244_v28  ;;  %v793_v24 = vpop.eup %792  ;;  %v286_v31 = vadd.f32 1.0, %v1109_v20  ;;  %v292_v14 = vand.u32 2147483647, %v1109_v20  ;;  %v290_v28 = vadd.f32 1.0, %v289_v45  ;;  %v307_v45 = vmul.f32 -0.5, %v1126_v49 }
  0x37   :  { %2042 = vst [vmem:[#allocation20_spill] sm:$0xff] %v1256_v61  ;;  %v1270_v18 = vmul.f32 0.6931472, %v793_v24  ;;  %v1279_v52 = vmul.f32 %v1095_v38, %v281_v26  ;;  %vm1285_vm13 = vcmp.lt.f32.partialorder %v283_v25, 0.0004427343  ;;  %v298_v26 = vmul.f32 -0.5, %v1113_v27 }
  0x38   :  { %v795_v48 = vpop.eup %794  ;;  %800 = vlog2.f32 %v286_v31  ;;  %v301_v38 = vand.u32 2147483647, %v1113_v27  ;;  %vm1299_vm14 = vcmp.lt.f32.partialorder %v292_v14, 0.0004427343  ;;  %v304_v31 = vadd.f32 1.0, %v1126_v49 }
  0x39   :  { %v1283_v40 = vmul.f32 0.6931472, %v795_v48  ;;  %v258_v36 = vsel %vm1202_vm10, %v1210_v54, %v1270_v18  ;;  %802 = vlog2.f32 %v295_v16  ;;  %v1306_v16 = vmul.f32 %v1109_v20, %v290_v28 }
  0x3a   :  { %v299_v54 = vadd.f32 1.0, %v298_v26  ;;  %v310_v18 = vand.u32 2147483647, %v1126_v49  ;;  %v313_v61 = vadd.f32 1.0, %v1136_v43  ;;  %804 = vlog2.f32 %v304_v31 }
  0x3b   :  { %2045 = vst [vmem:[#allocation21_spill] sm:$0xff] %v1283_v40  ;;  %v797_v7 = vpop.eup %796  ;;  %v308_v25 = vadd.f32 1.0, %v307_v45  ;;  %v316_v14 = vmul.f32 -0.5, %v1136_v43  ;;  %vm1312_vm15 = vcmp.lt.f32.partialorder %v301_v38, 0.0004427343  ;;  %v322_v45 = vadd.f32 1.0, %v1143_v34 }
  0x3c   :  { %v270_v19 = vmul.f32 0.6931472, %v797_v7  ;;  %v300_v40 = vmul.f32 %v1113_v27, %v299_v54  ;;  %806 = vlog2.f32 %v313_v61  ;;  %v319_v20 = vand.u32 2147483647, %v1136_v43 }
  0x3d   :  { %vm1320_vm10 = vcmp.lt.f32.partialorder %v310_v18, 0.0004427343  ;;  %v317_v31 = vadd.f32 1.0, %v316_v14  ;;  %v1326_v27 = vmul.f32 %v1126_v49, %v308_v25  ;;  %v325_v38 = vmul.f32 -0.5, %v1143_v34 }
  0x3e   :  { %v276_v28 = vsel %vm1261_vm12, %v1259_v50, %v270_v19  ;;  %v328_v61 = vand.u32 2147483647, %v1143_v34  ;;  %v331_v54 = vadd.f32 1.0, %v1153_v42  ;;  %vm1331_vm11 = vcmp.lt.f32.partialorder %v319_v20, 0.0004427343  ;;  %v1587_v20 = vld [vmem:[%s1979_s0 + $0x18] sm:$0xff] }
  0x3f   :  { %v799_v7 = vpop.eup %798  ;;  %808 = vlog2.f32 %v322_v45  ;;  %v334_v57 = vmul.f32 -0.5, %v1153_v42  ;;  %v1337_v50 = vmul.f32 %v1136_v43, %v317_v31  ;;  %v326_v18 = vadd.f32 1.0, %v325_v38 }
  0x40   :  { %v279_v53 = vmul.f32 0.6931472, %v799_v7  ;;  %810 = vlog2.f32 %v331_v54  ;;  %v337_v49 = vand.u32 2147483647, %v1153_v42  ;;  %vm1343_vm12 = vcmp.lt.f32.partialorder %v328_v61, 0.0004427343 }
  0x41   :  { %v335_v7 = vadd.f32 1.0, %v334_v57  ;;  %v2058_v45 = vmax.f32 %v910_v0, 0.0  ;;  %v2059_v43 = vsel %vm1097_vm0, %v1070_v60, %v1170_v13  ;;  %v2060_v38 = vmax.f32 %v915_v1, 0.0 }
  0x42   :  { %v801_v25 = vpop.eup %800  ;;  %v285_v14 = vsel %vm1285_vm13, %v1279_v52, %v279_v53  ;;  %v2061_v53 = vsel %vm1101_vm1, %v1076_v10, %v1177_v23  ;;  %v1366_v0 = vmul.f32 %v1143_v34, %v326_v18  ;;  %vm1368_vm13 = vcmp.lt.f32.partialorder %v337_v49, 0.0004427343  ;;  %v2086_v18 = vld [vmem:[#allocation7_spill] sm:$0xff] }
  0x43   :  { %v1354_v31 = vadd.f32 %v2059_v43, %v2058_v45  ;;  %v1363_v52 = vadd.f32 %v2061_v53, %v2060_v38  ;;  %v803_v24 = vpop.eup %802  ;;  %v288_v61 = vmul.f32 0.6931472, %v801_v25  ;;  %v2064_v13 = vmax.f32 %v920_v2, 0.0  ;;  %v2088_v25 = vld [vmem:[#allocation17_spill] sm:$0xff]  ;;  %v2093_v38 = vld [vmem:[#allocation8_spill] sm:$0xff] }
  0x44   :  { %v2065_v1 = vsel %vm1115_vm2, %v1087_v46, %v1186_v9  ;;  %v297_v23 = vmul.f32 0.6931472, %v803_v24  ;;  %v1382_v10 = vmul.f32 %v1153_v42, %v335_v7  ;;  %v2066_v8 = vmax.f32 %v925_v3, 0.0  ;;  %v2091_v7 = vld [vmem:[#allocation21_spill] sm:$0xff] }
  0x45   :  { %v1379_v60 = vadd.f32 %v2065_v1, %v2064_v13  ;;  %v2067_v34 = vsel %vm1119_vm3, %v1106_v29, %v1200_v62  ;;  %v2068_v2 = vmax.f32 %v930_v4, 0.0  ;;  %v2069_v9 = vsel %vm1131_vm4, %v1129_v39, %v1207_v33  ;;  %v2081_v62 = vld [vmem:[#allocation16_spill] sm:$0xff] }
  0x46   :  { %v1391_v54 = vadd.f32 %v2067_v34, %v2066_v8  ;;  %v294_v3 = vsel %vm1299_vm14, %v1306_v16, %v288_v61  ;;  %v2070_v56 = vmax.f32 %v935_v5, 0.0  ;;  %v2071_v29 = vsel %vm1145_vm5, %v1139_v21, %v1221_v17  ;;  %v805_v21 = vpop.eup %804  ;;  %v2082_v33 = vld [vmem:[#allocation20_spill] sm:$0xff]  ;;  %v2095_v61 = vld [vmem:[#allocation9_spill] sm:$0xff] }
  0x47   :  { %v1400_v46 = vadd.f32 %v2069_v9, %v2068_v2  ;;  %v2072_v4 = vmax.f32 %v940_v6, 0.0  ;;  %v2073_v39 = vsel %vm1155_vm6, %v1150_v32, %v1228_v47  ;;  %v2074_v42 = vmax.f32 %v949_v11, 0.0  ;;  %v360_v6 = vld [vmem:[%s1981_s2] sm:$0xff]  ;;  %v2077_v11 = vld [vmem:[#allocation19_spill] sm:$0xff]  ;;  %v807_v35 = vpop.eup %806  ;;  %v365_v8 = vld [vmem:[%s1981_s2 + $0x28] sm:$0xff] }
  0x48   :  { %v1412_v55 = vadd.f32 %v2071_v29, %v2070_v56  ;;  %v2075_v5 = vsel %vm1159_vm7, %v1166_v22, %v1234_v41  ;;  %v303_v51 = vsel %vm1312_vm15, %v300_v40, %v297_v23  ;;  %v2076_v32 = vmax.f32 %v954_v12, 0.0  ;;  %v2079_v41 = vld [vmem:[#allocation5_spill] sm:$0xff]  ;;  %v2097_v2 = vld [vmem:[#allocation10_spill] sm:$0xff]  ;;  %v2099_v29 = vld [vmem:[#allocation11_spill] sm:$0xff] }
  0x49   :  { %v1421_v15 = vadd.f32 %v2073_v39, %v2072_v4  ;;  %v1430_v59 = vadd.f32 %v2075_v5, %v2074_v42  ;;  %v2078_v63 = vsel %vm1172_vm8, %v1180_v58, %v2077_v11  ;;  %v2080_v22 = vmax.f32 %v2079_v41, 0.0  ;;  %v361_v12 = vld [vmem:[%s1981_s2 + $0x8] sm:$0xff]  ;;  %v363_v58 = vld [vmem:[%s1981_s2 + $0x18] sm:$0xff]  ;;  %v364_v23 = vld [vmem:[%s1981_s2 + $0x20] sm:$0xff]  ;;  %v809_v26 = vpop.eup %808 }
  0x4a   :  { %v1444_v17 = vadd.f32 %v2078_v63, %v2076_v32  ;;  %v2083_v47 = vsel %vm1182_vm9, %v2081_v62, %v2082_v33  ;;  %v2085_v40 = vmax.f32 %v2084_v44, 0.0  ;;  %v306_v57 = vmul.f32 0.6931472, %v805_v21  ;;  %v367_v39 = vld [vmem:[%s1981_s2 + $0x38] sm:$0xff]  ;;  %v369_v21 = vld [vmem:[%s1981_s2 + $0x48] sm:$0xff]  ;;  %v372_v33 = vld [vmem:[%s1981_s2 + $0x60] sm:$0xff] }
  0x4b   :  { %v1453_v48 = vadd.f32 %v2083_v47, %v2080_v22  ;;  %v2087_v49 = vmax.f32 %v2086_v18, 0.0  ;;  %vm2089_vm0 = vnez %v2088_v25  ;;  %v2094_v53 = vmax.f32 %v2093_v38, 0.0  ;;  %v2101_v63 = vld [vmem:[#allocation12_spill] sm:$0xff]  ;;  %v373_v47 = vld [vmem:[%s1981_s2 + $0x68] sm:$0xff] }
  0x4c   :  { %v1457_v16 = vadd.f32 %v258_v36, %v2085_v40  ;;  %v2090_v36 = vld [vmem:[#allocation18_spill] sm:$0xff]  ;;  %v2096_v13 = vmax.f32 %v2095_v61, 0.0  ;;  %v315_v34 = vmul.f32 0.6931472, %v807_v35  ;;  %v2098_v9 = vmax.f32 %v2097_v2, 0.0  ;;  %v371_v62 = vld [vmem:[%s1981_s2 + $0x58] sm:$0xff] }
  0x4d   :  { %v2092_v45 = vsel %vm2089_vm0, %v2090_v36, %v2091_v7  ;;  %v1479_v24 = vadd.f32 %v276_v28, %v2094_v53  ;;  %v2100_v28 = vmax.f32 %v2099_v29, 0.0  ;;  %v380_v42 = vmul.f32 %v360_v6, %v1354_v31  ;;  %v374_v35 = vld [vmem:[%s1981_s2 + $0x70] sm:$0xff]  ;;  %v376_v36 = vld [vmem:[%s1981_s2 + $0x80] sm:$0xff]  ;;  %v377_v7 = vld [vmem:[%s1981_s2 + $0x88] sm:$0xff] }
  0x4e   :  { %v1475_v43 = vadd.f32 %v2092_v45, %v2087_v49  ;;  %v1483_v1 = vadd.f32 %v285_v14, %v2096_v13  ;;  %v1493_v56 = vadd.f32 %v294_v3, %v2098_v9  ;;  %v366_v14 = vld [vmem:[%s1981_s2 + $0x30] sm:$0xff]  ;;  %v312_v5 = vsel %vm1320_vm10, %v1326_v27, %v306_v57  ;;  %v368_v3 = vld [vmem:[%s1981_s2 + $0x40] sm:$0xff]  ;;  %v375_v57 = vld [vmem:[%s1981_s2 + $0x78] sm:$0xff] }
  0x4f   :  { %v1497_v4 = vadd.f32 %v303_v51, %v2100_v28  ;;  %v370_v51 = vld [vmem:[%s1981_s2 + $0x50] sm:$0xff]  ;;  %v381_v32 = vmul.f32 %v361_v12, %v1363_v52  ;;  %v382_v6 = vmul.f32 %v362_v30, %v1379_v60  ;;  %v383_v11 = vmul.f32 %v363_v58, %v1391_v54  ;;  %v2103_v12 = vld [vmem:[#allocation13_spill] sm:$0xff] }
  0x50   :  { %v321_v27 = vsel %vm1331_vm11, %v1337_v50, %v315_v34  ;;  %v2102_v41 = vmax.f32 %v2101_v63, 0.0  ;;  %v384_v44 = vmul.f32 %v364_v23, %v1400_v46  ;;  %v385_v19 = vmul.f32 %v365_v8, %v1412_v55  ;;  %v811_v50 = vpop.eup %810  ;;  %v1563_v61 = vld [vmem:[%s1979_s0] sm:$0xff]  ;;  %v1568_v13 = vld [vmem:[%s1979_s0 + $0x8] sm:$0xff]  ;;  %v378_v8 = vld [vmem:[%s1981_s2 + $0x90] sm:$0xff] }
  0x51   :  { %v324_v40 = vmul.f32 0.6931472, %v809_v26  ;;  %v2104_v30 = vmax.f32 %v2103_v12, 0.0  ;;  %v386_v18 = vmul.f32 %v366_v14, %v1421_v15  ;;  %v387_v49 = vmul.f32 %v367_v39, %v1430_v59  ;;  %v1582_v29 = vld [vmem:[%s1979_s0 + $0x10] sm:$0xff] }
  0x52   :  { %v1526_v22 = vadd.f32 %v312_v5, %v2102_v41  ;;  %v333_v25 = vmul.f32 0.6931472, %v811_v50  ;;  %v388_v45 = vmul.f32 %v368_v3, %v1444_v17  ;;  %v389_v38 = vmul.f32 %v369_v21, %v1453_v48  ;;  %v2105_v28 = vld [vmem:[#allocation14_spill] sm:$0xff]  ;;  %v379_v5 = vld [vmem:[%s1981_s2 + $0x98] sm:$0xff]  ;;  %v1631_v50 = vld [vmem:[%s1979_s0 + $0x40] sm:$0xff] }
  0x53   :  { %v1541_v58 = vadd.f32 %v321_v27, %v2104_v30  ;;  %v390_v53 = vmul.f32 %v370_v51, %v1457_v16  ;;  %v330_v23 = vsel %vm1343_vm12, %v1366_v0, %v324_v40  ;;  %v391_v34 = vmul.f32 %v371_v62, %v1475_v43  ;;  %v1604_v51 = vld [vmem:[%s1979_s0 + $0x20] sm:$0xff]  ;;  %v2107_v26 = vld [vmem:[#allocation15_spill] sm:$0xff]  ;;  %v1636_v40 = vld [vmem:[%s1979_s0 + $0x48] sm:$0xff] }
  0x54   :  { %v392_v2 = vmul.f32 %v372_v33, %v1479_v24  ;;  %v393_v9 = vmul.f32 %v373_v47, %v1483_v1  ;;  %v339_v0 = vsel %vm1368_vm13, %v1382_v10, %v333_v25  ;;  %v2106_v14 = vmax.f32 %v2105_v28, 0.0  ;;  %v1614_v10 = vld [vmem:[%s1979_s0 + $0x30] sm:$0xff]  ;;  %v1626_v47 = vld [vmem:[%s1979_s0 + $0x38] sm:$0xff] }
  0x55   :  { %v394_v3 = vmul.f32 %v374_v35, %v1493_v56  ;;  %v395_v21 = vmul.f32 %v375_v57, %v1497_v4  ;;  %v2108_v27 = vmax.f32 %v2107_v26, 0.0  ;;  %v396_v41 = vmul.f32 %v376_v36, %v1526_v22  ;;  %v1645_v57 = vld [vmem:[%s1979_s0 + $0x50] sm:$0xff]  ;;  %v1650_v25 = vld [vmem:[%s1979_s0 + $0x58] sm:$0xff]  ;;  %v1655_v36 = vld [vmem:[%s1979_s0 + $0x60] sm:$0xff] }
  0x56   :  { %v1594_v39 = vadd.f32 %v330_v23, %v2106_v14  ;;  %v397_v62 = vmul.f32 %v377_v7, %v1541_v58  ;;  %v400_v33 = vadd.f32 %v380_v42, %v1563_v61  ;;  %v401_v30 = vadd.f32 %v381_v32, %v1568_v13  ;;  %v33_v23 = vld [vmem:[%s1979_s0 + $0x68] sm:$0xff] }
  0x57   :  { %v1618_v63 = vadd.f32 %v339_v0, %v2108_v27  ;;  %v402_v42 = vadd.f32 %v382_v6, %v1582_v29  ;;  %v403_v35 = vadd.f32 %v383_v11, %v1587_v20  ;;  %v404_v6 = vadd.f32 %v384_v44, %v1604_v51  ;;  %v1675_v44 = vld [vmem:[%s1979_s0 + $0x78] sm:$0xff] }
  0x58   :  { %v398_v12 = vmul.f32 %v378_v8, %v1594_v39  ;;  %v405_v11 = vadd.f32 %v385_v19, %v1609_v37  ;;  %v406_v7 = vadd.f32 %v386_v18, %v1614_v10  ;;  %420 = vst [vmem:[%s1983_s4] sm:$0xff] %v400_v33  ;;  %v1670_v8 = vld [vmem:[%s1979_s0 + $0x70] sm:$0xff]  ;;  %v407_v19 = vadd.f32 %v387_v49, %v1626_v47  ;;  %v36_v49 = vld [vmem:[%s1979_s0 + $0x80] sm:$0xff] }
  0x59   :  { %v399_v32 = vmul.f32 %v379_v5, %v1618_v63  ;;  %v408_v18 = vadd.f32 %v388_v45, %v1631_v50  ;;  %v409_v0 = vadd.f32 %v389_v38, %v1636_v40  ;;  %v410_v28 = vadd.f32 %v390_v53, %v1645_v57  ;;  %421 = vst [vmem:[%s1983_s4 + $0x8] sm:$0xff] %v401_v30  ;;  %v37_v45 = vld [vmem:[%s1979_s0 + $0x88] sm:$0xff]  ;;  %v38_v38 = vld [vmem:[%s1979_s0 + $0x90] sm:$0xff] }
  0x5a   :  { %422 = vst [vmem:[%s1983_s4 + $0x10] sm:$0xff] %v402_v42  ;;  %423 = vst [vmem:[%s1983_s4 + $0x18] sm:$0xff] %v403_v35  ;;  %v411_v53 = vadd.f32 %v391_v34, %v1650_v25  ;;  %v412_v14 = vadd.f32 %v392_v2, %v1655_v36  ;;  %v413_v5 = vadd.f32 %v393_v9, %v33_v23  ;;  %v39_v34 = vld [vmem:[%s1979_s0 + $0x98] sm:$0xff]  ;;  %812 = vlog2.f32 %v1354_v31  ;;  %s876_s0 = smov [#allocation2]  }
  0x5b   :  { %v414_v26 = vadd.f32 %v394_v3, %v1670_v8  ;;  %424 = vst [vmem:[%s1983_s4 + $0x20] sm:$0xff] %v404_v6  ;;  %425 = vst [vmem:[%s1983_s4 + $0x28] sm:$0xff] %v405_v11  ;;  %v415_v2 = vadd.f32 %v395_v21, %v1675_v44  ;;  %v416_v9 = vadd.f32 %v396_v41, %v36_v49  ;;  %814 = vlog2.f32 %v1363_v52  ;;  %s699_s29 = sshll.u32 %s876_s0, 4  ;;  %s700_s29 = int_to_ptr.vmem [resolvable:$true] %s699_s29 }
  0x5c   :  { %426 = vst [vmem:[%s1983_s4 + $0x30] sm:$0xff] %v406_v7  ;;  %v417_v3 = vadd.f32 %v397_v62, %v37_v45  ;;  %v418_v27 = vadd.f32 %v398_v12, %v38_v38  ;;  %427 = vst [vmem:[%s1983_s4 + $0x38] sm:$0xff] %v407_v19  ;;  %v419_v21 = vadd.f32 %v399_v32, %v39_v34  ;;  %816 = vlog2.f32 %v1379_v60  ;;  %s856_s6 = scalar_lea.vmem %s700_s29, 32  ;;  %p857_p1 = scmp.lt.s32.totalorder %s700_s29, %s700_s29 }
  0x5d   :  { %428 = vst [vmem:[%s1983_s4 + $0x40] sm:$0xff] %v408_v18  ;;  %429 = vst [vmem:[%s1983_s4 + $0x48] sm:$0xff] %v409_v0  ;;  %v516_v41 = vmul.f32 %v1526_v22, %v1526_v22  ;;  %v536_v62 = vmul.f32 %v36_v49, %v36_v49  ;;  %818 = vlog2.f32 %v1391_v54  ;;  %v520_v12 = vmul.f32 %v1563_v61, %v1563_v61 }
  0x5e   :  { %430 = vst [vmem:[%s1983_s4 + $0x50] sm:$0xff] %v410_v28  ;;  %431 = vst [vmem:[%s1983_s4 + $0x58] sm:$0xff] %v411_v53  ;;  %v521_v30 = vmul.f32 %v1568_v13, %v1568_v13  ;;  %v522_v42 = vmul.f32 %v1582_v29, %v1582_v29  ;;  %v523_v35 = vmul.f32 %v1587_v20, %v1587_v20  ;;  %820 = vlog2.f32 %v1400_v46 }
  0x5f   :  { %432 = vst [vmem:[%s1983_s4 + $0x60] sm:$0xff] %v412_v14  ;;  %433 = vst [vmem:[%s1983_s4 + $0x68] sm:$0xff] %v413_v5  ;;  %v1758_v33 = vadd.f32 %v536_v62, %v516_v41  ;;  %v524_v32 = vmul.f32 %v1604_v51, %v1604_v51  ;;  %v1775_v6 = vmul.f32 %v1609_v37, %v1609_v37  ;;  %822 = vlog2.f32 %v1412_v55 }
  0x60   :  { %434 = vst [vmem:[%s1983_s4 + $0x70] sm:$0xff] %v414_v26  ;;  %435 = vst [vmem:[%s1983_s4 + $0x78] sm:$0xff] %v415_v2  ;;  %v1779_v61 = vmul.f32 %v1614_v10, %v1614_v10  ;;  %v1784_v13 = vmul.f32 %v1626_v47, %v1626_v47  ;;  %v1788_v29 = vmul.f32 %v1631_v50, %v1631_v50  ;;  %824 = vlog2.f32 %v1421_v15 }
  0x61   :  { %436 = vst [vmem:[%s1983_s4 + $0x80] sm:$0xff] %v416_v9  ;;  %437 = vst [vmem:[%s1983_s4 + $0x88] sm:$0xff] %v417_v3  ;;  %v1792_v20 = vmul.f32 %v1636_v40, %v1636_v40  ;;  %v1796_v51 = vmul.f32 %v1645_v57, %v1645_v57  ;;  %v1800_v37 = vmul.f32 %v1650_v25, %v1650_v25  ;;  %826 = vlog2.f32 %v1430_v59 }
  0x62   :  { %438 = vst [vmem:[%s1983_s4 + $0x90] sm:$0xff] %v418_v27  ;;  %439 = vst [vmem:[%s1983_s4 + $0x98] sm:$0xff] %v419_v21  ;;  %v1804_v10 = vmul.f32 %v1655_v36, %v1655_v36  ;;  %v1806_v47 = vmul.f32 %v33_v23, %v33_v23  ;;  %v500_v11 = vmul.f32 %v1354_v31, %v1354_v31  ;;  %828 = vlog2.f32 %v1444_v17 }
  0x63   :  { %v501_v40 = vmul.f32 %v1363_v52, %v1363_v52  ;;  %v1814_v57 = vmul.f32 %v1670_v8, %v1670_v8  ;;  %v1818_v25 = vmul.f32 %v1675_v44, %v1675_v44  ;;  %v1821_v36 = vmul.f32 %v37_v45, %v37_v45 }
  0x64   :  { %v813_v50 = vpop.eup %812  ;;  %v1823_v23 = vmul.f32 %v38_v38, %v38_v38  ;;  %v1825_v19 = vmul.f32 %v39_v34, %v39_v34  ;;  %v502_v31 = vmul.f32 %v1379_v60, %v1379_v60  ;;  %v503_v52 = vmul.f32 %v1391_v54, %v1391_v54 }
  0x65   :  { %v815_v7 = vpop.eup %814  ;;  %v504_v8 = vmul.f32 %v1400_v46, %v1400_v46  ;;  %v441_v18 = vmul.f32 0.6931472, %v813_v50  ;;  %v505_v0 = vmul.f32 %v1412_v55, %v1412_v55  ;;  %v506_v28 = vmul.f32 %v1421_v15, %v1421_v15 }
  0x66   :  { %v817_v44 = vpop.eup %816  ;;  %v507_v49 = vmul.f32 %v1430_v59, %v1430_v59  ;;  %v443_v45 = vmul.f32 0.6931472, %v815_v7  ;;  %v540_v60 = vadd.f32 %v520_v12, %v500_v11  ;;  %v541_v38 = vadd.f32 %v521_v30, %v501_v40 }
  0x67   :  { %v819_v54 = vpop.eup %818  ;;  %v508_v46 = vmul.f32 %v1444_v17, %v1444_v17  ;;  %v509_v53 = vmul.f32 %v1453_v48, %v1453_v48  ;;  %v510_v55 = vmul.f32 %v1457_v16, %v1457_v16  ;;  %v511_v15 = vmul.f32 %v1475_v43, %v1475_v43 }
  0x68   :  { %v445_v14 = vmul.f32 0.6931472, %v817_v44  ;;  %830 = vlog2.f32 %v1453_v48  ;;  %v1852_v59 = vmul.f32 %v1479_v24, %v1479_v24  ;;  %v542_v5 = vadd.f32 %v522_v42, %v502_v31  ;;  %v821_v26 = vpop.eup %820 }
  0x69   :  { %832 = vlog2.f32 %v1457_v16  ;;  %v480_v17 = vsub.f32 0.0, %v441_v18  ;;  %v1857_v34 = vmul.f32 %v1483_v1, %v1483_v1  ;;  %v543_v2 = vadd.f32 %v523_v35, %v503_v52  ;;  %v823_v9 = vpop.eup %822 }
  0x6a   :  { %v447_v3 = vmul.f32 0.6931472, %v819_v54  ;;  %v481_v27 = vsub.f32 0.0, %v443_v45  ;;  %v560_v21 = vmul.f32 0.5, %v540_v60  ;;  %v561_v41 = vmul.f32 0.5, %v541_v38  ;;  %v825_v50 = vpop.eup %824 }
  0x6b   :  { %v1861_v48 = vmul.f32 %v1493_v56, %v1493_v56  ;;  %v1865_v62 = vmul.f32 %v1497_v4, %v1497_v4  ;;  %v1869_v16 = vmul.f32 %v1541_v58, %v1541_v58  ;;  %v544_v12 = vadd.f32 %v524_v32, %v504_v8  ;;  %v827_v31 = vpop.eup %826 }
  0x6c   :  { %v449_v30 = vmul.f32 0.6931472, %v821_v26  ;;  %834 = vlog2.f32 %v1475_v43  ;;  %v482_v42 = vsub.f32 0.0, %v445_v14  ;;  %v562_v35 = vmul.f32 0.5, %v542_v5 }
  0x6d   :  { %v451_v11 = vmul.f32 0.6931472, %v823_v9  ;;  %836 = vlog2.f32 %v1479_v24  ;;  %v1875_v40 = vmul.f32 %v1594_v39, %v1594_v39  ;;  %v545_v7 = vadd.f32 %v1775_v6, %v505_v0  ;;  %v829_v24 = vpop.eup %828 }
  0x6e   :  { %v483_v52 = vsub.f32 0.0, %v447_v3  ;;  %v563_v44 = vmul.f32 0.5, %v543_v2  ;;  %v580_v18 = vadd.f32 %v560_v21, %v480_v17  ;;  %v581_v32 = vadd.f32 %v561_v41, %v481_v27 }
  0x6f   :  { %838 = vlog2.f32 %v1483_v1  ;;  %v546_v43 = vadd.f32 %v1779_v61, %v506_v28  ;;  %v547_v8 = vadd.f32 %v1784_v13, %v507_v49  ;;  %v548_v45 = vadd.f32 %v1788_v29, %v508_v46 }
  0x70   :  { %v453_v60 = vmul.f32 0.6931472, %v825_v50  ;;  %v484_v38 = vsub.f32 0.0, %v449_v30  ;;  %v564_v54 = vmul.f32 0.5, %v544_v12  ;;  %v582_v14 = vadd.f32 %v562_v35, %v482_v42 }
  0x71   :  { %v455_v5 = vmul.f32 0.6931472, %v827_v31  ;;  %840 = vlog2.f32 %v1493_v56  ;;  %v485_v6 = vsub.f32 0.0, %v451_v11  ;;  %v549_v0 = vadd.f32 %v1792_v20, %v509_v53  ;;  %v620_v56 = vld [vmem:[%s1982_s3] sm:$0xff]  ;;  %v621_v20 = vld [vmem:[%s1982_s3 + $0x8] sm:$0xff] }
  0x72   :  { %v831_v26 = vpop.eup %830  ;;  %v565_v17 = vmul.f32 0.5, %v545_v7  ;;  %v583_v1 = vadd.f32 %v563_v44, %v483_v52  ;;  %v709_v2 = vadd.f32 -0.5, %v580_v18  ;;  %v710_v61 = vadd.f32 -0.5, %v581_v32 }
  0x73   :  { %v833_v28 = vpop.eup %832  ;;  %v457_v13 = vmul.f32 0.6931472, %v829_v24  ;;  %842 = vlog2.f32 %v1497_v4  ;;  %v550_v29 = vadd.f32 %v1796_v51, %v510_v55  ;;  %v551_v49 = vadd.f32 %v1800_v37, %v511_v15  ;;  %v622_v51 = vld [vmem:[%s1982_s3 + $0x10] sm:$0xff] }
  0x74   :  { %v486_v46 = vsub.f32 0.0, %v453_v60  ;;  %v566_v53 = vmul.f32 0.5, %v546_v43  ;;  %v584_v9 = vadd.f32 %v564_v54, %v484_v38  ;;  %v711_v3 = vadd.f32 -0.5, %v582_v14 }
  0x75   :  { %v459_v27 = vmul.f32 0.6931472, %v831_v26  ;;  %844 = vlog2.f32 %v1526_v22  ;;  %v487_v4 = vsub.f32 0.0, %v455_v5  ;;  %v567_v21 = vmul.f32 0.5, %v547_v8  ;;  %v623_v22 = vld [vmem:[%s1982_s3 + $0x18] sm:$0xff] }
  0x76   :  { %v835_v37 = vpop.eup %834  ;;  %v585_v55 = vadd.f32 %v565_v17, %v485_v6  ;;  %v712_v15 = vadd.f32 -0.5, %v583_v1  ;;  %v640_v41 = vmul.f32 %v709_v2, %v620_v56  ;;  %v641_v12 = vmul.f32 %v710_v61, %v621_v20 }
  0x77   :  { %v837_v30 = vpop.eup %836  ;;  %v461_v42 = vmul.f32 0.6931472, %v833_v28  ;;  %846 = vlog2.f32 %v1541_v58  ;;  %v488_v35 = vsub.f32 0.0, %v457_v13  ;;  %v552_v50 = vadd.f32 %v1804_v10, %v1852_v59  ;;  %v624_v58 = vld [vmem:[%s1982_s3 + $0x20] sm:$0xff]  ;;  %v626_v28 = vld [vmem:[%s1982_s3 + $0x30] sm:$0xff] }
  0x78   :  { %v568_v11 = vmul.f32 0.5, %v548_v45  ;;  %v586_v7 = vadd.f32 %v566_v53, %v486_v46  ;;  %v713_v31 = vadd.f32 -0.5, %v584_v9  ;;  %v642_v52 = vmul.f32 %v711_v3, %v622_v51 }
  0x79   :  { %v839_v44 = vpop.eup %838  ;;  %v463_v18 = vmul.f32 0.6931472, %v835_v37  ;;  %848 = vlog2.f32 %v1594_v39  ;;  %v489_v32 = vsub.f32 0.0, %v459_v27  ;;  %v569_v43 = vmul.f32 0.5, %v549_v0  ;;  %v625_v39 = vld [vmem:[%s1982_s3 + $0x28] sm:$0xff] }
  0x7a   :  { %v587_v8 = vadd.f32 %v567_v21, %v487_v4  ;;  %v714_v10 = vadd.f32 -0.5, %v585_v55  ;;  %v643_v59 = vmul.f32 %v712_v15, %v623_v22  ;;  %v660_v24 = vadd.f32 %v641_v12, %v640_v41 }
  0x7b   :  { %v841_v60 = vpop.eup %840  ;;  %v465_v38 = vmul.f32 0.6931472, %v837_v30  ;;  %850 = vlog2.f32 %v1618_v63  ;;  %v490_v45 = vsub.f32 0.0, %v461_v42  ;;  %v570_v54 = vmul.f32 0.5, %v550_v29 }
  0x7c   :  { %v588_v14 = vadd.f32 %v568_v11, %v488_v35  ;;  %v715_v5 = vadd.f32 -0.5, %v586_v7  ;;  %v644_v6 = vmul.f32 %v713_v31, %v624_v58  ;;  %v661_v0 = vadd.f32 %v660_v24, %v642_v52 }
  0x7d   :  { %v843_v26 = vpop.eup %842  ;;  %v467_v17 = vmul.f32 0.6931472, %v839_v44  ;;  %v491_v1 = vsub.f32 0.0, %v463_v18  ;;  %v553_v2 = vadd.f32 %v1806_v47, %v1857_v34  ;;  %v571_v61 = vmul.f32 0.5, %v551_v49  ;;  %v627_v47 = vld [vmem:[%s1982_s3 + $0x38] sm:$0xff] }
  0x7e   :  { %v589_v13 = vadd.f32 %v569_v43, %v489_v32  ;;  %v716_v29 = vadd.f32 -0.5, %v587_v8  ;;  %v645_v56 = vmul.f32 %v714_v10, %v625_v39  ;;  %v662_v20 = vadd.f32 %v661_v0, %v643_v59 }
  0x7f   :  { %v845_v46 = vpop.eup %844  ;;  %v469_v53 = vmul.f32 0.6931472, %v841_v60  ;;  %v492_v9 = vsub.f32 0.0, %v465_v38  ;;  %v554_v3 = vadd.f32 %v1814_v57, %v1861_v48  ;;  %v572_v27 = vmul.f32 0.5, %v552_v50  ;;  %v628_v57 = vld [vmem:[%s1982_s3 + $0x40] sm:$0xff] }
  0x80   :  { %v590_v34 = vadd.f32 %v570_v54, %v490_v45  ;;  %v717_v49 = vadd.f32 -0.5, %v588_v14  ;;  %v646_v4 = vmul.f32 %v715_v5, %v626_v28  ;;  %v663_v21 = vadd.f32 %v662_v20, %v644_v6 }
  0x81   :  { %v847_v51 = vpop.eup %846  ;;  %v471_v37 = vmul.f32 0.6931472, %v843_v26  ;;  %v493_v55 = vsub.f32 0.0, %v467_v17  ;;  %v555_v15 = vadd.f32 %v1818_v25, %v1865_v62  ;;  %v573_v41 = vmul.f32 0.5, %v553_v2  ;;  %v629_v25 = vld [vmem:[%s1982_s3 + $0x48] sm:$0xff]  ;;  %v632_v2 = vld [vmem:[%s1982_s3 + $0x60] sm:$0xff] }
  0x82   :  { %v591_v48 = vadd.f32 %v571_v61, %v491_v1  ;;  %v718_v12 = vadd.f32 -0.5, %v589_v13  ;;  %v647_v30 = vmul.f32 %v716_v29, %v627_v47  ;;  %v664_v42 = vadd.f32 %v663_v21, %v645_v56  ;;  %v633_v29 = vld [vmem:[%s1982_s3 + $0x68] sm:$0xff] }
  0x83   :  { %v849_v35 = vpop.eup %848  ;;  %v473_v50 = vmul.f32 0.6931472, %v845_v46  ;;  %v494_v22 = vsub.f32 0.0, %v469_v53  ;;  %v519_v11 = vmul.f32 %v1618_v63, %v1618_v63  ;;  %v574_v7 = vmul.f32 0.5, %v554_v3  ;;  %v630_v63 = vld [vmem:[%s1982_s3 + $0x50] sm:$0xff] }
  0x84   :  { %v592_v62 = vadd.f32 %v572_v27, %v492_v9  ;;  %v719_v31 = vadd.f32 -0.5, %v590_v34  ;;  %v648_v52 = vmul.f32 %v717_v49, %v628_v57  ;;  %v665_v44 = vadd.f32 %v664_v42, %v646_v4  ;;  %v634_v3 = vld [vmem:[%s1982_s3 + $0x70] sm:$0xff]  ;;  %v635_v4 = vld [vmem:[%s1982_s3 + $0x78] sm:$0xff] }
  0x85   :  { %v851_v18 = vpop.eup %850  ;;  %v475_v32 = vmul.f32 0.6931472, %v847_v51  ;;  %v495_v43 = vsub.f32 0.0, %v471_v37  ;;  %v557_v58 = vadd.f32 %v1821_v36, %v1869_v16  ;;  %v575_v8 = vmul.f32 0.5, %v555_v15  ;;  %v631_v36 = vld [vmem:[%s1982_s3 + $0x58] sm:$0xff]  ;;  %v636_v15 = vld [vmem:[%s1982_s3 + $0x80] sm:$0xff] }
  0x86   :  { %v593_v10 = vadd.f32 %v573_v41, %v493_v55  ;;  %v720_v59 = vadd.f32 -0.5, %v591_v48  ;;  %v649_v24 = vmul.f32 %v718_v12, %v629_v25  ;;  %v666_v60 = vadd.f32 %v665_v44, %v647_v30  ;;  %v637_v30 = vld [vmem:[%s1982_s3 + $0x88] sm:$0xff] }
  0x87   :  { %v477_v38 = vmul.f32 0.6931472, %v849_v35  ;;  %v496_v45 = vsub.f32 0.0, %v473_v50  ;;  %v558_v54 = vadd.f32 %v1823_v23, %v1875_v40  ;;  %v576_v39 = vmul.f32 0.5, %v1758_v33 }
  0x88   :  { %v594_v16 = vadd.f32 %v574_v7, %v494_v22  ;;  %v721_v14 = vadd.f32 -0.5, %v592_v62  ;;  %v650_v5 = vmul.f32 %v719_v31, %v630_v63  ;;  %v667_v6 = vadd.f32 %v666_v60, %v648_v52  ;;  %v638_v22 = vld [vmem:[%s1982_s3 + $0x90] sm:$0xff]  ;;  %v639_v62 = vld [vmem:[%s1982_s3 + $0x98] sm:$0xff]  ;;  %s852_s3 = scalar_lea.vmem %s700_s29, 16 }
  0x89   :  { %v479_v0 = vmul.f32 0.6931472, %v851_v18  ;;  %v497_v26 = vsub.f32 0.0, %v475_v32  ;;  %v559_v17 = vadd.f32 %v1825_v19, %v519_v11  ;;  %v577_v1 = vmul.f32 0.5, %v557_v58  ;;  %p853_p0 = scmp.ne.s32.totalorder %s700_s29, %s852_s3  ;;  %p858_p2 = scmp.lt.s32.totalorder %s856_s6, %s852_s3 }
  0x8a   :  { %v595_v23 = vadd.f32 %v575_v8, %v495_v43  ;;  %v722_v40 = vadd.f32 -0.5, %v593_v10  ;;  %v651_v33 = vmul.f32 %v720_v59, %v631_v36  ;;  %v668_v61 = vadd.f32 %v667_v6, %v649_v24 }
  0x8b   :  { %v498_v28 = vsub.f32 0.0, %v477_v38  ;;  %v578_v13 = vmul.f32 0.5, %v558_v54  ;;  %v596_v56 = vadd.f32 %v576_v39, %v496_v45  ;;  %v723_v20 = vadd.f32 -0.5, %v594_v16  ;;  %p859_p3 = por %p858_p2, %p857_p1 }
  0x8c   :  { %v652_v46 = vmul.f32 %v721_v14, %v632_v2  ;;  %v669_v53 = vadd.f32 %v668_v61, %v650_v5  ;;  %v499_v19 = vsub.f32 0.0, %v479_v0  ;;  %v579_v9 = vmul.f32 0.5, %v559_v17 }
  0x8d   :  { %v597_v27 = vadd.f32 %v577_v1, %v497_v26  ;;  %v724_v47 = vadd.f32 -0.5, %v595_v23  ;;  %v653_v34 = vmul.f32 %v722_v40, %v633_v29  ;;  %v598_v21 = vadd.f32 %v578_v13, %v498_v28  ;;  %p860_p4 = pnand %p859_p3, %p853_p0 }
  0x8e   :  { %v670_v49 = vadd.f32 %v669_v53, %v651_v33  ;;  %v725_v51 = vadd.f32 -0.5, %v596_v56  ;;  %v654_v37 = vmul.f32 %v723_v20, %v634_v3  ;;  %v599_v41 = vadd.f32 %v579_v9, %v499_v19 }
  0x8f   :  { %v726_v57 = vadd.f32 -0.5, %v597_v27  ;;  %v655_v48 = vmul.f32 %v724_v47, %v635_v4  ;;  %v727_v42 = vadd.f32 -0.5, %v598_v21  ;;  %vm689_vm1 = vcmask 0  }
  0x90   :  { %v671_v55 = vadd.f32 %v670_v49, %v652_v46  ;;  %v656_v35 = vmul.f32 %v725_v51, %v636_v15  ;;  %v728_v11 = vadd.f32 -0.5, %v599_v41 }
  0x91   :  { %v657_v7 = vmul.f32 %v726_v57, %v637_v30  ;;  %v658_v31 = vmul.f32 %v727_v42, %v638_v22 }
  0x92   :  { %v672_v12 = vadd.f32 %v671_v55, %v653_v34  ;;  %v659_v44 = vmul.f32 %v728_v11, %v639_v62 }
  0x94   :  { %v673_v50 = vadd.f32 %v672_v12, %v654_v37 }
  0x96   :  { %v674_v25 = vadd.f32 %v673_v50, %v655_v48 }
  0x98   :  { %v675_v52 = vadd.f32 %v674_v25, %v656_v35 }
  0x9a   :  { %v676_v18 = vadd.f32 %v675_v52, %v657_v7 }
  0x9c   :  { %v677_v32 = vadd.f32 %v676_v18, %v658_v31 }
  0x9e   :  { %v678_v43 = vadd.f32 %v677_v32, %v659_v44 }
  0xa0   :  { %679 = vadd.xlane.f32.xlu0 %v678_v43 }
 0x12d   :  { %v680_v58 = vpop.xlane.xlu0 %679 }
 0x12e   :  { %v681_v8 = vrot.slane %v680_v58, 4 }
 0x130   :  { %v682_v63 = vadd.f32 %v681_v8, %v680_v58 }
 0x132   :  { %v683_v10 = vrot.slane %v682_v63, 2 }
 0x134   :  { %v684_v59 = vadd.f32 %v683_v10, %v682_v63 }
 0x136   :  { %v685_v24 = vrot.slane %v684_v59, 1 }
 0x138   :  { %v686_v60 = vadd.f32 %v685_v24, %v684_v59 }
 0x13a   :  { %729 = vpush %v686_v60 }
 0x16b   :  { %s730_s30 = spop %729 }
 0x16c   :  { %v688_v38 = vstv %s730_s30 }
 0x16d   :  { %690 = vst.msk [vmem:[#allocation2] sm:$0x1] %vm689_vm1, %v688_v38 }
 0x16e   :  { %863 = shalt.err (!%p860_p4)
}
 0x16f   :  { %s864_s8 = scalar_lea.hbm %s1984_s5, 16 }
 0x170   :  { %p865_p5 = scmp.ne.s32.totalorder %s1984_s5, %s864_s8  ;;  %p868_p6 = scmp.lt.u32.totalorder %s864_s8, %s1984_s5 }
 0x172   :  { %p870_p7 = pnand %p868_p6, %p865_p5 }
 0x174   :  { %873 = shalt.err (!%p870_p7)
}
 0x175   :  { %702 = dma.vmem_to_hbm [thread:$0]  %s700_s29, 16, %s1984_s5, [#allocation3]  }
 0x176   :  { %874 = dma.done.wait [#allocation3], 16  }
 0x177   :  { %875 = vsyncadd [#allocation3], 4294967280 }
 0x178   :  { %708 = vsyncpa [#allocation3], 1 }

// kernel: bayesian_resnet_split_forward.6
= control target key start
LH: loop header
LB: loop body
LE: loop exit
PB: predicated region body
PF: predicated region fallthrough
CT: control target
= control target key end

     0   :  { %s5038_s9 = smov 0   ;;  %s6053_s0 = inlined_call_operand.vmem [shape: bf16[2,18,18,128], index: 0, kind: input, shape index: {}]   ;;  %s6054_s1 = inlined_call_operand.vmem [shape: bf16[9,128,128], index: 1, kind: input, shape index: {}]   ;;  %s6055_s2 = inlined_call_operand.vmem [shape: bf16[2,16,16,128], index: 2, kind: output, shape index: {}]  }
   0x1 LB: > { %s3537_s10 = sadd.s32 4294967295, %s5021_s9   ;;  %p3541_p0 = scmp.ge.s32.totalorder %s5021_s9, 1  ;;  %s5021_s9 = sphi %s5038_s9, %s12_s9  }
   0x2   : > { %p112_p1 = scmp.lt.s32.totalorder %s5021_s9, 3 }
   0x4   : > { %p113_p2 = pnand %p3541_p0, %p112_p1 }
   0x6   : > { %116 = sbr.rel (%p113_p2) target bundleno = 559 (0x22f), region = 28 }
   0xd   : > { %v4908_v0 = vld [vmem:[%s6054_s1 + $0x40] sm:$0xff]   ;;  %p134_p3 = scmp.lt.s32.totalorder %s3537_s10, 1  ;;  %v4910_v2 = vld [vmem:[%s6054_s1 + $0x48] sm:$0xff]   ;;  %v4912_v4 = vld [vmem:[%s6054_s1 + $0x50] sm:$0xff]   ;;  %vm215_vm0 = vsmask.f32 3328 }
   0xe   : > { %v4909_v1 = vld [vmem:[%s6054_s1 + $0x100] sm:$0xff]   ;;  %4195 = vmatprep.subr.bf16.mxu1 %v4908_v0  ;;  %v4911_v3 = vld [vmem:[%s6054_s1 + $0x108] sm:$0xff]   ;;  %v4913_v5 = vld [vmem:[%s6054_s1 + $0x110] sm:$0xff]   ;;  %vm216_vm1 = vsmask.f32 7440  ;;  %vm1213_vm3 = vcmask 1042432  }
   0xf   : > { %4387 = vmatprep.subr.bf16.mxu0 %v4909_v1  ;;  %4196 = vmatpush3.bf16.msra.mxu1 %v4908_v0  ;;  %s6100_s10 = smov (!%p134_p3, %s3537_s10), 1  ;;  %v4914_v6 = vld [vmem:[%s6054_s1 + $0x58] sm:$0xff]   ;;  %v4916_v8 = vld [vmem:[%s6054_s1 + $0x60] sm:$0xff]   ;;  %v4918_v10 = vld [vmem:[%s6054_s1 + $0x68] sm:$0xff]   ;;  %vm1214_vm4 = vcmask 1046532  }
  0x10   : > { %4388 = vmatpush3.bf16.msra.mxu0 %v4909_v1  ;;  %4197 = vmatprep.subr.bf16.mxu1 %v4910_v2  ;;  %v4915_v7 = vld [vmem:[%s6054_s1 + $0x118] sm:$0xff]   ;;  %s4899_s27 = smul.u32 216, %s6100_s10  ;;  %v4917_v9 = vld [vmem:[%s6054_s1 + $0x120] sm:$0xff]   ;;  %v4919_v11 = vld [vmem:[%s6054_s1 + $0x128] sm:$0xff]   ;;  %s3851_s23 = sshll.u32 %s6100_s10, 7 }
  0x11   : > { %4389 = vmatprep.subr.bf16.mxu0 %v4911_v3  ;;  %v4920_v17 = vld [vmem:[%s6054_s1 + $0x70] sm:$0xff]   ;;  %v4922_v36 = vld [vmem:[%s6054_s1 + $0x78] sm:$0xff]   ;;  %vm5127_vm2 = vmor %vm215_vm0, %vm216_vm1  ;;  %s6032_s26 = scalar_lea.vmem %s6055_s2, %s3851_s23 }
  0x12   : > { %s5082_s6 = scalar_lea.vmem %s6053_s0, %s4899_s27  ;;  %v4921_v31 = vld [vmem:[%s6054_s1 + $0x130] sm:$0xff]   ;;  %v4923_v53 = vld [vmem:[%s6054_s1 + $0x138] sm:$0xff]   ;;  %v4924_v1 = vld [vmem:[%s6054_s1] sm:$0xff]  }
  0x13   : > { %4198 = vmatpush3.bf16.msra.mxu1 %v4910_v2  ;;  %v5091_v12 = vld [vmem:[%s5082_s6] sm:$0xf]  ;;  %v5094_v13 = vld [vmem:[%s5082_s6 + $0x4] sm:$0xf]  ;;  %v147_v14 = vld [vmem:[%s5082_s6 + $0x8] sm:$0x1] }
  0x14   : > { %4390 = vmatpush3.bf16.msra.mxu0 %v4911_v3  ;;  %4199 = vmatprep.subr.bf16.mxu1 %v4912_v4  ;;  %v219_v15 = vshrl.u32 %v5091_v12, 16  ;;  %v222_v16 = vshll.u32 %v5091_v12, 16  ;;  %v228_v18 = vshll.u32 %v5094_v13, 16  ;;  %v232_v19 = vshrl.u32 %v5094_v13, 16  ;;  %v5105_v21 = vld [vmem:[%s5082_s6 + $0xc] sm:$0xf]  ;;  %vm5334_vm5 = vmor %vm1213_vm3, %vm1214_vm4 }
  0x15   : > { %4391 = vmatprep.subr.bf16.mxu0 %v4913_v5  ;;  %v238_v20 = vshll.u32 %v147_v14, 16  ;;  %v5108_v24 = vld [vmem:[%s5082_s6 + $0x10] sm:$0xf]  ;;  %v5111_v25 = vld [vmem:[%s5082_s6 + $0x14] sm:$0x1]  ;;  %v243_v30 = vshrl.u32 %v5105_v21, 16 }
  0x16   : > { %v221_v22 = vrot.slane %v219_v15, 4  ;;  %v224_v23 = vrot.slane %v222_v16, 5  ;;  %v230_v27 = vrot.slane %v228_v18, 5  ;;  %v234_v28 = vrot.slane %v232_v19, 4  ;;  %v5133_v41 = vld [vmem:[%s5082_s6 + $0x18] sm:$0xf] }
  0x17   : > { %4200 = vmatpush3.bf16.msra.mxu1 %v4912_v4  ;;  %v240_v29 = vrot.slane %v238_v20, 5  ;;  %v246_v33 = vshll.u32 %v5105_v21, 16  ;;  %v252_v34 = vshll.u32 %v5108_v24, 16  ;;  %v256_v35 = vshrl.u32 %v5108_v24, 16  ;;  %v5136_v42 = vld [vmem:[%s5082_s6 + $0x1c] sm:$0xf] }
  0x18   : > { %4392 = vmatpush3.bf16.msra.mxu0 %v4913_v5  ;;  %4201 = vmatprep.subr.bf16.mxu1 %v4914_v6  ;;  %v225_v32 = vor.u32 %v224_v23, %v221_v22  ;;  %v235_v38 = vor.u32 %v234_v28, %v230_v27  ;;  %v245_v39 = vrot.slane %v243_v30, 4  ;;  %v262_v40 = vshll.u32 %v5111_v25, 16  ;;  %v5143_v48 = vld [vmem:[%s5082_s6 + $0x20] sm:$0x1]  ;;  %v5160_v3 = vld [vmem:[%s5082_s6 + $0x24] sm:$0xf] }
  0x19   : > { %4393 = vmatprep.subr.bf16.mxu0 %v4915_v7  ;;  %v5140_v43 = vcombine.low %v5105_v21, %v5108_v24  ;;  %v248_v45 = vrot.slane %v246_v33, 5  ;;  %v254_v46 = vrot.slane %v252_v34, 5  ;;  %v258_v47 = vrot.slane %v256_v35, 4  ;;  %v5175_v14 = vld [vmem:[%s5082_s6 + $0x2c] sm:$0x1]  ;;  %v5014_v37 = vld [vmem:[%s6054_s1 + $0x138] sm:$0xff]  }
  0x1a   : > { %v226_v44 = vrot.slane %v225_v32, 4  ;;  %v236_v49 = vrot.slane %v235_v38, 4  ;;  %v264_v50 = vrot.slane %v262_v40, 5  ;;  %v267_v51 = vshrl.u32 %v5133_v41, 16  ;;  %v5180_v22 = vld [vmem:[%s5082_s6 + $0x30] sm:$0xf] }
  0x1b   : > { %4202 = vmatpush3.bf16.msra.mxu1 %v4914_v6  ;;  %v270_v52 = vshll.u32 %v5133_v41, 16  ;;  %v249_v55 = vor.u32 %v248_v45, %v245_v39  ;;  %v259_v56 = vor.u32 %v258_v47, %v254_v46  ;;  %v276_v57 = vshll.u32 %v5136_v42, 16  ;;  %v5185_v30 = vld [vmem:[%s5082_s6 + $0x34] sm:$0xf]  ;;  %v4927_v34 = vld [vmem:[%s6054_s1 + $0x8] sm:$0xff]  }
  0x1c   : > { %4394 = vmatpush3.bf16.msra.mxu0 %v4915_v7  ;;  %4203 = vmatprep.subr.bf16.mxu1 %v4916_v8  ;;  %v231_v54 = vsel %vm5127_vm2, %v226_v44, %v230_v27  ;;  %v241_v58 = vsel %vm5127_vm2, %v236_v49, %v240_v29  ;;  %v269_v59 = vrot.slane %v267_v51, 4  ;;  %v280_v61 = vshrl.u32 %v5136_v42, 16  ;;  %v5194_v35 = vld [vmem:[%s5082_s6 + $0x38] sm:$0x1] }
  0x1d   : > { %4395 = vmatprep.subr.bf16.mxu0 %v4917_v9  ;;  %v272_v60 = vrot.slane %v270_v52, 5  ;;  %v3561_v62 = vcombine.low %v231_v54, %v241_v58  ;;  %v250_v63 = vrot.slane %v249_v55, 4  ;;  %v260_v0 = vrot.slane %v259_v56, 4  ;;  %v5209_v58 = vld [vmem:[%s5082_s6 + $0x3c] sm:$0xf] }
  0x1e   : > { %v278_v2 = vrot.slane %v276_v57, 5  ;;  %v282_v5 = vrot.slane %v280_v61, 4  ;;  %v286_v6 = vshll.u32 %v5143_v48, 16  ;;  %v1235_v7 = vrot.slane %v5143_v48, 5 }
  0x1f   : > { %4204 = vmatpush3.bf16.msra.mxu1 %v4916_v8  ;;  %v273_v4 = vor.u32 %v272_v60, %v269_v59  ;;  %v4925_v8 = vld [vmem:[%s6054_s1 + $0x140] sm:$0xff]   ;;  %4211 = vmatprep.mubr.bf16.mxu1 %v3561_v62  ;;  %v291_v15 = vshrl.u32 %v5160_v3, 16  ;;  %v294_v16 = vshll.u32 %v5160_v3, 16  ;;  %v310_v33 = vshll.u32 %v5175_v14, 16  ;;  %v4930_v59 = vld [vmem:[%s6054_s1 + $0x10] sm:$0xff]  }
  0x20   : > { %4396 = vmatpush3.bf16.msra.mxu0 %v4917_v9  ;;  %4205 = vmatprep.subr.bf16.mxu1 %v4918_v10  ;;  %v5168_v9 = vld [vmem:[%s5082_s6 + $0x28] sm:$0xf]  ;;  %v283_v19 = vor.u32 %v282_v5, %v278_v2  ;;  %v288_v20 = vrot.slane %v286_v6, 5  ;;  %v318_v44 = vshll.u32 %v5180_v22, 16  ;;  %v328_v56 = vshrl.u32 %v5185_v30, 16 }
  0x21   : > { %4397 = vmatprep.subr.bf16.mxu0 %v4919_v11  ;;  %v274_v18 = vrot.slane %v273_v4, 4  ;;  %v293_v23 = vrot.slane %v291_v15, 4  ;;  %v296_v27 = vrot.slane %v294_v16, 5  ;;  %v300_v28 = vshll.u32 %v5168_v9, 16  ;;  %v4928_v16 = vld [vmem:[%s6054_s1 + $0x150] sm:$0xff]  }
  0x22   : > { %v304_v29 = vshrl.u32 %v5168_v9, 16  ;;  %v284_v32 = vrot.slane %v283_v19, 4  ;;  %v312_v47 = vrot.slane %v310_v33, 5  ;;  %v320_v54 = vrot.slane %v318_v44, 5  ;;  %v5249_v33 = vld [vmem:[%s5082_s6 + $0x50] sm:$0x1] }
  0x23   : > { %4206 = vmatpush3.bf16.msra.mxu1 %v4918_v10  ;;  %v255_v10 = vsel %vm5127_vm2, %v250_v63, %v254_v46  ;;  %v297_v38 = vor.u32 %v296_v27, %v293_v23  ;;  %v302_v39 = vrot.slane %v300_v28, 5  ;;  %v4926_v46 = vld [vmem:[%s6054_s1 + $0x148] sm:$0xff]   ;;  %v334_v57 = vshll.u32 %v5194_v35, 16 }
  0x24   : > { %4398 = vmatpush3.bf16.msra.mxu0 %v4919_v11  ;;  %4207 = vmatprep.subr.bf16.mxu1 %v4920_v17  ;;  %v265_v11 = vsel %vm5127_vm2, %v260_v0, %v264_v50  ;;  %v306_v40 = vrot.slane %v304_v29, 4  ;;  %v289_v45 = vsel %vm5127_vm2, %v284_v32, %v288_v20  ;;  %v324_v50 = vshll.u32 %v5185_v30, 16  ;;  %v5223_v0 = vld [vmem:[%s5082_s6 + $0x40] sm:$0xf]  ;;  %v5240_v27 = vld [vmem:[%s5082_s6 + $0x48] sm:$0xf] }
  0x25   : > { %4399 = vmatprep.subr.bf16.mxu0 %v4921_v31  ;;  %v298_v52 = vrot.slane %v297_v38, 4  ;;  %v5216_v60 = vcombine.low %v5133_v41, %v5136_v42  ;;  %v330_v4 = vrot.slane %v328_v56, 4  ;;  %v336_v5 = vrot.slane %v334_v57, 5  ;;  %v5243_v28 = vld [vmem:[%s5082_s6 + $0x4c] sm:$0xf] }
  0x26   : > { %v326_v55 = vrot.slane %v324_v50, 5  ;;  %v342_v6 = vshll.u32 %v5209_v58, 16  ;;  %v372_v44 = vshll.u32 %v5243_v28, 16  ;;  %v376_v50 = vshrl.u32 %v5243_v28, 16 }
  0x27   : > { %4208 = vmatpush3.bf16.msra.mxu1 %v4920_v17  ;;  %v3562_v17 = vcombine.low %v255_v10, %v265_v11  ;;  %v303_v61 = vsel %vm5127_vm2, %v298_v52, %v302_v39  ;;  %v348_v10 = vshll.u32 %v5223_v0, 16 }
  0x28   : > { %4400 = vmatpush3.bf16.msra.mxu0 %v4921_v31  ;;  %4209 = vmatprep.subr.bf16.mxu1 %v4922_v36  ;;  %v279_v31 = vsel %vm5127_vm2, %v274_v18, %v278_v2  ;;  %v339_v2 = vshrl.u32 %v5209_v58, 16  ;;  %v331_v19 = vor.u32 %v330_v4, %v326_v55  ;;  %v344_v20 = vrot.slane %v342_v6, 5  ;;  %v5280_v6 = vld [vmem:[%s5082_s6 + $0x58] sm:$0xf] }
  0x29   : > { %4401 = vmatprep.subr.bf16.mxu0 %v4923_v53  ;;  %4403 = vmatprep.mubr.bf16.mxu0 %v3562_v17  ;;  %v5204_v51 = vcombine.low %v279_v31, %v289_v45  ;;  %v350_v23 = vrot.slane %v348_v10, 5  ;;  %v4929_v45 = vld [vmem:[%s6054_s1 + $0x158] sm:$0xff]  }
  0x2a   : > { %v332_v38 = vrot.slane %v331_v19, 4  ;;  %v5283_v10 = vld [vmem:[%s5082_s6 + $0x5c] sm:$0x1] }
  0x2b   : > { %4210 = vmatpush3.bf16.msra.mxu1 %v4922_v36  ;;  %v315_v36 = vshrl.u32 %v5180_v22, 16 }
  0x2c   : > { %4402 = vmatpush3.bf16.msra.mxu0 %v4923_v53  ;;  %4243 = vmatprep.subr.bf16.mxu1 %v4924_v1  ;;  %v307_v53 = vor.u32 %v306_v40, %v302_v39  ;;  %v366_v40 = vshll.u32 %v5240_v27, 16  ;;  %v337_v52 = vsel %vm5127_vm2, %v332_v38, %v336_v5  ;;  %v5277_v5 = vld [vmem:[%s5082_s6 + $0x54] sm:$0xf] }
  0x2d   : > { %4435 = vmatprep.subr.bf16.mxu0 %v4925_v8  ;;  %v317_v49 = vrot.slane %v315_v36, 4  ;;  %v4933_v36 = vld [vmem:[%s6054_s1 + $0x18] sm:$0xff]   ;;  %v387_v19 = vshrl.u32 %v5277_v5, 16 }
  0x2e   : > { %4212 = vmatmul.mubr.bf16.vlgmr.msra.gmra.mrb[0].mxu1 %v3562_v17  ;;  %v308_v62 = vrot.slane %v307_v53, 4  ;;  %v352_v17 = vshrl.u32 %v5223_v0, 16 }
  0x2f   : > { %4244 = vmatpush3.bf16.msra.mxu1 %v4924_v1  ;;  %4404 = vmatmul.mubr.bf16.vlgmr.msra.gmra.mrb[0].mxu0 %v5204_v51  ;;  %v321_v63 = vor.u32 %v320_v54, %v317_v49  ;;  %v5226_v1 = vld [vmem:[%s5082_s6 + $0x44] sm:$0x1]  ;;  %v368_v54 = vrot.slane %v366_v40, 5  ;;  %v400_v40 = vshrl.u32 %v5280_v6, 16 }
  0x30   : > { %4245 = vmatprep.subr.bf16.mxu1 %v4927_v34  ;;  %4215 = vmatprep.mubr.bf16.mxu1 %v5204_v51  ;;  %v313_v11 = vsel %vm5127_vm2, %v308_v62, %v312_v47  ;;  %v354_v31 = vrot.slane %v352_v17, 4  ;;  %v358_v32 = vshll.u32 %v5226_v1, 16  ;;  %v382_v62 = vshll.u32 %v5249_v33, 16 }
  0x31   : > { %4436 = vmatpush3.bf16.msra.mxu0 %v4925_v8  ;;  %v322_v15 = vrot.slane %v321_v63, 4  ;;  %v341_v8 = vrot.slane %v339_v2, 4  ;;  %v5237_v18 = vcombine.low %v303_v61, %v313_v11  ;;  %v378_v61 = vrot.slane %v376_v50, 4  ;;  %v4931_v63 = vld [vmem:[%s6054_s1 + $0x160] sm:$0xff]   ;;  %v5317_v50 = vld [vmem:[%s5082_s6 + $0x68] sm:$0x1] }
  0x32   : > { %4437 = vmatprep.subr.bf16.mxu0 %v4926_v46  ;;  %v355_v47 = vor.u32 %v354_v31, %v350_v23  ;;  %v360_v49 = vrot.slane %v358_v32, 5  ;;  %v4936_v2 = vld [vmem:[%s6054_s1 + $0x20] sm:$0xff]   ;;  %v5287_v11 = vcombine.low %v5160_v3, %v5168_v9  ;;  %v384_v17 = vrot.slane %v382_v62, 5 }
  0x33   : > { %4246 = vmatpush3.bf16.msra.mxu1 %v4927_v34  ;;  %6074 = vst [vmem:[#allocation2_spill] sm:$0xff] %v5237_v18  ;;  %v327_v29 = vsel %vm5127_vm2, %v322_v15, %v326_v55  ;;  %v363_v34 = vshrl.u32 %v5240_v27, 16  ;;  %4407 = vmatprep.mubr.bf16.mxu0 %v5237_v18  ;;  %v345_v39 = vor.u32 %v344_v20, %v341_v8  ;;  %v374_v55 = vrot.slane %v372_v44, 5  ;;  %v5303_v32 = vld [vmem:[%s5082_s6 + $0x60] sm:$0xf] }
  0x34   : > { %4247 = vmatprep.subr.bf16.mxu1 %v4930_v59  ;;  %v5265_v56 = vcombine.low %v327_v29, %v337_v52  ;;  %v356_v57 = vrot.slane %v355_v47, 4  ;;  %v5291_v15 = vcombine.low %v5180_v22, %v5185_v30  ;;  %v390_v29 = vshll.u32 %v5277_v5, 16  ;;  %v5311_v47 = vld [vmem:[%s5082_s6 + $0x64] sm:$0xf] }
  0x35   : > { %4438 = vmatpush3.bf16.msra.mxu0 %v4926_v46  ;;  %v365_v46 = vrot.slane %v363_v34, 4  ;;  %v346_v53 = vrot.slane %v345_v39, 4  ;;  %v379_v8 = vor.u32 %v378_v61, %v374_v55  ;;  %v396_v31 = vshll.u32 %v5280_v6, 16  ;;  %v4938_v34 = vld [vmem:[%s6054_s1 + $0x28] sm:$0xff]  }
  0x36   : > { %4216 = vmatmul.mubr.bf16.gmra.mrb[4].mxu1 %v5237_v18  ;;  %4439 = vmatprep.subr.bf16.mxu0 %v4928_v16  ;;  %6075 = vst [vmem:[#allocation3_spill] sm:$0xff] %v5265_v56  ;;  %v389_v39 = vrot.slane %v387_v19, 4  ;;  %v406_v44 = vshll.u32 %v5283_v10, 16  ;;  %v411_v52 = vshrl.u32 %v5303_v32, 16  ;;  %v430_v19 = vshll.u32 %v5317_v50, 16 }
  0x37   : > { %4248 = vmatpush3.bf16.msra.mxu1 %v4930_v59  ;;  %v351_v4 = vsel %vm5127_vm2, %v346_v53, %v350_v23  ;;  %v369_v59 = vor.u32 %v368_v54, %v365_v46  ;;  %4408 = vmatmul.mubr.bf16.gmra.mrb[4].mxu0 %v5265_v56  ;;  %v380_v38 = vrot.slane %v379_v8, 4  ;;  %v398_v46 = vrot.slane %v396_v31, 5 }
  0x38   : > { %4249 = vmatprep.subr.bf16.mxu1 %v4933_v36  ;;  %4219 = vmatprep.mubr.bf16.mxu1 %v5265_v56  ;;  %v402_v54 = vrot.slane %v400_v40, 4  ;;  %v5345_v40 = vld [vmem:[%s5082_s6 + $0x6c] sm:$0xf] }
  0x39   : > { %4440 = vmatpush3.bf16.msra.mxu0 %v4928_v16  ;;  %v361_v16 = vsel %vm5127_vm2, %v356_v57, %v360_v49  ;;  %v370_v23 = vrot.slane %v369_v59, 4  ;;  %v385_v53 = vsel %vm5127_vm2, %v380_v38, %v384_v17  ;;  %v408_v57 = vrot.slane %v406_v44, 5 }
  0x3a   : > { %4441 = vmatprep.subr.bf16.mxu0 %v4929_v45  ;;  %v5298_v20 = vcombine.low %v351_v4, %v361_v16  ;;  %v413_v4 = vrot.slane %v411_v52, 4  ;;  %v420_v59 = vshll.u32 %v5311_v47, 16  ;;  %v403_v16 = vor.u32 %v402_v54, %v398_v46 }
  0x3b   : > { %4250 = vmatpush3.bf16.msra.mxu1 %v4933_v36  ;;  %v375_v49 = vsel %vm5127_vm2, %v370_v23, %v374_v55  ;;  %v392_v36 = vrot.slane %v390_v29, 5  ;;  %v414_v55 = vshll.u32 %v5303_v32, 16  ;;  %v424_v17 = vshrl.u32 %v5311_v47, 16  ;;  %v4940_v29 = vld [vmem:[%s6054_s1 + $0x30] sm:$0xff]  }
  0x3c   : > { %6076 = vst [vmem:[#allocation4_spill] sm:$0xff] %v5298_v20  ;;  %4251 = vmatprep.subr.bf16.mxu1 %v4936_v2  ;;  %4411 = vmatprep.mubr.bf16.mxu0 %v5298_v20  ;;  %v5327_v61 = vcombine.low %v375_v49, %v385_v53  ;;  %v422_v31 = vrot.slane %v420_v59, 5  ;;  %v3610_v38 = vrot.slane %v5105_v21, 9  ;;  %v404_v44 = vrot.slane %v403_v16, 4  ;;  %v5352_v53 = vld [vmem:[%s5082_s6 + $0x70] sm:$0xf] }
  0x3d   : > { %4442 = vmatpush3.bf16.msra.mxu0 %v4929_v45  ;;  %v4932_v45 = vld [vmem:[%s6054_s1 + $0x168] sm:$0xff]   ;;  %v393_v62 = vor.u32 %v392_v36, %v389_v39  ;;  %v416_v8 = vrot.slane %v414_v55, 5  ;;  %v1225_v39 = vrot.slane %v5108_v24, 5  ;;  %v426_v36 = vrot.slane %v424_v17, 4 }
  0x3e   : > { %4220 = vmatmul.mubr.bf16.gmra.mrb[8].mxu1 %v5298_v20  ;;  %4443 = vmatprep.subr.bf16.mxu0 %v4931_v63  ;;  %6077 = vst [vmem:[#allocation5_spill] sm:$0xff] %v5327_v61  ;;  %v432_v52 = vrot.slane %v430_v19, 5  ;;  %v1228_v55 = vrot.slane %v5111_v25, 5  ;;  %v409_v59 = vsel %vm5127_vm2, %v404_v44, %v408_v57  ;;  %v444_v19 = vshll.u32 %v5352_v53, 16 }
  0x3f   : > { %4252 = vmatpush3.bf16.msra.mxu1 %v4936_v2  ;;  %4223 = vmatprep.mubr.bf16.mxu1 %v5327_v61  ;;  %v394_v2 = vrot.slane %v393_v62, 4  ;;  %v417_v49 = vor.u32 %v416_v8, %v413_v4  ;;  %v1226_v24 = vsel %vm5334_vm5, %v3610_v38, %v1225_v39  ;;  %v1227_v54 = vrot.slane %v1225_v39, 4  ;;  %v5360_v62 = vld [vmem:[%s5082_s6 + $0x74] sm:$0x1]  ;;  %v4942_v4 = vld [vmem:[%s6054_s1 + $0x38] sm:$0xff]  }
  0x40   : > { %4253 = vmatprep.subr.bf16.mxu1 %v4938_v34  ;;  %4412 = vmatmul.mubr.bf16.gmra.mrb[8].mxu0 %v5327_v61  ;;  %v427_v8 = vor.u32 %v426_v36, %v422_v31  ;;  %v446_v36 = vrot.slane %v444_v19, 5  ;;  %v1246_v20 = vrot.slane %v5185_v30, 5 }
  0x41   : > { %4444 = vmatpush3.bf16.msra.mxu0 %v4931_v63  ;;  %v4934_v63 = vld [vmem:[%s6054_s1 + $0x170] sm:$0xff]   ;;  %v399_v21 = vsel %vm5127_vm2, %v394_v2, %v398_v46  ;;  %v418_v16 = vrot.slane %v417_v49, 4  ;;  %v435_v46 = vshrl.u32 %v5345_v40, 16  ;;  %v1229_v25 = vsel %vm5334_vm5, %v1227_v54, %v1228_v55  ;;  %v5375_v2 = vld [vmem:[%s5082_s6 + $0x78] sm:$0xf] }
  0x42   : > { %4445 = vmatprep.subr.bf16.mxu0 %v4932_v45  ;;  %v5368_v17 = vcombine.low %v399_v21, %v409_v59  ;;  %v428_v38 = vrot.slane %v427_v8, 4  ;;  %v5382_v39 = vcombine.low %v1226_v24, %v1229_v25  ;;  %v448_v21 = vshrl.u32 %v5352_v53, 16  ;;  %v5389_v54 = vld [vmem:[%s5082_s6 + $0x7c] sm:$0xf] }
  0x43   : > { %4254 = vmatpush3.bf16.msra.mxu1 %v4938_v34  ;;  %v438_v34 = vshll.u32 %v5345_v40, 16  ;;  %v423_v57 = vsel %vm5127_vm2, %v418_v16, %v422_v31  ;;  %v437_v44 = vrot.slane %v435_v46, 4  ;;  %v454_v31 = vshll.u32 %v5360_v62, 16  ;;  %v5396_v16 = vld [vmem:[%s5082_s6 + $0x80] sm:$0x1] }
  0x44   : > { %4255 = vmatprep.subr.bf16.mxu1 %v4940_v29  ;;  %6080 = vst [vmem:[#allocation6_spill] sm:$0xff] %v5368_v17  ;;  %4415 = vmatprep.mubr.bf16.mxu0 %v5368_v17  ;;  %v433_v55 = vsel %vm5127_vm2, %v428_v38, %v432_v52  ;;  %v3611_v59 = vrot.slane %v5133_v41, 9  ;;  %v1232_v24 = vrot.slane %v5136_v42, 5  ;;  %v459_v8 = vshrl.u32 %v5375_v2, 16  ;;  %v5404_v52 = vld [vmem:[%s6054_s1 + $0x80] sm:$0xff]  }
  0x45   : > { %4446 = vmatpush3.bf16.msra.mxu0 %v4932_v45  ;;  %v4935_v45 = vld [vmem:[%s6054_s1 + $0x178] sm:$0xff]   ;;  %v440_v49 = vrot.slane %v438_v34, 5  ;;  %v5399_v46 = vcombine.low %v423_v57, %v433_v55  ;;  %v450_v34 = vrot.slane %v448_v21, 4  ;;  %v456_v19 = vrot.slane %v454_v31, 5  ;;  %v5413_v38 = vld [vmem:[%s5082_s6 + $0x84] sm:$0xf] }
  0x46   : > { %4447 = vmatprep.subr.bf16.mxu0 %v4934_v63  ;;  %4224 = vmatmul.mubr.bf16.gmra.mrb[12].mxu1 %v5368_v17  ;;  %v1233_v41 = vsel %vm5334_vm5, %v3611_v59, %v1232_v24  ;;  %v1234_v42 = vrot.slane %v1232_v24, 4  ;;  %v461_v57 = vrot.slane %v459_v8, 4  ;;  %v468_v21 = vshll.u32 %v5389_v54, 16 }
  0x47   : > { %4256 = vmatpush3.bf16.msra.mxu1 %v4940_v29  ;;  %6081 = vst [vmem:[#allocation7_spill] sm:$0xff] %v5399_v46  ;;  %v441_v25 = vor.u32 %v440_v49, %v437_v44  ;;  %v4937_v29 = vld [vmem:[%s6054_s1 + $0x180] sm:$0xff]   ;;  %4227 = vmatprep.mubr.bf16.mxu1 %v5399_v46  ;;  %v451_v49 = vor.u32 %v450_v34, %v446_v36  ;;  %v472_v31 = vshrl.u32 %v5389_v54, 16  ;;  %v478_v24 = vshll.u32 %v5396_v16, 16 }
  0x48   : > { %4257 = vmatprep.subr.bf16.mxu1 %v4942_v4  ;;  %4416 = vmatmul.mubr.bf16.gmra.mrb[12].mxu0 %v5399_v46  ;;  %v1236_v55 = vsel %vm5334_vm5, %v1234_v42, %v1235_v7  ;;  %v3612_v8 = vrot.slane %v5160_v3, 9  ;;  %v470_v46 = vrot.slane %v468_v21, 5  ;;  %v5433_v3 = vld [vmem:[%s5082_s6 + $0x88] sm:$0xf] }
  0x49   : > { %4448 = vmatpush3.bf16.msra.mxu0 %v4934_v63  ;;  %v462_v63 = vshll.u32 %v5375_v2, 16  ;;  %v442_v44 = vrot.slane %v441_v25, 4  ;;  %4451 = vmatprep.mubr.bf16.mxu0 %v5382_v39  ;;  %v452_v34 = vrot.slane %v451_v49, 4  ;;  %v5428_v26 = vcombine.low %v1233_v41, %v1236_v55 }
  0x4a   : > { %4449 = vmatprep.subr.bf16.mxu0 %v4935_v45  ;;  %v474_v7 = vrot.slane %v472_v31, 4  ;;  %v480_v42 = vrot.slane %v478_v24, 5  ;;  %v483_v41 = vshrl.u32 %v5413_v38, 16  ;;  %v4939_v31 = vld [vmem:[%s6054_s1 + $0x188] sm:$0xff]   ;;  %v5452_v24 = vld [vmem:[%s5082_s6 + $0x90] sm:$0xf] }
  0x4b   : > { %v464_v59 = vrot.slane %v462_v63, 5  ;;  %4258 = vmatpush3.bf16.msra.mxu1 %v4942_v4  ;;  %v447_v25 = vsel %vm5127_vm2, %v442_v44, %v446_v36  ;;  %v1239_v63 = vrot.slane %v5168_v9, 5  ;;  %v457_v4 = vsel %vm5127_vm2, %v452_v34, %v456_v19  ;;  %v5439_v36 = vld [vmem:[%s5082_s6 + $0x8c] sm:$0x1]  ;;  %v5455_v34 = vld [vmem:[%s5082_s6 + $0x94] sm:$0xf] }
  0x4c   : > { %4291 = vmatprep.subr.bf16.mxu1 %v5404_v52  ;;  %v486_v44 = vshll.u32 %v5413_v38, 16  ;;  %v475_v21 = vor.u32 %v474_v7, %v470_v46  ;;  %v485_v55 = vrot.slane %v483_v41, 4  ;;  %v502_v7 = vshll.u32 %v5439_v36, 16 }
  0x4d   : > { %4450 = vmatpush3.bf16.msra.mxu0 %v4935_v45  ;;  %v465_v48 = vor.u32 %v464_v59, %v461_v57  ;;  %v1242_v45 = vrot.slane %v5175_v14, 5  ;;  %v5443_v57 = vcombine.low %v447_v25, %v457_v4  ;;  %v1240_v9 = vsel %vm5334_vm5, %v3612_v8, %v1239_v63 }
  0x4e   : > { %4483 = vmatprep.subr.bf16.mxu0 %v4937_v29  ;;  %v1241_v19 = vrot.slane %v1239_v63, 4  ;;  %v488_v14 = vrot.slane %v486_v44, 5  ;;  %v492_v59 = vshll.u32 %v5433_v3, 16  ;;  %v496_v8 = vshrl.u32 %v5433_v3, 16 }
  0x4f   : > { %6082 = vst [vmem:[#allocation8_spill] sm:$0xff] %v5443_v57  ;;  %v466_v49 = vrot.slane %v465_v48, 4  ;;  %4228 = vmatmul.mubr.bf16.gmra.mrb[16].mxu1 %v5443_v57  ;;  %v476_v48 = vrot.slane %v475_v21, 4  ;;  %v3613_v44 = vrot.slane %v5180_v22, 9  ;;  %v504_v21 = vrot.slane %v502_v7, 5  ;;  %v4941_v22 = vld [vmem:[%s6054_s1 + $0x190] sm:$0xff]  }
  0x50   : > { %4452 = vmatmul.mubr.bf16.vlgmr.msra.gmra.mrb[0].mxu0 %v5428_v26  ;;  %v1243_v63 = vsel %vm5334_vm5, %v1241_v19, %v1242_v45  ;;  %v489_v4 = vor.u32 %v488_v14, %v485_v55  ;;  %v494_v41 = vrot.slane %v492_v59, 5  ;;  %v1249_v45 = vrot.slane %v5194_v35, 5  ;;  %v5491_v59 = vld [vmem:[%s5082_s6 + $0x9c] sm:$0xf] }
  0x51   : > { %v471_v25 = vsel %vm5127_vm2, %v466_v49, %v470_v46  ;;  %4484 = vmatpush3.bf16.msra.mxu0 %v4937_v29  ;;  %v481_v57 = vsel %vm5127_vm2, %v476_v48, %v480_v42  ;;  %v5468_v46 = vcombine.low %v1240_v9, %v1243_v63  ;;  %v498_v49 = vrot.slane %v496_v8, 4  ;;  %v5479_v42 = vld [vmem:[%s5082_s6 + $0x98] sm:$0x1]  ;;  %v5494_v63 = vld [vmem:[%s5082_s6 + $0xa0] sm:$0xf] }
  0x52   : > { %v5470_v17 = vcombine.low %v471_v25, %v481_v57  ;;  %v490_v61 = vrot.slane %v489_v4, 4  ;;  %4485 = vmatprep.subr.bf16.mxu0 %v4939_v31  ;;  %v507_v57 = vshrl.u32 %v5452_v24, 16  ;;  %v510_v9 = vshll.u32 %v5452_v24, 16 }
  0x53   : > { %4455 = vmatprep.mubr.bf16.mxu0 %v5468_v46  ;;  %v499_v29 = vor.u32 %v498_v49, %v494_v41  ;;  %v516_v19 = vshll.u32 %v5455_v34, 16  ;;  %v1247_v35 = vsel %vm5334_vm5, %v3613_v44, %v1246_v20  ;;  %v1248_v55 = vrot.slane %v1246_v20, 4  ;;  %v5501_v20 = vld [vmem:[%s5082_s6 + $0xa4] sm:$0x1] }
  0x54   : > { %6083 = vst [vmem:[#allocation9_spill] sm:$0xff] %v5470_v17  ;;  %4231 = vmatprep.mubr.bf16.mxu1 %v5470_v17  ;;  %v495_v30 = vsel %vm5127_vm2, %v490_v61, %v494_v41  ;;  %v520_v14 = vshrl.u32 %v5455_v34, 16  ;;  %v509_v48 = vrot.slane %v507_v57, 4  ;;  %v512_v8 = vrot.slane %v510_v9, 5 }
  0x55   : > { %v500_v25 = vrot.slane %v499_v29, 4  ;;  %4486 = vmatpush3.bf16.msra.mxu0 %v4939_v31  ;;  %v518_v7 = vrot.slane %v516_v19, 5  ;;  %v1250_v4 = vsel %vm5334_vm5, %v1248_v55, %v1249_v45  ;;  %v526_v61 = vshll.u32 %v5479_v42, 16  ;;  %v4943_v45 = vld [vmem:[%s6054_s1 + $0x198] sm:$0xff]  }
  0x56   : > { %v522_v49 = vrot.slane %v520_v14, 4  ;;  %v3614_v41 = vrot.slane %v5209_v58, 9  ;;  %4487 = vmatprep.subr.bf16.mxu0 %v4941_v22  ;;  %v5505_v44 = vcombine.low %v1247_v35, %v1250_v4  ;;  %v513_v29 = vor.u32 %v512_v8, %v509_v48 }
  0x57   : > { %v505_v31 = vsel %vm5127_vm2, %v500_v25, %v504_v21  ;;  %v1253_v57 = vrot.slane %v5223_v0, 5  ;;  %v528_v58 = vrot.slane %v526_v61, 5  ;;  %v1256_v55 = vrot.slane %v5226_v1, 5  ;;  %v5519_v25 = vld [vmem:[%s5082_s6 + $0xa8] sm:$0xf] }
  0x58   : > { %v5511_v9 = vcombine.low %v495_v30, %v505_v31  ;;  %v523_v19 = vor.u32 %v522_v49, %v518_v7  ;;  %4456 = vmatmul.mubr.bf16.gmra.mrb[4].mxu0 %v5505_v44  ;;  %v514_v14 = vrot.slane %v513_v29, 4  ;;  %v531_v0 = vshrl.u32 %v5491_v59, 16  ;;  %v4947_v30 = vld [vmem:[%s6054_s1 + $0x1a0] sm:$0xff]   ;;  %v5529_v49 = vld [vmem:[%s5082_s6 + $0xac] sm:$0xf] }
  0x59   : > { %v1254_v21 = vsel %vm5334_vm5, %v3614_v41, %v1253_v57  ;;  %v1255_v35 = vrot.slane %v1253_v57, 4  ;;  %v534_v1 = vshll.u32 %v5491_v59, 16  ;;  %v540_v8 = vshll.u32 %v5494_v63, 16  ;;  %4488 = vmatpush3.bf16.msra.mxu0 %v4941_v22 }
  0x5a   : > { %6084 = vst [vmem:[#allocation10_spill] sm:$0xff] %v5511_v9  ;;  %4232 = vmatmul.mubr.bf16.gmra.mrb[20].mxu1 %v5511_v9  ;;  %v524_v48 = vrot.slane %v523_v19, 4  ;;  %v544_v4 = vshrl.u32 %v5494_v63, 16  ;;  %v519_v61 = vsel %vm5127_vm2, %v514_v14, %v518_v7  ;;  %v533_v31 = vrot.slane %v531_v0, 4  ;;  %4489 = vmatprep.subr.bf16.mxu0 %v4943_v45  ;;  %v5544_v14 = vld [vmem:[%s5082_s6 + $0xb0] sm:$0x1] }
  0x5b   : > { %v1257_v41 = vsel %vm5334_vm5, %v1255_v35, %v1256_v55  ;;  %v550_v29 = vshll.u32 %v5501_v20, 16  ;;  %v536_v9 = vrot.slane %v534_v1, 5  ;;  %v542_v17 = vrot.slane %v540_v8, 5 }
  0x5c   : > { %v529_v57 = vsel %vm5127_vm2, %v524_v48, %v528_v58  ;;  %v5538_v19 = vcombine.low %v1254_v21, %v1257_v41  ;;  %v546_v56 = vrot.slane %v544_v4, 4  ;;  %v3615_v7 = vrot.slane %v5240_v27, 9 }
  0x5d   : > { %v5540_v22 = vcombine.low %v519_v61, %v529_v57  ;;  %v552_v18 = vrot.slane %v550_v29, 5  ;;  %v537_v55 = vor.u32 %v536_v9, %v533_v31  ;;  %v1260_v35 = vrot.slane %v5243_v28, 5  ;;  %4490 = vmatpush3.bf16.msra.mxu0 %v4943_v45  ;;  %v4951_v28 = vld [vmem:[%s6054_s1 + $0x1a8] sm:$0xff]  }
  0x5e   : > { %4459 = vmatprep.mubr.bf16.mxu0 %v5538_v19  ;;  %v1263_v0 = vrot.slane %v5249_v33, 5  ;;  %v555_v58 = vshrl.u32 %v5519_v25, 16  ;;  %v547_v21 = vor.u32 %v546_v56, %v542_v17  ;;  %v558_v48 = vshll.u32 %v5519_v25, 16  ;;  %4491 = vmatprep.subr.bf16.mxu0 %v4947_v30 }
  0x5f   : > { %6085 = vst [vmem:[#allocation11_spill] sm:$0xff] %v5540_v22  ;;  %4235 = vmatprep.mubr.bf16.mxu1 %v5540_v22  ;;  %v564_v1 = vshll.u32 %v5529_v49, 16  ;;  %v568_v27 = vshrl.u32 %v5529_v49, 16  ;;  %v538_v9 = vrot.slane %v537_v55, 4  ;;  %v1261_v33 = vsel %vm5334_vm5, %v3615_v7, %v1260_v35  ;;  %v5566_v22 = vld [vmem:[%s5082_s6 + $0xb4] sm:$0xf] }
  0x60   : > { %v1262_v45 = vrot.slane %v1260_v35, 4  ;;  %v557_v8 = vrot.slane %v555_v58, 4  ;;  %v548_v56 = vrot.slane %v547_v21, 4  ;;  %v560_v4 = vrot.slane %v558_v48, 5  ;;  %v5573_v48 = vld [vmem:[%s5082_s6 + $0xb8] sm:$0xf] }
  0x61   : > { %v566_v61 = vrot.slane %v564_v1, 5  ;;  %v570_v41 = vrot.slane %v568_v27, 4  ;;  %v543_v31 = vsel %vm5127_vm2, %v538_v9, %v542_v17  ;;  %v574_v57 = vshll.u32 %v5544_v14, 16  ;;  %4492 = vmatpush3.bf16.msra.mxu0 %v4947_v30  ;;  %v4955_v17 = vld [vmem:[%s6054_s1 + $0x1b0] sm:$0xff]   ;;  %v5583_v27 = vld [vmem:[%s5082_s6 + $0xbc] sm:$0x1] }
  0x62   : > { %v1264_v29 = vsel %vm5334_vm5, %v1262_v45, %v1263_v0  ;;  %v3616_v55 = vrot.slane %v5277_v5, 9  ;;  %v553_v7 = vsel %vm5127_vm2, %v548_v56, %v552_v18  ;;  %v561_v58 = vor.u32 %v560_v4, %v557_v8  ;;  %4493 = vmatprep.subr.bf16.mxu0 %v4951_v28  ;;  %v4959_v4 = vld [vmem:[%s6054_s1 + $0x1b8] sm:$0xff]  }
  0x63   : > { %v5570_v35 = vcombine.low %v1261_v33, %v1264_v29  ;;  %v571_v21 = vor.u32 %v570_v41, %v566_v61  ;;  %v5578_v0 = vcombine.low %v543_v31, %v553_v7  ;;  %v576_v5 = vrot.slane %v574_v57, 5 }
  0x64   : > { %v1267_v1 = vrot.slane %v5280_v6, 5  ;;  %v1270_v30 = vrot.slane %v5283_v10, 5  ;;  %v562_v18 = vrot.slane %v561_v58, 4  ;;  %v579_v33 = vshrl.u32 %v5566_v22, 16 }
  0x65   : > { %6086 = vst [vmem:[#allocation12_spill] sm:$0xff] %v5578_v0  ;;  %4460 = vmatmul.mubr.bf16.gmra.mrb[8].mxu0 %v5570_v35  ;;  %v572_v9 = vrot.slane %v571_v21, 4  ;;  %v582_v45 = vshll.u32 %v5566_v22, 16  ;;  %4236 = vmatmul.mubr.bf16.gmra.mrb[24].mxu1 %v5578_v0  ;;  %v588_v6 = vshll.u32 %v5573_v48, 16  ;;  %v592_v10 = vshrl.u32 %v5573_v48, 16 }
  0x66   : > { %v1268_v8 = vsel %vm5334_vm5, %v3616_v55, %v1267_v1  ;;  %v1269_v56 = vrot.slane %v1267_v1, 4  ;;  %4494 = vmatpush3.bf16.msra.mxu0 %v4951_v28  ;;  %v567_v41 = vsel %vm5127_vm2, %v562_v18, %v566_v61  ;;  %v581_v29 = vrot.slane %v579_v33, 4 }
  0x67   : > { %v577_v31 = vsel %vm5127_vm2, %v572_v9, %v576_v5  ;;  %v584_v57 = vrot.slane %v582_v45, 5  ;;  %4495 = vmatprep.subr.bf16.mxu0 %v4955_v17  ;;  %v590_v58 = vrot.slane %v588_v6, 5  ;;  %v594_v28 = vrot.slane %v592_v10, 4 }
  0x68   : > { %v5600_v55 = vcombine.low %v567_v41, %v577_v31  ;;  %v1271_v7 = vsel %vm5334_vm5, %v1269_v56, %v1270_v30  ;;  %v598_v0 = vshll.u32 %v5583_v27, 16  ;;  %v3617_v61 = vrot.slane %v5303_v32, 9  ;;  %v5615_v30 = vld [vmem:[%s6054_s1 + $0x1c0] sm:$0xff]  }
  0x69   : > { %v5604_v21 = vcombine.low %v1268_v8, %v1271_v7  ;;  %v585_v1 = vor.u32 %v584_v57, %v581_v29  ;;  %v595_v5 = vor.u32 %v594_v28, %v590_v58  ;;  %v1274_v18 = vrot.slane %v5311_v47, 5 }
  0x6a   : > { %4239 = vmatprep.mubr.bf16.mxu1 %v5600_v55  ;;  %v1277_v9 = vrot.slane %v5317_v50, 5  ;;  %v3618_v33 = vrot.slane %v5345_v40, 9  ;;  %4496 = vmatpush3.bf16.msra.mxu0 %v4955_v17  ;;  %v600_v8 = vrot.slane %v598_v0, 5  ;;  %v1281_v56 = vrot.slane %v5352_v53, 5 }
  0x6b   : > { %4463 = vmatprep.mubr.bf16.mxu0 %v5604_v21  ;;  %v586_v45 = vrot.slane %v585_v1, 4  ;;  %v1284_v6 = vrot.slane %v5360_v62, 5  ;;  %4497 = vmatprep.subr.bf16.mxu0 %v4959_v4  ;;  %v596_v10 = vrot.slane %v595_v5, 4  ;;  %v1275_v50 = vsel %vm5334_vm5, %v3617_v61, %v1274_v18 }
  0x6c   : > { %v1276_v41 = vrot.slane %v1274_v18, 4  ;;  %v3619_v17 = vrot.slane %v5375_v2, 9  ;;  %v1282_v29 = vsel %vm5334_vm5, %v3618_v33, %v1281_v56  ;;  %v1283_v57 = vrot.slane %v1281_v56, 4 }
  0x6d   : > { %v591_v31 = vsel %vm5127_vm2, %v586_v45, %v590_v58  ;;  %v1288_v0 = vrot.slane %v5389_v54, 5  ;;  %v601_v62 = vsel %vm5127_vm2, %v596_v10, %v600_v8  ;;  %v1291_v28 = vrot.slane %v5396_v16, 5 }
  0x6e   : > { %v1278_v7 = vsel %vm5334_vm5, %v1276_v41, %v1277_v9  ;;  %v3620_v1 = vrot.slane %v5413_v38, 9  ;;  %4498 = vmatpush3.bf16.msra.mxu0 %v4959_v4  ;;  %v5634_v61 = vcombine.low %v591_v31, %v601_v62  ;;  %v1285_v5 = vsel %vm5334_vm5, %v1283_v57, %v1284_v6  ;;  %v4950_v57 = vld [vmem:[%s6054_s1 + $0x88] sm:$0xff]  }
  0x6f   : > { %v5636_v58 = vcombine.low %v1275_v50, %v1278_v7  ;;  %4531 = vmatprep.subr.bf16.mxu0 %v5615_v30  ;;  %v5641_v18 = vcombine.low %v1282_v29, %v1285_v5  ;;  %v1290_v33 = vrot.slane %v1288_v0, 4  ;;  %v1295_v45 = vrot.slane %v5433_v3, 5 }
  0x70   : > { %v1298_v9 = vrot.slane %v5439_v36, 5  ;;  %4240 = vmatmul.mubr.bf16.gmra.mrb[28].mxu1 %v5634_v61  ;;  %v6087_v16 = vcombine.low %v5091_v12, %v5094_v13  ;;  %v1289_v4 = vsel %vm5334_vm5, %v3619_v17, %v1288_v0  ;;  %v1302_v6 = vrot.slane %v5455_v34, 5 }
  0x71   : > { %4464 = vmatmul.mubr.bf16.gmra.mrb[12].mxu0 %v5636_v58  ;;  %v1292_v8 = vsel %vm5334_vm5, %v1290_v33, %v1291_v28  ;;  %v1297_v56 = vrot.slane %v1295_v45, 4  ;;  %v1309_v36 = vrot.slane %v5494_v63, 5  ;;  %v1296_v10 = vsel %vm5334_vm5, %v3620_v1, %v1295_v45 }
  0x72   : > { %4259 = vmatprep.mubr.bf16.mxu1 %v6087_v16  ;;  %4467 = vmatprep.mubr.bf16.mxu0 %v5641_v18  ;;  %v5661_v13 = vcombine.low %v1289_v4, %v1292_v8  ;;  %v3621_v50 = vrot.slane %v5452_v24, 9  ;;  %v1305_v41 = vrot.slane %v5479_v42, 5  ;;  %v1304_v17 = vrot.slane %v1302_v6, 4 }
  0x73   : > { %v1299_v12 = vsel %vm5334_vm5, %v1297_v56, %v1298_v9  ;;  %v3622_v31 = vrot.slane %v5491_v59, 9  ;;  %v1311_v0 = vrot.slane %v1309_v36, 4  ;;  %v1312_v62 = vrot.slane %v5501_v20, 5 }
  0x74   : > { %v5666_v29 = vcombine.low %v1296_v10, %v1299_v12  ;;  %v1303_v7 = vsel %vm5334_vm5, %v3621_v50, %v1302_v6  ;;  %v1316_v42 = vrot.slane %v5529_v49, 5  ;;  %v5679_v28 = vcombine.low %v5303_v32, %v5311_v47  ;;  %v4954_v47 = vld [vmem:[%s6054_s1 + $0x90] sm:$0xff]   ;;  %v195_v6 = vld [vmem:[%s5082_s6 + $0xc8] sm:$0x1]  ;;  %v4999_v10 = vld [vmem:[%s5082_s6 + $0x40] sm:$0xf] }
  0x75   : > { %v1306_v20 = vsel %vm5334_vm5, %v1304_v17, %v1305_v41  ;;  %v1310_v1 = vsel %vm5334_vm5, %v3622_v31, %v1309_v36  ;;  %v3623_v5 = vrot.slane %v5519_v25, 9  ;;  %v5690_v33 = vcombine.low %v5345_v40, %v5352_v53  ;;  %v4998_v36 = vld [vmem:[%s5082_s6 + $0x3c] sm:$0xf]  ;;  %v5000_v41 = vld [vmem:[%s5082_s6 + $0x48] sm:$0xf] }
  0x76   : > { %v1313_v32 = vsel %vm5334_vm5, %v1311_v0, %v1312_v62  ;;  %v5701_v45 = vcombine.low %v5375_v2, %v5389_v54  ;;  %v5705_v40 = vcombine.low %v5413_v38, %v5433_v3  ;;  %v5709_v53 = vcombine.low %v5452_v24, %v5455_v34  ;;  %v5729_v24 = vld [vmem:[%s5082_s6 + $0xc4] sm:$0xf]  ;;  %v5001_v17 = vld [vmem:[%s5082_s6 + $0x4c] sm:$0xf] }
  0x77   : > { %v5713_v9 = vcombine.low %v5491_v59, %v5494_v63  ;;  %v5717_v16 = vcombine.low %v5519_v25, %v5529_v49  ;;  %v5719_v4 = vcombine.low %v1303_v7, %v1306_v20  ;;  %v1318_v2 = vrot.slane %v1316_v42, 4  ;;  %v4958_v25 = vld [vmem:[%s6054_s1 + $0x98] sm:$0xff]  }
  0x78   : > { %4260 = vmatmul.mubr.bf16.vlgmr.msra.gmra.mrb[0].mxu1 %v5140_v43  ;;  %v1319_v54 = vrot.slane %v5544_v14, 5  ;;  %v5724_v38 = vcombine.low %v5566_v22, %v5573_v48  ;;  %v5726_v3 = vcombine.low %v1310_v1, %v1313_v32  ;;  %v3624_v34 = vrot.slane %v5566_v22, 9  ;;  %v5743_v14 = vld [vmem:[%s5082_s6 + $0xc0] sm:$0xf] }
  0x79   : > { %4468 = vmatmul.mubr.bf16.gmra.mrb[16].mxu0 %v5661_v13  ;;  %4292 = vmatpush3.bf16.msra.mxu1 %v5404_v52  ;;  %v1323_v52 = vrot.slane %v5573_v48, 5  ;;  %v1326_v63 = vrot.slane %v5583_v27, 5  ;;  %v1317_v49 = vsel %vm5334_vm5, %v3623_v5, %v1316_v42  ;;  %v2203_v48 = vrot.slane %v5729_v24, 5  ;;  %v4962_v27 = vld [vmem:[%s6054_s1 + $0xa0] sm:$0xff]  }
  0x7a   : > { %4263 = vmatprep.mubr.bf16.mxu1 %v5216_v60  ;;  %4471 = vmatprep.mubr.bf16.mxu0 %v5666_v29  ;;  %v1320_v22 = vsel %vm5334_vm5, %v1318_v2, %v1319_v54  ;;  %v5758_v12 = vcombine.low %v4998_v36, %v4999_v10  ;;  %v5764_v31 = vcombine.low %v5000_v41, %v5001_v17  ;;  %v1918_v0 = vshll.u32 %v5743_v14, 16  ;;  %v4966_v54 = vld [vmem:[%s6054_s1 + $0xa8] sm:$0xff]   ;;  %v4970_v36 = vld [vmem:[%s6054_s1 + $0xb0] sm:$0xff]   ;;  %v5003_v10 = vld [vmem:[%s5082_s6 + $0x58] sm:$0xf] }
  0x7b   : > { %4293 = vmatprep.subr.bf16.mxu1 %v4950_v57  ;;  %v1325_v59 = vrot.slane %v1323_v52, 4  ;;  %v1324_v8 = vsel %vm5334_vm5, %v3624_v34, %v1323_v52  ;;  %v5760_v50 = vcombine.low %v1317_v49, %v1320_v22  ;;  %v1924_v62 = vshll.u32 %v5729_v24, 16 }
  0x7c   : > { %v1928_v7 = vshrl.u32 %v5729_v24, 16  ;;  %v3715_v20 = vrot.slane %v5743_v14, 9  ;;  %v2205_v1 = vrot.slane %v2203_v48, 4  ;;  %v2206_v5 = vrot.slane %v195_v6, 5 }
  0x7d   : > { %4294 = vmatpush3.bf16.msra.mxu1 %v4950_v57  ;;  %v1327_v56 = vsel %vm5334_vm5, %v1325_v59, %v1326_v63  ;;  %v1915_v57 = vshrl.u32 %v5743_v14, 16  ;;  %v1926_v52 = vrot.slane %v1924_v62, 5  ;;  %v1934_v63 = vshll.u32 %v195_v6, 16  ;;  %v5002_v6 = vld [vmem:[%s5082_s6 + $0x54] sm:$0xf]  ;;  %v4976_v62 = vld [vmem:[%s6054_s1 + $0xc0] sm:$0xff]  }
  0x7e   : > { %4295 = vmatprep.subr.bf16.mxu1 %v4954_v47  ;;  %v5770_v42 = vcombine.low %v1324_v8, %v1327_v56  ;;  %v1930_v2 = vrot.slane %v1928_v7, 4  ;;  %v2207_v49 = vsel %vm5334_vm5, %v2205_v1, %v2206_v5  ;;  %v5789_v41 = vcombine.low %v5002_v6, %v5003_v10  ;;  %v4967_v7 = vld [vmem:[%s6054_s1 + $0x1c8] sm:$0xff]   ;;  %v4975_v1 = vld [vmem:[%s6054_s1 + $0x1d8] sm:$0xff]   ;;  %v4980_v6 = vld [vmem:[%s6054_s1 + $0xd0] sm:$0xff]  }
  0x7f   : > { %v1917_v32 = vrot.slane %v1915_v57, 4  ;;  %v1936_v56 = vrot.slane %v1934_v63, 5  ;;  %v4983_v10 = vld [vmem:[%s6054_s1 + $0xd8] sm:$0xff]  }
  0x80   : > { %4264 = vmatmul.mubr.bf16.gmra.mrb[4].mxu1 %v5287_v11  ;;  %v1931_v59 = vor.u32 %v1930_v2, %v1926_v52  ;;  %v5006_v2 = vld [vmem:[%s5082_s6] sm:$0xf] }
  0x81   : > { %4472 = vmatmul.mubr.bf16.gmra.mrb[20].mxu0 %v5719_v4  ;;  %4267 = vmatprep.mubr.bf16.mxu1 %v5291_v15 }
  0x82   : > { %4475 = vmatprep.mubr.bf16.mxu0 %v5726_v3  ;;  %4296 = vmatpush3.bf16.msra.mxu1 %v4954_v47  ;;  %v1920_v47 = vrot.slane %v1918_v0, 5  ;;  %v1932_v8 = vrot.slane %v1931_v59, 4  ;;  %v4974_v0 = vld [vmem:[%s6054_s1 + $0xb8] sm:$0xff]   ;;  %v4979_v59 = vld [vmem:[%s6054_s1 + $0x1e8] sm:$0xff]  }
  0x83   : > { %4297 = vmatprep.subr.bf16.mxu1 %v4958_v25 }
  0x84   : > { %v1921_v34 = vor.u32 %v1920_v47, %v1917_v32  ;;  %v4977_v32 = vld [vmem:[%s6054_s1 + $0x1e0] sm:$0xff]   ;;  %v5005_v47 = vld [vmem:[%s5082_s6 + $0x8] sm:$0x1] }
  0x86   : > { %4298 = vmatpush3.bf16.msra.mxu1 %v4958_v25  ;;  %v2204_v25 = vsel %vm5334_vm5, %v3715_v20, %v2203_v48  ;;  %v1922_v22 = vrot.slane %v1921_v34, 4  ;;  %v4971_v20 = vld [vmem:[%s6054_s1 + $0x1d0] sm:$0xff]  }
  0x87   : > { %4299 = vmatprep.subr.bf16.mxu1 %v4962_v27  ;;  %v5791_v17 = vcombine.low %v2204_v25, %v2207_v49  ;;  %v4981_v49 = vld [vmem:[%s6054_s1 + $0x1f0] sm:$0xff]  }
  0x88   : > { %4268 = vmatmul.mubr.bf16.gmra.mrb[8].mxu1 %v5758_v12  ;;  %v1927_v48 = vsel %vm5127_vm2, %v1922_v22, %v1926_v52  ;;  %v1221_v52 = vrot.slane %v5005_v47, 5  ;;  %v6090_v47 = vld [vmem:[#allocation4_spill] sm:$0xff] }
  0x89   : > { %4476 = vmatmul.mubr.bf16.gmra.mrb[24].mxu0 %v5760_v50  ;;  %4271 = vmatprep.mubr.bf16.mxu1 %v5764_v31 }
  0x8a   : > { %4479 = vmatprep.mubr.bf16.mxu0 %v5770_v42  ;;  %4300 = vmatpush3.bf16.msra.mxu1 %v4962_v27  ;;  %v1937_v27 = vsel %vm5127_vm2, %v1932_v8, %v1936_v56  ;;  %v4985_v8 = vld [vmem:[%s6054_s1 + $0x1f8] sm:$0xff]   ;;  %v4987_v56 = vld [vmem:[%s6054_s1 + $0x200] sm:$0xff]  }
  0x8b   : > { %4301 = vmatprep.subr.bf16.mxu1 %v4966_v54  ;;  %v5797_v57 = vcombine.low %v1927_v48, %v1937_v27  ;;  %v5878_v48 = vcombine.low %v5743_v14, %v5729_v24  ;;  %v4988_v27 = vld [vmem:[%s6054_s1 + $0xe8] sm:$0xff]   ;;  %v4990_v24 = vld [vmem:[%s6054_s1 + $0xf0] sm:$0xff]  }
  0x8e   : > { %4302 = vmatpush3.bf16.msra.mxu1 %v4966_v54  ;;  %v3609_v54 = vrot.slane %v5006_v2, 9  ;;  %v4994_v2 = vld [vmem:[%s6054_s1 + $0x220] sm:$0xff]  }
  0x8f   : > { %4303 = vmatprep.subr.bf16.mxu1 %v4970_v36 }
  0x90   : > { %4272 = vmatmul.mubr.bf16.gmra.mrb[12].mxu1 %v5789_v41 }
  0x91   : > { %4480 = vmatmul.mubr.bf16.gmra.mrb[28].mxu0 %v5791_v17  ;;  %4275 = vmatprep.mubr.bf16.mxu1 %v5679_v28 }
  0x92   : > { %4499 = vmatprep.mubr.bf16.mxu0 %v5216_v60  ;;  %4304 = vmatpush3.bf16.msra.mxu1 %v4970_v36  ;;  %v4978_v36 = vld [vmem:[%s6054_s1 + $0xc8] sm:$0xff]  }
  0x93   : > { %4305 = vmatprep.subr.bf16.mxu1 %v4974_v0 }
  0x96   : > { %4306 = vmatpush3.bf16.msra.mxu1 %v4974_v0  ;;  %v5888_v0 = vld [vmem:[%s5082_s6 + $0xcc] sm:$0xf] }
  0x97   : > { %4339 = vmatprep.subr.bf16.mxu1 %v4976_v62 }
  0x98   : > { %4276 = vmatmul.mubr.bf16.gmra.mrb[16].mxu1 %v5690_v33 }
  0x99   : > { %4500 = vmatmul.mubr.bf16.vlgmr.msra.gmra.mrb[0].mxu0 %v5287_v11  ;;  %4279 = vmatprep.mubr.bf16.mxu1 %v5701_v45 }
  0x9a   : > { %4532 = vmatpush3.bf16.msra.mxu0 %v5615_v30  ;;  %4503 = vmatprep.mubr.bf16.mxu0 %v5291_v15  ;;  %v5004_v30 = vld [vmem:[%s5082_s6 + $0x4] sm:$0xf] }
  0x9b   : > { %4533 = vmatprep.subr.bf16.mxu0 %v4967_v7  ;;  %v1218_v5 = vrot.slane %v5004_v30, 5  ;;  %v6088_v30 = vld [vmem:[#allocation2_spill] sm:$0xff] }
  0x9d   : > { %v1220_v34 = vrot.slane %v1218_v5, 4  ;;  %v1219_v63 = vsel %vm5334_vm5, %v3609_v54, %v1218_v5  ;;  %v4991_v5 = vld [vmem:[%s6054_s1 + $0x210] sm:$0xff]   ;;  %v4995_v54 = vld [vmem:[%s6054_s1 + $0x228] sm:$0xff]  }
  0x9e   : > { %4534 = vmatpush3.bf16.msra.mxu0 %v4967_v7  ;;  %v4992_v7 = vld [vmem:[%s6054_s1 + $0xf8] sm:$0xff]  }
  0x9f   : > { %4535 = vmatprep.subr.bf16.mxu0 %v4971_v20  ;;  %v1222_v25 = vsel %vm5334_vm5, %v1220_v34, %v1221_v52  ;;  %v6091_v52 = vld [vmem:[#allocation5_spill] sm:$0xff]  ;;  %v6092_v34 = vld [vmem:[#allocation6_spill] sm:$0xff] }
  0xa0   : > { %4280 = vmatmul.mubr.bf16.gmra.mrb[20].mxu1 %v5705_v40  ;;  %v3641_v22 = vcombine.low %v1219_v63, %v1222_v25  ;;  %v4996_v63 = vld [vmem:[%s6054_s1 + $0x230] sm:$0xff]   ;;  %v4997_v25 = vld [vmem:[%s6054_s1 + $0x238] sm:$0xff]  }
  0xa1   : > { %4504 = vmatmul.mubr.bf16.gmra.mrb[4].mxu0 %v5758_v12  ;;  %4283 = vmatprep.mubr.bf16.mxu1 %v5709_v53 }
  0xa2   : > { %4507 = vmatprep.mubr.bf16.mxu0 %v5764_v31  ;;  %4536 = vmatpush3.bf16.msra.mxu0 %v4971_v20  ;;  %v4989_v20 = vld [vmem:[%s6054_s1 + $0x208] sm:$0xff]  }
  0xa3   : > { %4537 = vmatprep.subr.bf16.mxu0 %v4975_v1 }
  0xa6   : > { %4538 = vmatpush3.bf16.msra.mxu0 %v4975_v1  ;;  %v5007_v1 = vld [vmem:[%s6054_s1 + $0x100] sm:$0xff]  }
  0xa7   : > { %4539 = vmatprep.subr.bf16.mxu0 %v4977_v32 }
  0xa8   : > { %4284 = vmatmul.mubr.bf16.gmra.mrb[24].mxu1 %v5713_v9 }
  0xa9   : > { %4508 = vmatmul.mubr.bf16.gmra.mrb[8].mxu0 %v5789_v41  ;;  %4287 = vmatprep.mubr.bf16.mxu1 %v5717_v16 }
  0xaa   : > { %4511 = vmatprep.mubr.bf16.mxu0 %v5679_v28  ;;  %4540 = vmatpush3.bf16.msra.mxu0 %v4977_v32  ;;  %v4993_v32 = vld [vmem:[%s6054_s1 + $0x218] sm:$0xff]  }
  0xab   : > { %4541 = vmatprep.subr.bf16.mxu0 %v4979_v59 }
  0xae   : > { %4542 = vmatpush3.bf16.msra.mxu0 %v4979_v59  ;;  %v6093_v59 = vld [vmem:[#allocation7_spill] sm:$0xff] }
  0xaf   : > { %4543 = vmatprep.subr.bf16.mxu0 %v4981_v49 }
  0xb0   : > { %4288 = vmatmul.mubr.bf16.gmra.mrb[28].mxu1 %v5724_v38 }
  0xb1   : > { %4512 = vmatmul.mubr.bf16.gmra.mrb[12].mxu0 %v5690_v33  ;;  %4307 = vmatprep.mubr.bf16.mxu1 %v3641_v22  ;;  %v6095_v22 = vld [vmem:[#allocation9_spill] sm:$0xff] }
  0xb2   : > { %4515 = vmatprep.mubr.bf16.mxu0 %v5701_v45  ;;  %4544 = vmatpush3.bf16.msra.mxu0 %v4981_v49  ;;  %v6094_v49 = vld [vmem:[#allocation8_spill] sm:$0xff] }
  0xb3   : > { %4545 = vmatprep.subr.bf16.mxu0 %v4985_v8 }
  0xb6   : > { %4546 = vmatpush3.bf16.msra.mxu0 %v4985_v8  ;;  %v6096_v8 = vld [vmem:[#allocation10_spill] sm:$0xff] }
  0xb7   : > { %4579 = vmatprep.subr.bf16.mxu0 %v4987_v56 }
  0xb8   : > { %4308 = vmatmul.mubr.bf16.vlgmr.msra.gmra.mrb[0].mxu1 %v5382_v39  ;;  %v4986_v39 = vld [vmem:[%s6054_s1 + $0xe0] sm:$0xff]  }
  0xb9   : > { %4516 = vmatmul.mubr.bf16.gmra.mrb[16].mxu0 %v5705_v40  ;;  %4340 = vmatpush3.bf16.msra.mxu1 %v4976_v62  ;;  %v5891_v62 = vld [vmem:[%s5082_s6 + $0xd0] sm:$0xf] }
  0xba   : > { %4311 = vmatprep.mubr.bf16.mxu1 %v5428_v26  ;;  %4519 = vmatprep.mubr.bf16.mxu0 %v5709_v53  ;;  %v3757_v14 = vcombine.low %v5888_v0, %v5891_v62 }
  0xbb   : > { %4341 = vmatprep.subr.bf16.mxu1 %v4978_v36 }
  0xbd   : > { %4342 = vmatpush3.bf16.msra.mxu1 %v4978_v36  ;;  %v2738_v36 = vshll.u32 %v5888_v0, 16 }
  0xbe   : > { %4343 = vmatprep.subr.bf16.mxu1 %v4980_v6 }
  0xc0   : > { %4312 = vmatmul.mubr.bf16.gmra.mrb[4].mxu1 %v5468_v46 }
  0xc1   : > { %4520 = vmatmul.mubr.bf16.gmra.mrb[20].mxu0 %v5713_v9  ;;  %4315 = vmatprep.mubr.bf16.mxu1 %v5505_v44 }
  0xc2   : > { %4523 = vmatprep.mubr.bf16.mxu0 %v5717_v16  ;;  %4344 = vmatpush3.bf16.msra.mxu1 %v4980_v6  ;;  %v2748_v6 = vshrl.u32 %v5891_v62, 16 }
  0xc3   : > { %4345 = vmatprep.subr.bf16.mxu1 %v4983_v10 }
  0xc6   : > { %4346 = vmatpush3.bf16.msra.mxu1 %v4983_v10  ;;  %v6097_v10 = vld [vmem:[#allocation11_spill] sm:$0xff] }
  0xc7   : > { %4347 = vmatprep.subr.bf16.mxu1 %v4986_v39 }
  0xc8   : > { %4316 = vmatmul.mubr.bf16.gmra.mrb[8].mxu1 %v5538_v19 }
  0xc9   : > { %4524 = vmatmul.mubr.bf16.gmra.mrb[24].mxu0 %v5724_v38  ;;  %4319 = vmatprep.mubr.bf16.mxu1 %v5570_v35 }
  0xca   : > { %4527 = vmatprep.mubr.bf16.mxu0 %v5878_v48  ;;  %4348 = vmatpush3.bf16.msra.mxu1 %v4986_v39 }
  0xcb   : > { %4349 = vmatprep.subr.bf16.mxu1 %v4988_v27 }
  0xce   : > { %4350 = vmatpush3.bf16.msra.mxu1 %v4988_v27  ;;  %v2740_v27 = vrot.slane %v2738_v36, 5 }
  0xcf   : > { %4351 = vmatprep.subr.bf16.mxu1 %v4990_v24 }
  0xd0   : > { %4320 = vmatmul.mubr.bf16.gmra.mrb[12].mxu1 %v5604_v21 }
  0xd1   : > { %4528 = vmatmul.mubr.bf16.gmra.mrb[28].mxu0 %v3757_v14  ;;  %4323 = vmatprep.mubr.bf16.mxu1 %v5636_v58  ;;  %v2750_v14 = vrot.slane %v2748_v6, 4 }
  0xd2   : > { %4547 = vmatprep.mubr.bf16.mxu0 %v5204_v51  ;;  %4352 = vmatpush3.bf16.msra.mxu1 %v4990_v24  ;;  %v6089_v51 = vld [vmem:[#allocation3_spill] sm:$0xff] }
  0xd3   : > { %4353 = vmatprep.subr.bf16.mxu1 %v4992_v7 }
  0xd6   : > { %4354 = vmatpush3.bf16.msra.mxu1 %v4992_v7  ;;  %v5009_v7 = vld [vmem:[%s6054_s1 + $0x110] sm:$0xff]  }
  0xd7   : > { %4627 = vmatprep.subr.bf16.mxu1 %v5007_v1 }
  0xd8   : > { %4324 = vmatmul.mubr.bf16.gmra.mrb[16].mxu1 %v5641_v18 }
  0xd9   : > { %4548 = vmatmul.mubr.bf16.vlgmr.msra.gmra.mrb[0].mxu0 %v6088_v30  ;;  %4327 = vmatprep.mubr.bf16.mxu1 %v5661_v13 }
  0xda   : > { %4580 = vmatpush3.bf16.msra.mxu0 %v4987_v56  ;;  %4551 = vmatprep.mubr.bf16.mxu0 %v6089_v51  ;;  %v2735_v56 = vshrl.u32 %v5888_v0, 16 }
  0xdb   : > { %4581 = vmatprep.subr.bf16.mxu0 %v4989_v20 }
  0xdc   : > { %v2737_v39 = vrot.slane %v2735_v56, 4 }
  0xde   : > { %4582 = vmatpush3.bf16.msra.mxu0 %v4989_v20  ;;  %v6098_v20 = vld [vmem:[#allocation12_spill] sm:$0xff] }
  0xdf   : > { %4583 = vmatprep.subr.bf16.mxu0 %v4991_v5 }
  0xe0   : > { %4328 = vmatmul.mubr.bf16.gmra.mrb[20].mxu1 %v5666_v29 }
  0xe1   : > { %4552 = vmatmul.mubr.bf16.gmra.mrb[4].mxu0 %v6090_v47  ;;  %4331 = vmatprep.mubr.bf16.mxu1 %v5719_v4 }
  0xe2   : > { %4555 = vmatprep.mubr.bf16.mxu0 %v6091_v52  ;;  %4584 = vmatpush3.bf16.msra.mxu0 %v4991_v5  ;;  %v5010_v5 = vld [vmem:[%s6054_s1 + $0x118] sm:$0xff]  }
  0xe3   : > { %4585 = vmatprep.subr.bf16.mxu0 %v4993_v32 }
  0xe6   : > { %4586 = vmatpush3.bf16.msra.mxu0 %v4993_v32 }
  0xe7   : > { %4587 = vmatprep.subr.bf16.mxu0 %v4994_v2 }
  0xe8   : > { %4332 = vmatmul.mubr.bf16.gmra.mrb[24].mxu1 %v5726_v3 }
  0xe9   : > { %4556 = vmatmul.mubr.bf16.gmra.mrb[8].mxu0 %v6092_v34  ;;  %4335 = vmatprep.mubr.bf16.mxu1 %v5760_v50 }
  0xea   : > { %4559 = vmatprep.mubr.bf16.mxu0 %v6093_v59  ;;  %4588 = vmatpush3.bf16.msra.mxu0 %v4994_v2 }
  0xeb   : > { %4589 = vmatprep.subr.bf16.mxu0 %v4995_v54 }
  0xee   : > { %4590 = vmatpush3.bf16.msra.mxu0 %v4995_v54  ;;  %v5012_v54 = vld [vmem:[%s6054_s1 + $0x128] sm:$0xff]  }
  0xef   : > { %4591 = vmatprep.subr.bf16.mxu0 %v4996_v63 }
  0xf0   : > { %4336 = vmatmul.mubr.bf16.gmra.mrb[28].mxu1 %v5770_v42 }
  0xf1   : > { %4560 = vmatmul.mubr.bf16.gmra.mrb[12].mxu0 %v6094_v49  ;;  %4355 = vmatprep.mubr.bf16.mxu1 %v5140_v43  ;;  %v2744_v43 = vshll.u32 %v5891_v62, 16 }
  0xf2   : > { %4563 = vmatprep.mubr.bf16.mxu0 %v6095_v22  ;;  %4592 = vmatpush3.bf16.msra.mxu0 %v4996_v63 }
  0xf3   : > { %4593 = vmatprep.subr.bf16.mxu0 %v4997_v25  ;;  %v2746_v24 = vrot.slane %v2744_v43, 5 }
  0xf5   : > { %v2751_v30 = vor.u32 %v2750_v14, %v2746_v24 }
  0xf6   : > { %4594 = vmatpush3.bf16.msra.mxu0 %v4997_v25 }
  0xf7   : > { %v2752_v47 = vrot.slane %v2751_v30, 4 }
  0xf8   : > { %4356 = vmatmul.mubr.bf16.vlgmr.msra.gmra.mrb[0].mxu1 %v5216_v60  ;;  %v5008_v60 = vld [vmem:[%s6054_s1 + $0x108] sm:$0xff]  }
  0xf9   : > { %4564 = vmatmul.mubr.bf16.gmra.mrb[16].mxu0 %v6096_v8  ;;  %4635 = vmatpush3.bf16.msra.mxu1 %v5007_v1  ;;  %v2741_v1 = vor.u32 %v2740_v27, %v2737_v39 }
  0xfa   : > { %4359 = vmatprep.mubr.bf16.mxu1 %v5287_v11  ;;  %4567 = vmatprep.mubr.bf16.mxu0 %v6097_v10  ;;  %v5959_v11 = vld [vmem:[%s5082_s6 + $0xd4] sm:$0x1] }
  0xfb   : > { %4628 = vmatprep.subr.bf16.mxu1 %v5008_v60  ;;  %v2754_v51 = vshll.u32 %v5959_v11, 16  ;;  %v2742_v32 = vrot.slane %v2741_v1, 4 }
  0xfd   : > { %4636 = vmatpush3.bf16.msra.mxu1 %v5008_v60  ;;  %v2756_v52 = vrot.slane %v2754_v51, 5 }
  0xfe   : > { %4629 = vmatprep.subr.bf16.mxu1 %v5009_v7 }
  0xff   : > { %v2757_v2 = vsel %vm5127_vm2, %v2752_v47, %v2756_v52 }
 0x100   : > { %4360 = vmatmul.mubr.bf16.gmra.mrb[4].mxu1 %v5291_v15  ;;  %v5011_v15 = vld [vmem:[%s6054_s1 + $0x120] sm:$0xff]  }
 0x101   : > { %4568 = vmatmul.mubr.bf16.gmra.mrb[20].mxu0 %v6098_v20  ;;  %4363 = vmatprep.mubr.bf16.mxu1 %v5758_v12  ;;  %v2747_v12 = vsel %vm5127_vm2, %v2742_v32, %v2746_v24 }
 0x102   : > { %4571 = vmatprep.mubr.bf16.mxu0 %v5600_v55  ;;  %4637 = vmatpush3.bf16.msra.mxu1 %v5009_v7  ;;  %v3782_v34 = vcombine.low %v2747_v12, %v2757_v2 }
 0x103   : > { %4630 = vmatprep.subr.bf16.mxu1 %v5010_v5 }
 0x106   : > { %4638 = vmatpush3.bf16.msra.mxu1 %v5010_v5 }
 0x107   : > { %4631 = vmatprep.subr.bf16.mxu1 %v5011_v15 }
 0x108   : > { %4364 = vmatmul.mubr.bf16.gmra.mrb[8].mxu1 %v5764_v31  ;;  %v5013_v31 = vld [vmem:[%s6054_s1 + $0x130] sm:$0xff]  }
 0x109   : > { %4572 = vmatmul.mubr.bf16.gmra.mrb[24].mxu0 %v5634_v61  ;;  %4367 = vmatprep.mubr.bf16.mxu1 %v5789_v41 }
 0x10a   : > { %4575 = vmatprep.mubr.bf16.mxu0 %v5797_v57  ;;  %4639 = vmatpush3.bf16.msra.mxu1 %v5011_v15 }
 0x10b   : > { %4632 = vmatprep.subr.bf16.mxu1 %v5012_v54 }
 0x10e   : > { %4640 = vmatpush3.bf16.msra.mxu1 %v5012_v54 }
 0x10f   : > { %4633 = vmatprep.subr.bf16.mxu1 %v5013_v31 }
 0x110   : > { %4368 = vmatmul.mubr.bf16.gmra.mrb[12].mxu1 %v5679_v28 }
 0x111   : > { %4576 = vmatmul.mubr.bf16.gmra.mrb[28].mxu0 %v3782_v34  ;;  %4371 = vmatprep.mubr.bf16.mxu1 %v5690_v33 }
 0x112   : > { %4595 = vmatprep.mubr.bf16.mxu0 %v5428_v26  ;;  %4641 = vmatpush3.bf16.msra.mxu1 %v5013_v31  ;;  %v3023_v26 = vrot.slane %v5891_v62, 5 }
 0x113   : > { %4634 = vmatprep.subr.bf16.mxu1 %v5014_v37 }
 0x116   : > { %4642 = vmatpush3.bf16.msra.mxu1 %v5014_v37 }
 0x118   : > { %4372 = vmatmul.mubr.bf16.gmra.mrb[16].mxu1 %v5701_v45 }
 0x119   : > { %4596 = vmatmul.mubr.bf16.vlgmr.msra.gmra.mrb[0].mxu0 %v5468_v46  ;;  %4375 = vmatprep.mubr.bf16.mxu1 %v5705_v40  ;;  %v3791_v46 = vrot.slane %v5888_v0, 9 }
 0x11a   : > { %4599 = vmatprep.mubr.bf16.mxu0 %v5505_v44  ;;  %v3025_v44 = vrot.slane %v3023_v26, 4 }
 0x120   : > { %4376 = vmatmul.mubr.bf16.gmra.mrb[20].mxu1 %v5709_v53 }
 0x121   : > { %4600 = vmatmul.mubr.bf16.gmra.mrb[4].mxu0 %v5538_v19  ;;  %4379 = vmatprep.mubr.bf16.mxu1 %v5713_v9  ;;  %v3026_v19 = vrot.slane %v5959_v11, 5 }
 0x122   : > { %4603 = vmatprep.mubr.bf16.mxu0 %v5570_v35  ;;  %v3024_v35 = vsel %vm5334_vm5, %v3791_v46, %v3023_v26 }
 0x128   : > { %4380 = vmatmul.mubr.bf16.gmra.mrb[24].mxu1 %v5717_v16 }
 0x129   : > { %4604 = vmatmul.mubr.bf16.gmra.mrb[8].mxu0 %v5604_v21  ;;  %4383 = vmatprep.mubr.bf16.mxu1 %v5724_v38  ;;  %v3027_v21 = vsel %vm5334_vm5, %v3025_v44, %v3026_v19 }
 0x12a   : > { %4607 = vmatprep.mubr.bf16.mxu0 %v5636_v58  ;;  %v3808_v58 = vcombine.low %v3024_v35, %v3027_v21 }
 0x130   : > { %4384 = vmatmul.mubr.bf16.gmra.mrb[28].mxu1 %v5878_v48 }
 0x131   : > { %4608 = vmatmul.mubr.bf16.gmra.mrb[12].mxu0 %v5641_v18  ;;  %4419 = vmatprep.mubr.bf16.mxu1 %v6094_v49 }
 0x132   : > { %4611 = vmatprep.mubr.bf16.mxu0 %v5661_v13 }
 0x138   : > { %4420 = vmatmul.mubr.bf16.vlgmr.msra.gmra.mrb[16].mxu1 %v6095_v22 }
 0x139   : > { %4612 = vmatmul.mubr.bf16.gmra.mrb[16].mxu0 %v5666_v29  ;;  %4423 = vmatprep.mubr.bf16.mxu1 %v6096_v8 }
 0x13a   : > { %4615 = vmatprep.mubr.bf16.mxu0 %v5719_v4 }
 0x140   : > { %4424 = vmatmul.mubr.bf16.gmra.mrb[20].mxu1 %v6097_v10 }
 0x141   : > { %4616 = vmatmul.mubr.bf16.gmra.mrb[20].mxu0 %v5726_v3  ;;  %4427 = vmatprep.mubr.bf16.mxu1 %v6098_v20 }
 0x142   : > { %4619 = vmatprep.mubr.bf16.mxu0 %v5760_v50 }
 0x148   : > { %4428 = vmatmul.mubr.bf16.gmra.mrb[24].mxu1 %v5600_v55 }
 0x149   : > { %4620 = vmatmul.mubr.bf16.gmra.mrb[24].mxu0 %v5770_v42  ;;  %4431 = vmatprep.mubr.bf16.mxu1 %v5634_v61 }
 0x14a   : > { %4623 = vmatprep.mubr.bf16.mxu0 %v5791_v17 }
 0x150   : > { %4432 = vmatmul.mubr.bf16.gmra.mrb[28].mxu1 %v5797_v57 }
 0x151   : > { %4624 = vmatmul.mubr.bf16.gmra.mrb[28].mxu0 %v3808_v58 }
 0x1cb   : > { %v4357_v18 = vpop.f32.mrb[0].mxu1 }
 0x1cc   : > { %v1755_v13 = vpop.f32.mrb[1].mxu1 }
 0x1cd   : > { %v4358_v29 = vpop.f32.mrb[2].mxu1 }
 0x1ce   : > { %v1758_v55 = vpop.f32.mrb[3].mxu1 }
 0x1d3   : > { %v4361_v28 = vpop.f32.mrb[4].mxu1 }
 0x1d4   : > { %v1771_v33 = vpop.f32.mrb[5].mxu1 }
 0x1d5   : > { %v4362_v61 = vpop.f32.mrb[6].mxu1 }
 0x1d6   : > { %v1774_v45 = vpop.f32.mrb[7].mxu1 }
 0x1db   : > { %v4365_v40 = vpop.f32.mrb[8].mxu1 }
 0x1dc   : > { %v1787_v53 = vpop.f32.mrb[9].mxu1 }
 0x1dd   : > { %v4366_v9 = vpop.f32.mrb[10].mxu1 }
 0x1de   : > { %v1790_v16 = vpop.f32.mrb[11].mxu1 }
 0x1e3   : > { %v4369_v4 = vpop.f32.mrb[12].mxu1 }
 0x1e4   : > { %v1803_v23 = vpop.f32.mrb[13].mxu1 }
 0x1e5   : > { %v4370_v38 = vpop.f32.mrb[14].mxu1 }
 0x1e6   : > { %v1806_v3 = vpop.f32.mrb[15].mxu1 }
 0x1ec   : > { %v4597_v50 = vpop.f32.mrb[0].mxu0 }
 0x1ed   : > { %v4643_v42 = vadd.f32 %v4597_v50, %v4357_v18  ;;  %v3131_v41 = vpop.f32.mrb[1].mxu0 }
 0x1ee   : > { %v4644_v17 = vadd.f32 %v3131_v41, %v1755_v13  ;;  %v4598_v57 = vpop.f32.mrb[2].mxu0 }
 0x1ef   : > { %v4645_v48 = vadd.f32 %v4598_v57, %v4358_v29  ;;  %v3134_v0 = vpop.f32.mrb[3].mxu0  ;;  %v3292_v59 = vmax.f32 %v4643_v42, 0.0 }
 0x1f0   : > { %v4646_v62 = vadd.f32 %v3134_v0, %v1758_v55  ;;  %v3290_v25 = vmax.f32 %v4644_v17, 0.0 }
 0x1f1   : > { %v3293_v63 = vmax.f32 %v4645_v48, 0.0 }
 0x1f2   : > { %v3291_v49 = vmax.f32 %v4646_v62, 0.0 }
 0x1f3   : > { %v3892_v22 = vpack.c.bf16 %v3293_v63, %v3292_v59 }
 0x1f4   : > { %v3887_v8 = vpack.c.bf16 %v3291_v49, %v3290_v25  ;;  %v4601_v56 = vpop.f32.mrb[4].mxu0 }
 0x1f5   : > { %3964 = vst [vmem:[%s6032_s26 + $0x8] sm:$0xff] %v3892_v22   ;;  %v4647_v36 = vadd.f32 %v4601_v56, %v4361_v28  ;;  %v3147_v6 = vpop.f32.mrb[5].mxu0 }
 0x1f6   : > { %3888 = vst [vmem:[%s6032_s26] sm:$0xff] %v3887_v8   ;;  %v4648_v43 = vadd.f32 %v3147_v6, %v1771_v33  ;;  %v4602_v10 = vpop.f32.mrb[6].mxu0 }
 0x1f7   : > { %v4649_v60 = vadd.f32 %v4602_v10, %v4362_v61  ;;  %v3150_v39 = vpop.f32.mrb[7].mxu0  ;;  %v3296_v24 = vmax.f32 %v4647_v36, 0.0 }
 0x1f8   : > { %v4650_v27 = vadd.f32 %v3150_v39, %v1774_v45  ;;  %v3294_v7 = vmax.f32 %v4648_v43, 0.0 }
 0x1f9   : > { %v3297_v14 = vmax.f32 %v4649_v60, 0.0 }
 0x1fa   : > { %v3295_v11 = vmax.f32 %v4650_v27, 0.0 }
 0x1fb   : > { %v3902_v20 = vpack.c.bf16 %v3297_v14, %v3296_v24 }
 0x1fc   : > { %v3897_v1 = vpack.c.bf16 %v3295_v11, %v3294_v7  ;;  %v4605_v30 = vpop.f32.mrb[8].mxu0 }
 0x1fd   : > { %3966 = vst [vmem:[%s6032_s26 + $0x18] sm:$0xff] %v3902_v20   ;;  %v4651_v51 = vadd.f32 %v4605_v30, %v4365_v40  ;;  %v3163_v5 = vpop.f32.mrb[9].mxu0 }
 0x1fe   : > { %3965 = vst [vmem:[%s6032_s26 + $0x10] sm:$0xff] %v3897_v1   ;;  %v4652_v32 = vadd.f32 %v3163_v5, %v1787_v53  ;;  %v4606_v47 = vpop.f32.mrb[10].mxu0 }
 0x1ff   : > { %v4653_v52 = vadd.f32 %v4606_v47, %v4366_v9  ;;  %v3166_v15 = vpop.f32.mrb[11].mxu0  ;;  %v3300_v2 = vmax.f32 %v4651_v51, 0.0 }
 0x200   : > { %v4654_v12 = vadd.f32 %v3166_v15, %v1790_v16  ;;  %v3298_v34 = vmax.f32 %v4652_v32, 0.0 }
 0x201   : > { %v3301_v54 = vmax.f32 %v4653_v52, 0.0 }
 0x202   : > { %v3299_v31 = vmax.f32 %v4654_v12, 0.0 }
 0x203   : > { %v3912_v37 = vpack.c.bf16 %v3301_v54, %v3300_v2 }
 0x204   : > { %v3907_v26 = vpack.c.bf16 %v3299_v31, %v3298_v34  ;;  %v4609_v46 = vpop.f32.mrb[12].mxu0 }
 0x205   : > { %3968 = vst [vmem:[%s6032_s26 + $0x28] sm:$0xff] %v3912_v37   ;;  %v4655_v44 = vadd.f32 %v4609_v46, %v4369_v4  ;;  %v3179_v19 = vpop.f32.mrb[13].mxu0 }
 0x206   : > { %3967 = vst [vmem:[%s6032_s26 + $0x20] sm:$0xff] %v3907_v26   ;;  %v4656_v35 = vadd.f32 %v3179_v19, %v1803_v23  ;;  %v4610_v21 = vpop.f32.mrb[14].mxu0 }
 0x207   : > { %v4657_v58 = vadd.f32 %v4610_v21, %v4370_v38  ;;  %v3182_v18 = vpop.f32.mrb[15].mxu0  ;;  %v3304_v29 = vmax.f32 %v4655_v44, 0.0 }
 0x208   : > { %v4658_v13 = vadd.f32 %v3182_v18, %v1806_v3  ;;  %v3302_v28 = vmax.f32 %v4656_v35, 0.0 }
 0x209   : > { %v3305_v55 = vmax.f32 %v4657_v58, 0.0 }
 0x20a   : > { %v3303_v33 = vmax.f32 %v4658_v13, 0.0 }
 0x20b   : > { %v3922_v61 = vpack.c.bf16 %v3305_v55, %v3304_v29  ;;  %v4421_v40 = vpop.f32.mrb[16].mxu1 }
 0x20c   : > { %v3917_v45 = vpack.c.bf16 %v3303_v33, %v3302_v28  ;;  %v4613_v53 = vpop.f32.mrb[16].mxu0  ;;  %v2105_v16 = vpop.f32.mrb[17].mxu1 }
 0x20d   : > { %3970 = vst [vmem:[%s6032_s26 + $0x38] sm:$0xff] %v3922_v61   ;;  %v4659_v9 = vadd.f32 %v4613_v53, %v4421_v40  ;;  %v3195_v4 = vpop.f32.mrb[17].mxu0  ;;  %v4422_v50 = vpop.f32.mrb[18].mxu1 }
 0x20e   : > { %3969 = vst [vmem:[%s6032_s26 + $0x30] sm:$0xff] %v3917_v45   ;;  %v4660_v23 = vadd.f32 %v3195_v4, %v2105_v16  ;;  %v4614_v42 = vpop.f32.mrb[18].mxu0  ;;  %v2108_v3 = vpop.f32.mrb[19].mxu1 }
 0x20f   : > { %v4661_v38 = vadd.f32 %v4614_v42, %v4422_v50  ;;  %v3198_v41 = vpop.f32.mrb[19].mxu0  ;;  %v3308_v57 = vmax.f32 %v4659_v9, 0.0 }
 0x210   : > { %v4662_v17 = vadd.f32 %v3198_v41, %v2108_v3  ;;  %v3306_v0 = vmax.f32 %v4660_v23, 0.0 }
 0x211   : > { %v3309_v48 = vmax.f32 %v4661_v38, 0.0 }
 0x212   : > { %v3307_v62 = vmax.f32 %v4662_v17, 0.0 }
 0x213   : > { %v3932_v59 = vpack.c.bf16 %v3309_v48, %v3308_v57  ;;  %v4425_v25 = vpop.f32.mrb[20].mxu1 }
 0x214   : > { %v3927_v63 = vpack.c.bf16 %v3307_v62, %v3306_v0  ;;  %v4617_v49 = vpop.f32.mrb[20].mxu0  ;;  %v2121_v8 = vpop.f32.mrb[21].mxu1 }
 0x215   : > { %3972 = vst [vmem:[%s6032_s26 + $0x48] sm:$0xff] %v3932_v59   ;;  %v4663_v22 = vadd.f32 %v4617_v49, %v4425_v25  ;;  %v3211_v56 = vpop.f32.mrb[21].mxu0  ;;  %v4426_v6 = vpop.f32.mrb[22].mxu1 }
 0x216   : > { %3971 = vst [vmem:[%s6032_s26 + $0x40] sm:$0xff] %v3927_v63   ;;  %v4664_v36 = vadd.f32 %v3211_v56, %v2121_v8  ;;  %v4618_v43 = vpop.f32.mrb[22].mxu0  ;;  %v2124_v60 = vpop.f32.mrb[23].mxu1 }
 0x217   : > { %v4665_v10 = vadd.f32 %v4618_v43, %v4426_v6  ;;  %v3214_v39 = vpop.f32.mrb[23].mxu0  ;;  %v3312_v24 = vmax.f32 %v4663_v22, 0.0 }
 0x218   : > { %v4666_v27 = vadd.f32 %v3214_v39, %v2124_v60  ;;  %v3310_v7 = vmax.f32 %v4664_v36, 0.0 }
 0x219   : > { %v3313_v14 = vmax.f32 %v4665_v10, 0.0 }
 0x21a   : > { %v3311_v11 = vmax.f32 %v4666_v27, 0.0 }
 0x21b   : > { %v3942_v20 = vpack.c.bf16 %v3313_v14, %v3312_v24  ;;  %v4429_v30 = vpop.f32.mrb[24].mxu1 }
 0x21c   : > { %v3937_v1 = vpack.c.bf16 %v3311_v11, %v3310_v7  ;;  %v4621_v51 = vpop.f32.mrb[24].mxu0  ;;  %v2137_v32 = vpop.f32.mrb[25].mxu1 }
 0x21d   : > { %3974 = vst [vmem:[%s6032_s26 + $0x58] sm:$0xff] %v3942_v20   ;;  %v4667_v5 = vadd.f32 %v4621_v51, %v4429_v30  ;;  %v3227_v47 = vpop.f32.mrb[25].mxu0  ;;  %v4430_v15 = vpop.f32.mrb[26].mxu1 }
 0x21e   : > { %3973 = vst [vmem:[%s6032_s26 + $0x50] sm:$0xff] %v3937_v1   ;;  %v4668_v52 = vadd.f32 %v3227_v47, %v2137_v32  ;;  %v4622_v12 = vpop.f32.mrb[26].mxu0  ;;  %v2140_v54 = vpop.f32.mrb[27].mxu1 }
 0x21f   : > { %v4669_v2 = vadd.f32 %v4622_v12, %v4430_v15  ;;  %v3230_v34 = vpop.f32.mrb[27].mxu0  ;;  %v3316_v37 = vmax.f32 %v4667_v5, 0.0 }
 0x220   : > { %v4670_v31 = vadd.f32 %v3230_v34, %v2140_v54  ;;  %v3314_v46 = vmax.f32 %v4668_v52, 0.0 }
 0x221   : > { %v3317_v26 = vmax.f32 %v4669_v2, 0.0 }
 0x222   : > { %v3315_v44 = vmax.f32 %v4670_v31, 0.0 }
 0x223   : > { %v3952_v19 = vpack.c.bf16 %v3317_v26, %v3316_v37  ;;  %v4433_v21 = vpop.f32.mrb[28].mxu1 }
 0x224   : > { %v3947_v35 = vpack.c.bf16 %v3315_v44, %v3314_v46  ;;  %v4625_v58 = vpop.f32.mrb[28].mxu0  ;;  %v2153_v13 = vpop.f32.mrb[29].mxu1 }
 0x225   : > { %3976 = vst [vmem:[%s6032_s26 + $0x68] sm:$0xff] %v3952_v19   ;;  %v4671_v18 = vadd.f32 %v4625_v58, %v4433_v21  ;;  %v3243_v29 = vpop.f32.mrb[29].mxu0  ;;  %v4434_v28 = vpop.f32.mrb[30].mxu1 }
 0x226   : > { %3975 = vst [vmem:[%s6032_s26 + $0x60] sm:$0xff] %v3947_v35   ;;  %v4672_v55 = vadd.f32 %v3243_v29, %v2153_v13  ;;  %v4626_v33 = vpop.f32.mrb[30].mxu0  ;;  %v2156_v45 = vpop.f32.mrb[31].mxu1 }
 0x227   : > { %v4673_v61 = vadd.f32 %v4626_v33, %v4434_v28  ;;  %v3246_v40 = vpop.f32.mrb[31].mxu0  ;;  %v3320_v9 = vmax.f32 %v4671_v18, 0.0 }
 0x228   : > { %v4674_v53 = vadd.f32 %v3246_v40, %v2156_v45  ;;  %v3318_v4 = vmax.f32 %v4672_v55, 0.0 }
 0x229   : > { %v3321_v16 = vmax.f32 %v4673_v61, 0.0 }
 0x22a   : > { %v3319_v23 = vmax.f32 %v4674_v53, 0.0 }
 0x22b   : > { %v3962_v50 = vpack.c.bf16 %v3321_v16, %v3320_v9 }
 0x22c   : > { %v3957_v42 = vpack.c.bf16 %v3319_v23, %v3318_v4 }
 0x22d   : > { %3978 = vst [vmem:[%s6032_s26 + $0x78] sm:$0xff] %v3962_v50  }
 0x22e   : > { %3977 = vst [vmem:[%s6032_s26 + $0x70] sm:$0xff] %v3957_v42  }
 0x22f PF: > { %s12_s9 = sadd.s32 1, %s5021_s9  }
 0x230   : > { %p9_p4 = scmp.ge.s32.totalorder %s12_s9, 4  }
 0x232   :  { %11 = sbr.rel (!%p9_p4) target bundleno = 1 (0x1), region = 66 }

// kernel: bayesian_resnet_split_forward.9
= control target key start
LH: loop header
LB: loop body
LE: loop exit
PB: predicated region body
PF: predicated region fallthrough
CT: control target
= control target key end

     0   :  { %v274_v1 = vmov 0.0   ;;  %vm275_vm0 = vmmov 0   ;;  %s356_s0 = inlined_call_operand.vmem [shape: f32[2,128], index: 0, kind: input, shape index: {}]   ;;  %s357_s1 = inlined_call_operand.vmem [shape: bf16[128,128], index: 1, kind: input, shape index: {}]   ;;  %s358_s2 = inlined_call_operand.vmem [shape: f32[1,128], index: 2, kind: input, shape index: {}]   ;;  %s359_s3 = inlined_call_operand.vmem [shape: f32[2,128], index: 3, kind: input, shape index: {}]   ;;  %s360_s4 = inlined_call_operand.vmem [shape: f32[1,128], index: 4, kind: input, shape index: {}]   ;;  %s361_s5 = inlined_call_operand.hbm [shape: f32[1,1], index: 5, kind: output, shape index: {}]  }
   0x1   :  { %v238_v0 = vld [vmem:[%s357_s1] sm:$0xff]   ;;  %212 = vmatprep.subr.bf16.mxu0 %v274_v1  ;;  %v239_v2 = vld [vmem:[%s357_s1 + $0x8] sm:$0xff]   ;;  %228 = vmatprep.mubr.msk.bf16.mxu0 %vm275_vm0, %v274_v1  ;;  %v240_v3 = vld [vmem:[%s357_s1 + $0x10] sm:$0xff]  }
   0x2   :  { %213 = vmatpush3.bf16.msra.mxu0 %v238_v0 }
   0x3   :  { %214 = vmatprep.subr.bf16.mxu0 %v274_v1 }
   0x6   :  { %215 = vmatpush3.bf16.msra.mxu0 %v239_v2 }
   0x7   :  { %216 = vmatprep.subr.bf16.mxu0 %v274_v1 }
   0x8   :  { %10 = vsyncpa [#allocation3], 0  ;;  %v241_v4 = vld [vmem:[%s357_s1 + $0x18] sm:$0xff]   ;;  %v242_v5 = vld [vmem:[%s357_s1 + $0x20] sm:$0xff]   ;;  %v138_v11 = vlaneseq  ;;  %v276_v15 = vmov 0   ;;  %vm144_vm3 = vcmask 1041408  }
   0x9   :  { %v243_v6 = vld [vmem:[%s357_s1 + $0x28] sm:$0xff]   ;;  %v244_v7 = vld [vmem:[%s357_s1 + $0x30] sm:$0xff]   ;;  %v245_v8 = vld [vmem:[%s357_s1 + $0x38] sm:$0xff]   ;;  %vm163_vm4 = vcmask 1024   ;;  %vm178_vm5 = vcmask 0  }
   0xa   :  { %217 = vmatpush3.bf16.msra.mxu0 %v240_v3  ;;  %v22_v9 = vld [vmem:[%s356_s0] sm:$0x3]  ;;  %v139_v13 = vshrl.u32 %v138_v11, 7 }
   0xb   :  { %218 = vmatprep.subr.bf16.mxu0 %v274_v1  ;;  %v23_v10 = vpack.c.bf16 %v22_v9, %v22_v9  ;;  %v135_v12 = vld [vmem:[%s360_s4] sm:$0x1] }
   0xc   :  { %vm136_vm1 = vcmp.gt.f32.partialorder %v135_v12, 0.0  ;;  %v140_v14 = vsub.s32 0, %v139_v13  ;;  %v194_v18 = vld [vmem:[%s358_s2] ss:$0 sm:$0xff]  ;;  %s277_s2 = smov [#allocation2]  }
   0xd   :  { %v137_v16 = vsel %vm136_vm1, 1, %v276_v15  ;;  %v157_v22 = vld [vmem:[%s359_s3] sm:$0x3]  ;;  %s186_s3 = sshll.u32 %s277_s2, 4  ;;  %s187_s3 = int_to_ptr.vmem [resolvable:$true] %s186_s3 }
   0xe   :  { %219 = vmatpush3.bf16.msra.mxu0 %v241_v4  ;;  %v141_v17 = vrot.slane %v137_v16, %v140_v14  ;;  %s250_s16 = scalar_lea.vmem %s187_s3, 16  ;;  %s254_s17 = scalar_lea.vmem %s187_s3, 32 }
   0xf   :  { %220 = vmatprep.subr.bf16.mxu0 %v274_v1  ;;  %p251_p0 = scmp.ne.s32.totalorder %s187_s3, %s250_s16  ;;  %p255_p1 = scmp.lt.s32.totalorder %s187_s3, %s187_s3 }
  0x10   :  { %vm142_vm2 = vcmp.eq.s32.totalorder %v141_v17, 1  ;;  %p256_p2 = scmp.lt.s32.totalorder %s254_s17, %s250_s16 }
  0x12   :  { %221 = vmatpush3.bf16.msra.mxu0 %v242_v5  ;;  %p257_p3 = por %p256_p2, %p255_p1 }
  0x13   :  { %222 = vmatprep.subr.bf16.mxu0 %v274_v1 }
  0x14   :  { %p258_p4 = pnand %p257_p3, %p251_p0 }
  0x16   :  { %223 = vmatpush3.bf16.msra.mxu0 %v243_v6 }
  0x17   :  { %224 = vmatprep.subr.bf16.mxu0 %v274_v1 }
  0x1a   :  { %225 = vmatpush3.bf16.msra.mxu0 %v244_v7 }
  0x1b   :  { %226 = vmatprep.subr.bf16.mxu0 %v274_v1 }
  0x1e   :  { %227 = vmatpush3.bf16.msra.mxu0 %v245_v8 }
  0x21   :  { %229 = vmatmul.mubr.bf16.vlgmr.msra.gmra.mrb[0].mxu0 %v23_v10 }
  0xf4   :  { %v129_v19 = vpop.f32.mrb[0].mxu0 }
  0xf5   :  { %v130_v20 = vadd.f32 %v194_v18, %v129_v19  ;;  %v230_v21 = vpop.f32.mrb[1].mxu0 }
  0xf6   :  { %v132_v23 = vpop.f32.mrb[2].mxu0 }
  0xf7   :  { %v231_v24 = vpop.f32.mrb[3].mxu0  ;;  %v143_v25 = vsel %vm142_vm2, %v130_v20, -1e+30 }
  0xf8   :  { %v145_v26 = vsel %vm144_vm3, %v143_v25, -inf  ;;  %v158_v27 = vmul.f32 %v157_v22, %v143_v25 }
  0xf9   :  { %146 = vmax.xlane.f32.xlu0 %v145_v26 }
  0xfa   :  { %v159_v28 = vsel %vm144_vm3, %v158_v27, 0.0 }
  0xfb   :  { %160 = vadd.xlane.f32.xlu1 %v159_v28 }
 0x186   :  { %v147_v29 = vpop.xlane.xlu0 %146 }
 0x187   :  { %v148_v30 = vsub.f32 %v143_v25, %v147_v29 }
 0x188   :  { %v161_v38 = vpop.xlane.xlu1 %160 }
 0x189   :  { %v149_v31 = vmul.f32 1.442695, %v148_v30 }
 0x18b   :  { %246 = vpow2.f32 %v149_v31 }
 0x195   :  { %v247_v32 = vpop.eup %246 }
 0x196   :  { %v151_v33 = vsel %vm144_vm3, %v247_v32, 0.0 }
 0x197   :  { %152 = vadd.xlane.f32.xlu0 %v151_v33 }
 0x224   :  { %v153_v34 = vpop.xlane.xlu0 %152 }
 0x225   :  { %248 = vlog2.f32 %v153_v34 }
 0x22f   :  { %v249_v35 = vpop.eup %248 }
 0x230   :  { %v155_v36 = vmul.f32 0.6931472, %v249_v35 }
 0x232   :  { %v156_v37 = vadd.f32 %v155_v36, %v147_v29 }
 0x234   :  { %v162_v39 = vsub.f32 %v156_v37, %v161_v38 }
 0x236   :  { %v164_v40 = vsel %vm163_vm4, %v162_v39, 0.0 }
 0x237   :  { %165 = vadd.xlane.f32.xlu1 %v164_v40 }
 0x2c4   :  { %v166_v41 = vpop.xlane.xlu1 %165 }
 0x2c5   :  { %v167_v42 = vrot.slane %v166_v41, 4 }
 0x2c7   :  { %v168_v43 = vadd.f32 %v167_v42, %v166_v41 }
 0x2c9   :  { %v169_v44 = vrot.slane %v168_v43, 2 }
 0x2cb   :  { %v170_v45 = vadd.f32 %v169_v44, %v168_v43 }
 0x2cd   :  { %v171_v46 = vrot.slane %v170_v45, 1 }
 0x2cf   :  { %v172_v47 = vadd.f32 %v171_v46, %v170_v45 }
 0x2d1   :  { %232 = vpush %v172_v47 }
 0x302   :  { %s233_s4 = spop %232 }
 0x303   :  { %s176_s15 = smul.f32 0.5, %s233_s4 }
 0x305   :  { %v177_v48 = vstv %s176_s15 }
 0x306   :  { %179 = vst.msk [vmem:[#allocation2] sm:$0x1] %vm178_vm5, %v177_v48 }
 0x307   :  { %261 = shalt.err (!%p258_p4)
}
 0x308   :  { %s262_s20 = scalar_lea.hbm %s361_s5, 16 }
 0x309   :  { %p263_p5 = scmp.ne.s32.totalorder %s361_s5, %s262_s20  ;;  %p266_p6 = scmp.lt.u32.totalorder %s262_s20, %s361_s5 }
 0x30b   :  { %p268_p7 = pnand %p266_p6, %p263_p5 }
 0x30d   :  { %271 = shalt.err (!%p268_p7)
}
 0x30e   :  { %189 = dma.vmem_to_hbm [thread:$0]  %s187_s3, 16, %s361_s5, [#allocation3]  }
 0x30f   :  { %272 = dma.done.wait [#allocation3], 16  }
 0x310   :  { %273 = vsyncadd [#allocation3], 4294967280 }
 0x311   :  { %193 = vsyncpa [#allocation3], 1 }

// kernel: bayesian_resnet_split_forward.8
= control target key start
LH: loop header
LB: loop body
LE: loop exit
PB: predicated region body
PF: predicated region fallthrough
CT: control target
= control target key end

     0   :  { %s4995_s12 = smov 0   ;;  %s6035_s0 = inlined_call_operand.vmem [shape: bf16[2,18,18,128], index: 0, kind: input, shape index: {}]   ;;  %s6036_s1 = inlined_call_operand.vmem [shape: bf16[9,128,128], index: 1, kind: input, shape index: {}]   ;;  %s6037_s2 = inlined_call_operand.vmem [shape: bf16[2,16,16,128], index: 2, kind: input, shape index: {}]   ;;  %s6038_s3 = inlined_call_operand.vmem [shape: f32[2,8,128], index: 3, kind: output, shape index: {}]  }
   0x1 LB: > { %s3568_s13 = sadd.s32 4294967295, %s4973_s12   ;;  %p3572_p0 = scmp.ge.s32.totalorder %s4973_s12, 1  ;;  %s4973_s12 = sphi %s4995_s12, %s13_s12  }
   0x2   : > { %p147_p1 = scmp.lt.s32.totalorder %s4973_s12, 3 }
   0x4   : > { %p148_p2 = pnand %p3572_p0, %p147_p1 }
   0x6   : > { %151 = sbr.rel (%p148_p2) target bundleno = 579 (0x243), region = 32 }
   0xd   : > { %v4860_v0 = vld [vmem:[%s6036_s1 + $0x40] sm:$0xff]   ;;  %p175_p3 = scmp.lt.s32.totalorder %s3568_s13, 1  ;;  %v4862_v2 = vld [vmem:[%s6036_s1 + $0x48] sm:$0xff]   ;;  %v4864_v4 = vld [vmem:[%s6036_s1 + $0x50] sm:$0xff]   ;;  %vm260_vm0 = vsmask.f32 3328 }
   0xe   : > { %v4861_v1 = vld [vmem:[%s6036_s1 + $0x100] sm:$0xff]   ;;  %4147 = vmatprep.subr.bf16.mxu1 %v4860_v0  ;;  %v4863_v3 = vld [vmem:[%s6036_s1 + $0x108] sm:$0xff]   ;;  %v4865_v5 = vld [vmem:[%s6036_s1 + $0x110] sm:$0xff]   ;;  %vm261_vm1 = vsmask.f32 7440  ;;  %vm1258_vm3 = vcmask 1042432  }
   0xf   : > { %4339 = vmatprep.subr.bf16.mxu0 %v4861_v1  ;;  %4148 = vmatpush3.bf16.msra.mxu1 %v4860_v0  ;;  %s6083_s13 = smov (!%p175_p3, %s3568_s13), 1  ;;  %v4866_v6 = vld [vmem:[%s6036_s1 + $0x58] sm:$0xff]   ;;  %v4868_v8 = vld [vmem:[%s6036_s1 + $0x60] sm:$0xff]   ;;  %v4870_v10 = vld [vmem:[%s6036_s1 + $0x68] sm:$0xff]   ;;  %vm1259_vm4 = vcmask 1046532  }
  0x10   : > { %4340 = vmatpush3.bf16.msra.mxu0 %v4861_v1  ;;  %4149 = vmatprep.subr.bf16.mxu1 %v4862_v2  ;;  %v4867_v7 = vld [vmem:[%s6036_s1 + $0x118] sm:$0xff]   ;;  %s4851_s30 = smul.u32 216, %s6083_s13  ;;  %v4869_v9 = vld [vmem:[%s6036_s1 + $0x120] sm:$0xff]   ;;  %v4871_v11 = vld [vmem:[%s6036_s1 + $0x128] sm:$0xff]   ;;  %s3851_s5 = sshll.u32 %s6083_s13, 7 }
  0x11   : > { %4341 = vmatprep.subr.bf16.mxu0 %v4863_v3  ;;  %v4872_v17 = vld [vmem:[%s6036_s1 + $0x70] sm:$0xff]   ;;  %v4874_v36 = vld [vmem:[%s6036_s1 + $0x78] sm:$0xff]   ;;  %vm5084_vm2 = vmor %vm260_vm0, %vm261_vm1  ;;  %s6001_s8 = scalar_lea.vmem %s6037_s2, %s3851_s5  ;;  %s3576_s9 = sshll.u32 %s6083_s13, 3 }
  0x12   : > { %s5039_s10 = scalar_lea.vmem %s6035_s0, %s4851_s30  ;;  %v4873_v31 = vld [vmem:[%s6036_s1 + $0x130] sm:$0xff]   ;;  %v4875_v53 = vld [vmem:[%s6036_s1 + $0x138] sm:$0xff]   ;;  %v4876_v1 = vld [vmem:[%s6036_s1] sm:$0xff]   ;;  %s188_s15 = scalar_lea.vmem %s6038_s3, %s3576_s9 }
  0x13   : > { %4150 = vmatpush3.bf16.msra.mxu1 %v4862_v2  ;;  %v5048_v12 = vld [vmem:[%s5039_s10] sm:$0xf]  ;;  %v5051_v13 = vld [vmem:[%s5039_s10 + $0x4] sm:$0xf]  ;;  %v192_v14 = vld [vmem:[%s5039_s10 + $0x8] sm:$0x1] }
  0x14   : > { %4342 = vmatpush3.bf16.msra.mxu0 %v4863_v3  ;;  %4151 = vmatprep.subr.bf16.mxu1 %v4864_v4  ;;  %v264_v15 = vshrl.u32 %v5048_v12, 16  ;;  %v267_v16 = vshll.u32 %v5048_v12, 16  ;;  %v273_v18 = vshll.u32 %v5051_v13, 16  ;;  %v277_v19 = vshrl.u32 %v5051_v13, 16  ;;  %v5062_v21 = vld [vmem:[%s5039_s10 + $0xc] sm:$0xf]  ;;  %vm5291_vm5 = vmor %vm1258_vm3, %vm1259_vm4 }
  0x15   : > { %4343 = vmatprep.subr.bf16.mxu0 %v4865_v5  ;;  %v283_v20 = vshll.u32 %v192_v14, 16  ;;  %v5065_v24 = vld [vmem:[%s5039_s10 + $0x10] sm:$0xf]  ;;  %v5068_v25 = vld [vmem:[%s5039_s10 + $0x14] sm:$0x1]  ;;  %v288_v30 = vshrl.u32 %v5062_v21, 16 }
  0x16   : > { %v266_v22 = vrot.slane %v264_v15, 4  ;;  %v269_v23 = vrot.slane %v267_v16, 5  ;;  %v275_v27 = vrot.slane %v273_v18, 5  ;;  %v279_v28 = vrot.slane %v277_v19, 4  ;;  %v5090_v41 = vld [vmem:[%s5039_s10 + $0x18] sm:$0xf] }
  0x17   : > { %4152 = vmatpush3.bf16.msra.mxu1 %v4864_v4  ;;  %v285_v29 = vrot.slane %v283_v20, 5  ;;  %v291_v33 = vshll.u32 %v5062_v21, 16  ;;  %v297_v34 = vshll.u32 %v5065_v24, 16  ;;  %v301_v35 = vshrl.u32 %v5065_v24, 16  ;;  %v5093_v42 = vld [vmem:[%s5039_s10 + $0x1c] sm:$0xf] }
  0x18   : > { %4344 = vmatpush3.bf16.msra.mxu0 %v4865_v5  ;;  %4153 = vmatprep.subr.bf16.mxu1 %v4866_v6  ;;  %v270_v32 = vor.u32 %v269_v23, %v266_v22  ;;  %v280_v38 = vor.u32 %v279_v28, %v275_v27  ;;  %v290_v39 = vrot.slane %v288_v30, 4  ;;  %v307_v40 = vshll.u32 %v5068_v25, 16  ;;  %v5100_v48 = vld [vmem:[%s5039_s10 + $0x20] sm:$0x1]  ;;  %v5117_v3 = vld [vmem:[%s5039_s10 + $0x24] sm:$0xf] }
  0x19   : > { %4345 = vmatprep.subr.bf16.mxu0 %v4867_v7  ;;  %v5097_v43 = vcombine.low %v5062_v21, %v5065_v24  ;;  %v293_v45 = vrot.slane %v291_v33, 5  ;;  %v299_v46 = vrot.slane %v297_v34, 5  ;;  %v303_v47 = vrot.slane %v301_v35, 4  ;;  %v5132_v14 = vld [vmem:[%s5039_s10 + $0x2c] sm:$0x1]  ;;  %v4966_v37 = vld [vmem:[%s6036_s1 + $0x138] sm:$0xff]  }
  0x1a   : > { %v271_v44 = vrot.slane %v270_v32, 4  ;;  %v281_v49 = vrot.slane %v280_v38, 4  ;;  %v309_v50 = vrot.slane %v307_v40, 5  ;;  %v312_v51 = vshrl.u32 %v5090_v41, 16  ;;  %v5137_v22 = vld [vmem:[%s5039_s10 + $0x30] sm:$0xf] }
  0x1b   : > { %4154 = vmatpush3.bf16.msra.mxu1 %v4866_v6  ;;  %v315_v52 = vshll.u32 %v5090_v41, 16  ;;  %v294_v55 = vor.u32 %v293_v45, %v290_v39  ;;  %v304_v56 = vor.u32 %v303_v47, %v299_v46  ;;  %v321_v57 = vshll.u32 %v5093_v42, 16  ;;  %v5142_v30 = vld [vmem:[%s5039_s10 + $0x34] sm:$0xf]  ;;  %v4879_v34 = vld [vmem:[%s6036_s1 + $0x8] sm:$0xff]  }
  0x1c   : > { %4346 = vmatpush3.bf16.msra.mxu0 %v4867_v7  ;;  %4155 = vmatprep.subr.bf16.mxu1 %v4868_v8  ;;  %v276_v54 = vsel %vm5084_vm2, %v271_v44, %v275_v27  ;;  %v286_v58 = vsel %vm5084_vm2, %v281_v49, %v285_v29  ;;  %v314_v59 = vrot.slane %v312_v51, 4  ;;  %v325_v61 = vshrl.u32 %v5093_v42, 16  ;;  %v5151_v35 = vld [vmem:[%s5039_s10 + $0x38] sm:$0x1] }
  0x1d   : > { %4347 = vmatprep.subr.bf16.mxu0 %v4869_v9  ;;  %v317_v60 = vrot.slane %v315_v52, 5  ;;  %v3593_v62 = vcombine.low %v276_v54, %v286_v58  ;;  %v295_v63 = vrot.slane %v294_v55, 4  ;;  %v305_v0 = vrot.slane %v304_v56, 4  ;;  %v5166_v58 = vld [vmem:[%s5039_s10 + $0x3c] sm:$0xf] }
  0x1e   : > { %v323_v2 = vrot.slane %v321_v57, 5  ;;  %v327_v5 = vrot.slane %v325_v61, 4  ;;  %v331_v6 = vshll.u32 %v5100_v48, 16  ;;  %v1280_v7 = vrot.slane %v5100_v48, 5 }
  0x1f   : > { %4156 = vmatpush3.bf16.msra.mxu1 %v4868_v8  ;;  %v318_v4 = vor.u32 %v317_v60, %v314_v59  ;;  %v4877_v8 = vld [vmem:[%s6036_s1 + $0x140] sm:$0xff]   ;;  %4163 = vmatprep.mubr.bf16.mxu1 %v3593_v62  ;;  %v336_v15 = vshrl.u32 %v5117_v3, 16  ;;  %v339_v16 = vshll.u32 %v5117_v3, 16  ;;  %v355_v33 = vshll.u32 %v5132_v14, 16  ;;  %v4882_v59 = vld [vmem:[%s6036_s1 + $0x10] sm:$0xff]  }
  0x20   : > { %4348 = vmatpush3.bf16.msra.mxu0 %v4869_v9  ;;  %4157 = vmatprep.subr.bf16.mxu1 %v4870_v10  ;;  %v5125_v9 = vld [vmem:[%s5039_s10 + $0x28] sm:$0xf]  ;;  %v328_v19 = vor.u32 %v327_v5, %v323_v2  ;;  %v333_v20 = vrot.slane %v331_v6, 5  ;;  %v363_v44 = vshll.u32 %v5137_v22, 16  ;;  %v373_v56 = vshrl.u32 %v5142_v30, 16 }
  0x21   : > { %4349 = vmatprep.subr.bf16.mxu0 %v4871_v11  ;;  %v319_v18 = vrot.slane %v318_v4, 4  ;;  %v338_v23 = vrot.slane %v336_v15, 4  ;;  %v341_v27 = vrot.slane %v339_v16, 5  ;;  %v345_v28 = vshll.u32 %v5125_v9, 16  ;;  %v4880_v16 = vld [vmem:[%s6036_s1 + $0x150] sm:$0xff]  }
  0x22   : > { %v349_v29 = vshrl.u32 %v5125_v9, 16  ;;  %v329_v32 = vrot.slane %v328_v19, 4  ;;  %v357_v47 = vrot.slane %v355_v33, 5  ;;  %v365_v54 = vrot.slane %v363_v44, 5  ;;  %v5206_v33 = vld [vmem:[%s5039_s10 + $0x50] sm:$0x1] }
  0x23   : > { %4158 = vmatpush3.bf16.msra.mxu1 %v4870_v10  ;;  %v300_v10 = vsel %vm5084_vm2, %v295_v63, %v299_v46  ;;  %v342_v38 = vor.u32 %v341_v27, %v338_v23  ;;  %v347_v39 = vrot.slane %v345_v28, 5  ;;  %v4878_v46 = vld [vmem:[%s6036_s1 + $0x148] sm:$0xff]   ;;  %v379_v57 = vshll.u32 %v5151_v35, 16 }
  0x24   : > { %4350 = vmatpush3.bf16.msra.mxu0 %v4871_v11  ;;  %4159 = vmatprep.subr.bf16.mxu1 %v4872_v17  ;;  %v310_v11 = vsel %vm5084_vm2, %v305_v0, %v309_v50  ;;  %v351_v40 = vrot.slane %v349_v29, 4  ;;  %v334_v45 = vsel %vm5084_vm2, %v329_v32, %v333_v20  ;;  %v369_v50 = vshll.u32 %v5142_v30, 16  ;;  %v5180_v0 = vld [vmem:[%s5039_s10 + $0x40] sm:$0xf]  ;;  %v5197_v27 = vld [vmem:[%s5039_s10 + $0x48] sm:$0xf] }
  0x25   : > { %4351 = vmatprep.subr.bf16.mxu0 %v4873_v31  ;;  %v343_v52 = vrot.slane %v342_v38, 4  ;;  %v5173_v60 = vcombine.low %v5090_v41, %v5093_v42  ;;  %v375_v4 = vrot.slane %v373_v56, 4  ;;  %v381_v5 = vrot.slane %v379_v57, 5  ;;  %v5200_v28 = vld [vmem:[%s5039_s10 + $0x4c] sm:$0xf] }
  0x26   : > { %v371_v55 = vrot.slane %v369_v50, 5  ;;  %v387_v6 = vshll.u32 %v5166_v58, 16  ;;  %v417_v44 = vshll.u32 %v5200_v28, 16  ;;  %v421_v50 = vshrl.u32 %v5200_v28, 16 }
  0x27   : > { %4160 = vmatpush3.bf16.msra.mxu1 %v4872_v17  ;;  %v3594_v17 = vcombine.low %v300_v10, %v310_v11  ;;  %v348_v61 = vsel %vm5084_vm2, %v343_v52, %v347_v39  ;;  %v393_v10 = vshll.u32 %v5180_v0, 16 }
  0x28   : > { %4352 = vmatpush3.bf16.msra.mxu0 %v4873_v31  ;;  %4161 = vmatprep.subr.bf16.mxu1 %v4874_v36  ;;  %v324_v31 = vsel %vm5084_vm2, %v319_v18, %v323_v2  ;;  %v384_v2 = vshrl.u32 %v5166_v58, 16  ;;  %v376_v19 = vor.u32 %v375_v4, %v371_v55  ;;  %v389_v20 = vrot.slane %v387_v6, 5  ;;  %v5237_v6 = vld [vmem:[%s5039_s10 + $0x58] sm:$0xf] }
  0x29   : > { %4353 = vmatprep.subr.bf16.mxu0 %v4875_v53  ;;  %4355 = vmatprep.mubr.bf16.mxu0 %v3594_v17  ;;  %v5161_v51 = vcombine.low %v324_v31, %v334_v45  ;;  %v395_v23 = vrot.slane %v393_v10, 5  ;;  %v4881_v45 = vld [vmem:[%s6036_s1 + $0x158] sm:$0xff]  }
  0x2a   : > { %v377_v38 = vrot.slane %v376_v19, 4  ;;  %v5240_v10 = vld [vmem:[%s5039_s10 + $0x5c] sm:$0x1] }
  0x2b   : > { %4162 = vmatpush3.bf16.msra.mxu1 %v4874_v36  ;;  %v360_v36 = vshrl.u32 %v5137_v22, 16 }
  0x2c   : > { %4354 = vmatpush3.bf16.msra.mxu0 %v4875_v53  ;;  %4195 = vmatprep.subr.bf16.mxu1 %v4876_v1  ;;  %v352_v53 = vor.u32 %v351_v40, %v347_v39  ;;  %v411_v40 = vshll.u32 %v5197_v27, 16  ;;  %v382_v52 = vsel %vm5084_vm2, %v377_v38, %v381_v5  ;;  %v5234_v5 = vld [vmem:[%s5039_s10 + $0x54] sm:$0xf] }
  0x2d   : > { %4387 = vmatprep.subr.bf16.mxu0 %v4877_v8  ;;  %v362_v49 = vrot.slane %v360_v36, 4  ;;  %v4885_v36 = vld [vmem:[%s6036_s1 + $0x18] sm:$0xff]   ;;  %v432_v19 = vshrl.u32 %v5234_v5, 16 }
  0x2e   : > { %4164 = vmatmul.mubr.bf16.vlgmr.msra.gmra.mrb[0].mxu1 %v3594_v17  ;;  %v353_v62 = vrot.slane %v352_v53, 4  ;;  %v397_v17 = vshrl.u32 %v5180_v0, 16 }
  0x2f   : > { %4196 = vmatpush3.bf16.msra.mxu1 %v4876_v1  ;;  %4356 = vmatmul.mubr.bf16.vlgmr.msra.gmra.mrb[0].mxu0 %v5161_v51  ;;  %v366_v63 = vor.u32 %v365_v54, %v362_v49  ;;  %v5183_v1 = vld [vmem:[%s5039_s10 + $0x44] sm:$0x1]  ;;  %v413_v54 = vrot.slane %v411_v40, 5  ;;  %v445_v40 = vshrl.u32 %v5237_v6, 16 }
  0x30   : > { %4197 = vmatprep.subr.bf16.mxu1 %v4879_v34  ;;  %4167 = vmatprep.mubr.bf16.mxu1 %v5161_v51  ;;  %v358_v11 = vsel %vm5084_vm2, %v353_v62, %v357_v47  ;;  %v399_v31 = vrot.slane %v397_v17, 4  ;;  %v403_v32 = vshll.u32 %v5183_v1, 16  ;;  %v427_v62 = vshll.u32 %v5206_v33, 16 }
  0x31   : > { %4388 = vmatpush3.bf16.msra.mxu0 %v4877_v8  ;;  %v367_v15 = vrot.slane %v366_v63, 4  ;;  %v386_v8 = vrot.slane %v384_v2, 4  ;;  %v5194_v18 = vcombine.low %v348_v61, %v358_v11  ;;  %v423_v61 = vrot.slane %v421_v50, 4  ;;  %v4883_v63 = vld [vmem:[%s6036_s1 + $0x160] sm:$0xff]   ;;  %v5274_v50 = vld [vmem:[%s5039_s10 + $0x68] sm:$0x1] }
  0x32   : > { %4389 = vmatprep.subr.bf16.mxu0 %v4878_v46  ;;  %v400_v47 = vor.u32 %v399_v31, %v395_v23  ;;  %v405_v49 = vrot.slane %v403_v32, 5  ;;  %v4888_v2 = vld [vmem:[%s6036_s1 + $0x20] sm:$0xff]   ;;  %v5244_v11 = vcombine.low %v5117_v3, %v5125_v9  ;;  %v429_v17 = vrot.slane %v427_v62, 5 }
  0x33   : > { %4198 = vmatpush3.bf16.msra.mxu1 %v4879_v34  ;;  %6057 = vst [vmem:[#allocation2_spill] sm:$0xff] %v5194_v18  ;;  %v372_v29 = vsel %vm5084_vm2, %v367_v15, %v371_v55  ;;  %v408_v34 = vshrl.u32 %v5197_v27, 16  ;;  %4359 = vmatprep.mubr.bf16.mxu0 %v5194_v18  ;;  %v390_v39 = vor.u32 %v389_v20, %v386_v8  ;;  %v419_v55 = vrot.slane %v417_v44, 5  ;;  %v5260_v32 = vld [vmem:[%s5039_s10 + $0x60] sm:$0xf] }
  0x34   : > { %4199 = vmatprep.subr.bf16.mxu1 %v4882_v59  ;;  %v5222_v56 = vcombine.low %v372_v29, %v382_v52  ;;  %v401_v57 = vrot.slane %v400_v47, 4  ;;  %v5248_v15 = vcombine.low %v5137_v22, %v5142_v30  ;;  %v435_v29 = vshll.u32 %v5234_v5, 16  ;;  %v5268_v47 = vld [vmem:[%s5039_s10 + $0x64] sm:$0xf] }
  0x35   : > { %4390 = vmatpush3.bf16.msra.mxu0 %v4878_v46  ;;  %v410_v46 = vrot.slane %v408_v34, 4  ;;  %v391_v53 = vrot.slane %v390_v39, 4  ;;  %v424_v8 = vor.u32 %v423_v61, %v419_v55  ;;  %v441_v31 = vshll.u32 %v5237_v6, 16  ;;  %v4890_v34 = vld [vmem:[%s6036_s1 + $0x28] sm:$0xff]  }
  0x36   : > { %4168 = vmatmul.mubr.bf16.gmra.mrb[4].mxu1 %v5194_v18  ;;  %4391 = vmatprep.subr.bf16.mxu0 %v4880_v16  ;;  %6058 = vst [vmem:[#allocation3_spill] sm:$0xff] %v5222_v56  ;;  %v434_v39 = vrot.slane %v432_v19, 4  ;;  %v451_v44 = vshll.u32 %v5240_v10, 16  ;;  %v456_v52 = vshrl.u32 %v5260_v32, 16  ;;  %v475_v19 = vshll.u32 %v5274_v50, 16 }
  0x37   : > { %4200 = vmatpush3.bf16.msra.mxu1 %v4882_v59  ;;  %v396_v4 = vsel %vm5084_vm2, %v391_v53, %v395_v23  ;;  %v414_v59 = vor.u32 %v413_v54, %v410_v46  ;;  %4360 = vmatmul.mubr.bf16.gmra.mrb[4].mxu0 %v5222_v56  ;;  %v425_v38 = vrot.slane %v424_v8, 4  ;;  %v443_v46 = vrot.slane %v441_v31, 5 }
  0x38   : > { %4201 = vmatprep.subr.bf16.mxu1 %v4885_v36  ;;  %4171 = vmatprep.mubr.bf16.mxu1 %v5222_v56  ;;  %v447_v54 = vrot.slane %v445_v40, 4  ;;  %v5302_v40 = vld [vmem:[%s5039_s10 + $0x6c] sm:$0xf] }
  0x39   : > { %4392 = vmatpush3.bf16.msra.mxu0 %v4880_v16  ;;  %v406_v16 = vsel %vm5084_vm2, %v401_v57, %v405_v49  ;;  %v415_v23 = vrot.slane %v414_v59, 4  ;;  %v430_v53 = vsel %vm5084_vm2, %v425_v38, %v429_v17  ;;  %v453_v57 = vrot.slane %v451_v44, 5 }
  0x3a   : > { %4393 = vmatprep.subr.bf16.mxu0 %v4881_v45  ;;  %v5255_v20 = vcombine.low %v396_v4, %v406_v16  ;;  %v458_v4 = vrot.slane %v456_v52, 4  ;;  %v465_v59 = vshll.u32 %v5268_v47, 16  ;;  %v448_v16 = vor.u32 %v447_v54, %v443_v46 }
  0x3b   : > { %4202 = vmatpush3.bf16.msra.mxu1 %v4885_v36  ;;  %v420_v49 = vsel %vm5084_vm2, %v415_v23, %v419_v55  ;;  %v437_v36 = vrot.slane %v435_v29, 5  ;;  %v459_v55 = vshll.u32 %v5260_v32, 16  ;;  %v469_v17 = vshrl.u32 %v5268_v47, 16  ;;  %v4892_v29 = vld [vmem:[%s6036_s1 + $0x30] sm:$0xff]  }
  0x3c   : > { %6059 = vst [vmem:[#allocation4_spill] sm:$0xff] %v5255_v20  ;;  %4203 = vmatprep.subr.bf16.mxu1 %v4888_v2  ;;  %4363 = vmatprep.mubr.bf16.mxu0 %v5255_v20  ;;  %v5284_v61 = vcombine.low %v420_v49, %v430_v53  ;;  %v467_v31 = vrot.slane %v465_v59, 5  ;;  %v3642_v38 = vrot.slane %v5062_v21, 9  ;;  %v449_v44 = vrot.slane %v448_v16, 4  ;;  %v5309_v53 = vld [vmem:[%s5039_s10 + $0x70] sm:$0xf] }
  0x3d   : > { %4394 = vmatpush3.bf16.msra.mxu0 %v4881_v45  ;;  %v4884_v45 = vld [vmem:[%s6036_s1 + $0x168] sm:$0xff]   ;;  %v438_v62 = vor.u32 %v437_v36, %v434_v39  ;;  %v461_v8 = vrot.slane %v459_v55, 5  ;;  %v1270_v39 = vrot.slane %v5065_v24, 5  ;;  %v471_v36 = vrot.slane %v469_v17, 4 }
  0x3e   : > { %4172 = vmatmul.mubr.bf16.gmra.mrb[8].mxu1 %v5255_v20  ;;  %4395 = vmatprep.subr.bf16.mxu0 %v4883_v63  ;;  %6060 = vst [vmem:[#allocation5_spill] sm:$0xff] %v5284_v61  ;;  %v477_v52 = vrot.slane %v475_v19, 5  ;;  %v1273_v55 = vrot.slane %v5068_v25, 5  ;;  %v454_v59 = vsel %vm5084_vm2, %v449_v44, %v453_v57  ;;  %v489_v19 = vshll.u32 %v5309_v53, 16 }
  0x3f   : > { %4204 = vmatpush3.bf16.msra.mxu1 %v4888_v2  ;;  %4175 = vmatprep.mubr.bf16.mxu1 %v5284_v61  ;;  %v439_v2 = vrot.slane %v438_v62, 4  ;;  %v462_v49 = vor.u32 %v461_v8, %v458_v4  ;;  %v1271_v24 = vsel %vm5291_vm5, %v3642_v38, %v1270_v39  ;;  %v1272_v54 = vrot.slane %v1270_v39, 4  ;;  %v5317_v62 = vld [vmem:[%s5039_s10 + $0x74] sm:$0x1]  ;;  %v4894_v4 = vld [vmem:[%s6036_s1 + $0x38] sm:$0xff]  }
  0x40   : > { %4205 = vmatprep.subr.bf16.mxu1 %v4890_v34  ;;  %4364 = vmatmul.mubr.bf16.gmra.mrb[8].mxu0 %v5284_v61  ;;  %v472_v8 = vor.u32 %v471_v36, %v467_v31  ;;  %v491_v36 = vrot.slane %v489_v19, 5  ;;  %v1291_v20 = vrot.slane %v5142_v30, 5 }
  0x41   : > { %4396 = vmatpush3.bf16.msra.mxu0 %v4883_v63  ;;  %v4886_v63 = vld [vmem:[%s6036_s1 + $0x170] sm:$0xff]   ;;  %v444_v21 = vsel %vm5084_vm2, %v439_v2, %v443_v46  ;;  %v463_v16 = vrot.slane %v462_v49, 4  ;;  %v480_v46 = vshrl.u32 %v5302_v40, 16  ;;  %v1274_v25 = vsel %vm5291_vm5, %v1272_v54, %v1273_v55  ;;  %v5332_v2 = vld [vmem:[%s5039_s10 + $0x78] sm:$0xf] }
  0x42   : > { %4397 = vmatprep.subr.bf16.mxu0 %v4884_v45  ;;  %v5325_v17 = vcombine.low %v444_v21, %v454_v59  ;;  %v473_v38 = vrot.slane %v472_v8, 4  ;;  %v5339_v39 = vcombine.low %v1271_v24, %v1274_v25  ;;  %v493_v21 = vshrl.u32 %v5309_v53, 16  ;;  %v5346_v54 = vld [vmem:[%s5039_s10 + $0x7c] sm:$0xf] }
  0x43   : > { %4206 = vmatpush3.bf16.msra.mxu1 %v4890_v34  ;;  %v483_v34 = vshll.u32 %v5302_v40, 16  ;;  %v468_v57 = vsel %vm5084_vm2, %v463_v16, %v467_v31  ;;  %v482_v44 = vrot.slane %v480_v46, 4  ;;  %v499_v31 = vshll.u32 %v5317_v62, 16  ;;  %v5353_v16 = vld [vmem:[%s5039_s10 + $0x80] sm:$0x1] }
  0x44   : > { %4207 = vmatprep.subr.bf16.mxu1 %v4892_v29  ;;  %6063 = vst [vmem:[#allocation6_spill] sm:$0xff] %v5325_v17  ;;  %4367 = vmatprep.mubr.bf16.mxu0 %v5325_v17  ;;  %v478_v55 = vsel %vm5084_vm2, %v473_v38, %v477_v52  ;;  %v3643_v59 = vrot.slane %v5090_v41, 9  ;;  %v1277_v24 = vrot.slane %v5093_v42, 5  ;;  %v504_v8 = vshrl.u32 %v5332_v2, 16  ;;  %v5361_v52 = vld [vmem:[%s6036_s1 + $0x80] sm:$0xff]  }
  0x45   : > { %4398 = vmatpush3.bf16.msra.mxu0 %v4884_v45  ;;  %v4887_v45 = vld [vmem:[%s6036_s1 + $0x178] sm:$0xff]   ;;  %v485_v49 = vrot.slane %v483_v34, 5  ;;  %v5356_v46 = vcombine.low %v468_v57, %v478_v55  ;;  %v495_v34 = vrot.slane %v493_v21, 4  ;;  %v501_v19 = vrot.slane %v499_v31, 5  ;;  %v5370_v38 = vld [vmem:[%s5039_s10 + $0x84] sm:$0xf] }
  0x46   : > { %4399 = vmatprep.subr.bf16.mxu0 %v4886_v63  ;;  %4176 = vmatmul.mubr.bf16.gmra.mrb[12].mxu1 %v5325_v17  ;;  %v1278_v41 = vsel %vm5291_vm5, %v3643_v59, %v1277_v24  ;;  %v1279_v42 = vrot.slane %v1277_v24, 4  ;;  %v506_v57 = vrot.slane %v504_v8, 4  ;;  %v513_v21 = vshll.u32 %v5346_v54, 16 }
  0x47   : > { %4208 = vmatpush3.bf16.msra.mxu1 %v4892_v29  ;;  %6064 = vst [vmem:[#allocation7_spill] sm:$0xff] %v5356_v46  ;;  %v486_v25 = vor.u32 %v485_v49, %v482_v44  ;;  %v4889_v29 = vld [vmem:[%s6036_s1 + $0x180] sm:$0xff]   ;;  %4179 = vmatprep.mubr.bf16.mxu1 %v5356_v46  ;;  %v496_v49 = vor.u32 %v495_v34, %v491_v36  ;;  %v517_v31 = vshrl.u32 %v5346_v54, 16  ;;  %v523_v24 = vshll.u32 %v5353_v16, 16 }
  0x48   : > { %4209 = vmatprep.subr.bf16.mxu1 %v4894_v4  ;;  %4368 = vmatmul.mubr.bf16.gmra.mrb[12].mxu0 %v5356_v46  ;;  %v1281_v55 = vsel %vm5291_vm5, %v1279_v42, %v1280_v7  ;;  %v3644_v8 = vrot.slane %v5117_v3, 9  ;;  %v515_v46 = vrot.slane %v513_v21, 5  ;;  %v5390_v3 = vld [vmem:[%s5039_s10 + $0x88] sm:$0xf] }
  0x49   : > { %4400 = vmatpush3.bf16.msra.mxu0 %v4886_v63  ;;  %v507_v63 = vshll.u32 %v5332_v2, 16  ;;  %v487_v44 = vrot.slane %v486_v25, 4  ;;  %4403 = vmatprep.mubr.bf16.mxu0 %v5339_v39  ;;  %v497_v34 = vrot.slane %v496_v49, 4  ;;  %v5385_v26 = vcombine.low %v1278_v41, %v1281_v55 }
  0x4a   : > { %4401 = vmatprep.subr.bf16.mxu0 %v4887_v45  ;;  %v519_v7 = vrot.slane %v517_v31, 4  ;;  %v525_v42 = vrot.slane %v523_v24, 5  ;;  %v528_v41 = vshrl.u32 %v5370_v38, 16  ;;  %v4891_v31 = vld [vmem:[%s6036_s1 + $0x188] sm:$0xff]   ;;  %v5409_v24 = vld [vmem:[%s5039_s10 + $0x90] sm:$0xf] }
  0x4b   : > { %v509_v59 = vrot.slane %v507_v63, 5  ;;  %4210 = vmatpush3.bf16.msra.mxu1 %v4894_v4  ;;  %v492_v25 = vsel %vm5084_vm2, %v487_v44, %v491_v36  ;;  %v1284_v63 = vrot.slane %v5125_v9, 5  ;;  %v502_v4 = vsel %vm5084_vm2, %v497_v34, %v501_v19  ;;  %v5396_v36 = vld [vmem:[%s5039_s10 + $0x8c] sm:$0x1]  ;;  %v5412_v34 = vld [vmem:[%s5039_s10 + $0x94] sm:$0xf] }
  0x4c   : > { %4243 = vmatprep.subr.bf16.mxu1 %v5361_v52  ;;  %v531_v44 = vshll.u32 %v5370_v38, 16  ;;  %v520_v21 = vor.u32 %v519_v7, %v515_v46  ;;  %v530_v55 = vrot.slane %v528_v41, 4  ;;  %v547_v7 = vshll.u32 %v5396_v36, 16 }
  0x4d   : > { %4402 = vmatpush3.bf16.msra.mxu0 %v4887_v45  ;;  %v510_v48 = vor.u32 %v509_v59, %v506_v57  ;;  %v1287_v45 = vrot.slane %v5132_v14, 5  ;;  %v5400_v57 = vcombine.low %v492_v25, %v502_v4  ;;  %v1285_v9 = vsel %vm5291_vm5, %v3644_v8, %v1284_v63 }
  0x4e   : > { %4435 = vmatprep.subr.bf16.mxu0 %v4889_v29  ;;  %v1286_v19 = vrot.slane %v1284_v63, 4  ;;  %v533_v14 = vrot.slane %v531_v44, 5  ;;  %v537_v59 = vshll.u32 %v5390_v3, 16  ;;  %v541_v8 = vshrl.u32 %v5390_v3, 16 }
  0x4f   : > { %6065 = vst [vmem:[#allocation8_spill] sm:$0xff] %v5400_v57  ;;  %v511_v49 = vrot.slane %v510_v48, 4  ;;  %4180 = vmatmul.mubr.bf16.gmra.mrb[16].mxu1 %v5400_v57  ;;  %v521_v48 = vrot.slane %v520_v21, 4  ;;  %v3645_v44 = vrot.slane %v5137_v22, 9  ;;  %v549_v21 = vrot.slane %v547_v7, 5  ;;  %v4893_v22 = vld [vmem:[%s6036_s1 + $0x190] sm:$0xff]  }
  0x50   : > { %4404 = vmatmul.mubr.bf16.vlgmr.msra.gmra.mrb[0].mxu0 %v5385_v26  ;;  %v1288_v63 = vsel %vm5291_vm5, %v1286_v19, %v1287_v45  ;;  %v534_v4 = vor.u32 %v533_v14, %v530_v55  ;;  %v539_v41 = vrot.slane %v537_v59, 5  ;;  %v1294_v45 = vrot.slane %v5151_v35, 5  ;;  %v5448_v59 = vld [vmem:[%s5039_s10 + $0x9c] sm:$0xf] }
  0x51   : > { %v516_v25 = vsel %vm5084_vm2, %v511_v49, %v515_v46  ;;  %4436 = vmatpush3.bf16.msra.mxu0 %v4889_v29  ;;  %v526_v57 = vsel %vm5084_vm2, %v521_v48, %v525_v42  ;;  %v5425_v46 = vcombine.low %v1285_v9, %v1288_v63  ;;  %v543_v49 = vrot.slane %v541_v8, 4  ;;  %v5436_v42 = vld [vmem:[%s5039_s10 + $0x98] sm:$0x1]  ;;  %v5451_v63 = vld [vmem:[%s5039_s10 + $0xa0] sm:$0xf] }
  0x52   : > { %v5427_v17 = vcombine.low %v516_v25, %v526_v57  ;;  %v535_v61 = vrot.slane %v534_v4, 4  ;;  %4437 = vmatprep.subr.bf16.mxu0 %v4891_v31  ;;  %v552_v57 = vshrl.u32 %v5409_v24, 16  ;;  %v555_v9 = vshll.u32 %v5409_v24, 16 }
  0x53   : > { %4407 = vmatprep.mubr.bf16.mxu0 %v5425_v46  ;;  %v544_v29 = vor.u32 %v543_v49, %v539_v41  ;;  %v561_v19 = vshll.u32 %v5412_v34, 16  ;;  %v1292_v35 = vsel %vm5291_vm5, %v3645_v44, %v1291_v20  ;;  %v1293_v55 = vrot.slane %v1291_v20, 4  ;;  %v5458_v20 = vld [vmem:[%s5039_s10 + $0xa4] sm:$0x1] }
  0x54   : > { %6066 = vst [vmem:[#allocation9_spill] sm:$0xff] %v5427_v17  ;;  %4183 = vmatprep.mubr.bf16.mxu1 %v5427_v17  ;;  %v540_v30 = vsel %vm5084_vm2, %v535_v61, %v539_v41  ;;  %v565_v14 = vshrl.u32 %v5412_v34, 16  ;;  %v554_v48 = vrot.slane %v552_v57, 4  ;;  %v557_v8 = vrot.slane %v555_v9, 5 }
  0x55   : > { %v545_v25 = vrot.slane %v544_v29, 4  ;;  %4438 = vmatpush3.bf16.msra.mxu0 %v4891_v31  ;;  %v563_v7 = vrot.slane %v561_v19, 5  ;;  %v1295_v4 = vsel %vm5291_vm5, %v1293_v55, %v1294_v45  ;;  %v571_v61 = vshll.u32 %v5436_v42, 16  ;;  %v4895_v45 = vld [vmem:[%s6036_s1 + $0x198] sm:$0xff]  }
  0x56   : > { %v567_v49 = vrot.slane %v565_v14, 4  ;;  %v3646_v41 = vrot.slane %v5166_v58, 9  ;;  %4439 = vmatprep.subr.bf16.mxu0 %v4893_v22  ;;  %v5462_v44 = vcombine.low %v1292_v35, %v1295_v4  ;;  %v558_v29 = vor.u32 %v557_v8, %v554_v48 }
  0x57   : > { %v550_v31 = vsel %vm5084_vm2, %v545_v25, %v549_v21  ;;  %v1298_v57 = vrot.slane %v5180_v0, 5  ;;  %v573_v58 = vrot.slane %v571_v61, 5  ;;  %v1301_v55 = vrot.slane %v5183_v1, 5  ;;  %v5476_v25 = vld [vmem:[%s5039_s10 + $0xa8] sm:$0xf] }
  0x58   : > { %v5468_v9 = vcombine.low %v540_v30, %v550_v31  ;;  %v568_v19 = vor.u32 %v567_v49, %v563_v7  ;;  %4408 = vmatmul.mubr.bf16.gmra.mrb[4].mxu0 %v5462_v44  ;;  %v559_v14 = vrot.slane %v558_v29, 4  ;;  %v576_v0 = vshrl.u32 %v5448_v59, 16  ;;  %v4899_v30 = vld [vmem:[%s6036_s1 + $0x1a0] sm:$0xff]   ;;  %v5486_v49 = vld [vmem:[%s5039_s10 + $0xac] sm:$0xf] }
  0x59   : > { %v1299_v21 = vsel %vm5291_vm5, %v3646_v41, %v1298_v57  ;;  %v1300_v35 = vrot.slane %v1298_v57, 4  ;;  %v579_v1 = vshll.u32 %v5448_v59, 16  ;;  %v585_v8 = vshll.u32 %v5451_v63, 16  ;;  %4440 = vmatpush3.bf16.msra.mxu0 %v4893_v22 }
  0x5a   : > { %6067 = vst [vmem:[#allocation10_spill] sm:$0xff] %v5468_v9  ;;  %4184 = vmatmul.mubr.bf16.gmra.mrb[20].mxu1 %v5468_v9  ;;  %v569_v48 = vrot.slane %v568_v19, 4  ;;  %v589_v4 = vshrl.u32 %v5451_v63, 16  ;;  %v564_v61 = vsel %vm5084_vm2, %v559_v14, %v563_v7  ;;  %v578_v31 = vrot.slane %v576_v0, 4  ;;  %4441 = vmatprep.subr.bf16.mxu0 %v4895_v45  ;;  %v5501_v14 = vld [vmem:[%s5039_s10 + $0xb0] sm:$0x1] }
  0x5b   : > { %v1302_v41 = vsel %vm5291_vm5, %v1300_v35, %v1301_v55  ;;  %v595_v29 = vshll.u32 %v5458_v20, 16  ;;  %v581_v9 = vrot.slane %v579_v1, 5  ;;  %v587_v17 = vrot.slane %v585_v8, 5 }
  0x5c   : > { %v574_v57 = vsel %vm5084_vm2, %v569_v48, %v573_v58  ;;  %v5495_v19 = vcombine.low %v1299_v21, %v1302_v41  ;;  %v591_v56 = vrot.slane %v589_v4, 4  ;;  %v3647_v7 = vrot.slane %v5197_v27, 9 }
  0x5d   : > { %v5497_v22 = vcombine.low %v564_v61, %v574_v57  ;;  %v597_v18 = vrot.slane %v595_v29, 5  ;;  %v582_v55 = vor.u32 %v581_v9, %v578_v31  ;;  %v1305_v35 = vrot.slane %v5200_v28, 5  ;;  %4442 = vmatpush3.bf16.msra.mxu0 %v4895_v45  ;;  %v4903_v28 = vld [vmem:[%s6036_s1 + $0x1a8] sm:$0xff]  }
  0x5e   : > { %4411 = vmatprep.mubr.bf16.mxu0 %v5495_v19  ;;  %v1308_v0 = vrot.slane %v5206_v33, 5  ;;  %v600_v58 = vshrl.u32 %v5476_v25, 16  ;;  %v592_v21 = vor.u32 %v591_v56, %v587_v17  ;;  %v603_v48 = vshll.u32 %v5476_v25, 16  ;;  %4443 = vmatprep.subr.bf16.mxu0 %v4899_v30 }
  0x5f   : > { %6068 = vst [vmem:[#allocation11_spill] sm:$0xff] %v5497_v22  ;;  %4187 = vmatprep.mubr.bf16.mxu1 %v5497_v22  ;;  %v609_v1 = vshll.u32 %v5486_v49, 16  ;;  %v613_v27 = vshrl.u32 %v5486_v49, 16  ;;  %v583_v9 = vrot.slane %v582_v55, 4  ;;  %v1306_v33 = vsel %vm5291_vm5, %v3647_v7, %v1305_v35  ;;  %v5523_v22 = vld [vmem:[%s5039_s10 + $0xb4] sm:$0xf] }
  0x60   : > { %v1307_v45 = vrot.slane %v1305_v35, 4  ;;  %v602_v8 = vrot.slane %v600_v58, 4  ;;  %v593_v56 = vrot.slane %v592_v21, 4  ;;  %v605_v4 = vrot.slane %v603_v48, 5  ;;  %v5530_v48 = vld [vmem:[%s5039_s10 + $0xb8] sm:$0xf] }
  0x61   : > { %v611_v61 = vrot.slane %v609_v1, 5  ;;  %v615_v41 = vrot.slane %v613_v27, 4  ;;  %v588_v31 = vsel %vm5084_vm2, %v583_v9, %v587_v17  ;;  %v619_v57 = vshll.u32 %v5501_v14, 16  ;;  %4444 = vmatpush3.bf16.msra.mxu0 %v4899_v30  ;;  %v4907_v17 = vld [vmem:[%s6036_s1 + $0x1b0] sm:$0xff]   ;;  %v5540_v27 = vld [vmem:[%s5039_s10 + $0xbc] sm:$0x1] }
  0x62   : > { %v1309_v29 = vsel %vm5291_vm5, %v1307_v45, %v1308_v0  ;;  %v3648_v55 = vrot.slane %v5234_v5, 9  ;;  %v598_v7 = vsel %vm5084_vm2, %v593_v56, %v597_v18  ;;  %v606_v58 = vor.u32 %v605_v4, %v602_v8  ;;  %4445 = vmatprep.subr.bf16.mxu0 %v4903_v28  ;;  %v4911_v4 = vld [vmem:[%s6036_s1 + $0x1b8] sm:$0xff]  }
  0x63   : > { %v5527_v35 = vcombine.low %v1306_v33, %v1309_v29  ;;  %v616_v21 = vor.u32 %v615_v41, %v611_v61  ;;  %v5535_v0 = vcombine.low %v588_v31, %v598_v7  ;;  %v621_v5 = vrot.slane %v619_v57, 5 }
  0x64   : > { %v1312_v1 = vrot.slane %v5237_v6, 5  ;;  %v1315_v30 = vrot.slane %v5240_v10, 5  ;;  %v607_v18 = vrot.slane %v606_v58, 4  ;;  %v624_v33 = vshrl.u32 %v5523_v22, 16 }
  0x65   : > { %6069 = vst [vmem:[#allocation12_spill] sm:$0xff] %v5535_v0  ;;  %4412 = vmatmul.mubr.bf16.gmra.mrb[8].mxu0 %v5527_v35  ;;  %v617_v9 = vrot.slane %v616_v21, 4  ;;  %v627_v45 = vshll.u32 %v5523_v22, 16  ;;  %4188 = vmatmul.mubr.bf16.gmra.mrb[24].mxu1 %v5535_v0  ;;  %v633_v6 = vshll.u32 %v5530_v48, 16  ;;  %v637_v10 = vshrl.u32 %v5530_v48, 16 }
  0x66   : > { %v1313_v8 = vsel %vm5291_vm5, %v3648_v55, %v1312_v1  ;;  %v1314_v56 = vrot.slane %v1312_v1, 4  ;;  %4446 = vmatpush3.bf16.msra.mxu0 %v4903_v28  ;;  %v612_v41 = vsel %vm5084_vm2, %v607_v18, %v611_v61  ;;  %v626_v29 = vrot.slane %v624_v33, 4 }
  0x67   : > { %v622_v31 = vsel %vm5084_vm2, %v617_v9, %v621_v5  ;;  %v629_v57 = vrot.slane %v627_v45, 5  ;;  %4447 = vmatprep.subr.bf16.mxu0 %v4907_v17  ;;  %v635_v58 = vrot.slane %v633_v6, 5  ;;  %v639_v28 = vrot.slane %v637_v10, 4 }
  0x68   : > { %v5557_v55 = vcombine.low %v612_v41, %v622_v31  ;;  %v1316_v7 = vsel %vm5291_vm5, %v1314_v56, %v1315_v30  ;;  %v643_v0 = vshll.u32 %v5540_v27, 16  ;;  %v3649_v61 = vrot.slane %v5260_v32, 9  ;;  %v5572_v30 = vld [vmem:[%s6036_s1 + $0x1c0] sm:$0xff]  }
  0x69   : > { %v5561_v21 = vcombine.low %v1313_v8, %v1316_v7  ;;  %v630_v1 = vor.u32 %v629_v57, %v626_v29  ;;  %v640_v5 = vor.u32 %v639_v28, %v635_v58  ;;  %v1319_v18 = vrot.slane %v5268_v47, 5 }
  0x6a   : > { %4191 = vmatprep.mubr.bf16.mxu1 %v5557_v55  ;;  %v1322_v9 = vrot.slane %v5274_v50, 5  ;;  %v3650_v33 = vrot.slane %v5302_v40, 9  ;;  %4448 = vmatpush3.bf16.msra.mxu0 %v4907_v17  ;;  %v645_v8 = vrot.slane %v643_v0, 5  ;;  %v1326_v56 = vrot.slane %v5309_v53, 5 }
  0x6b   : > { %4415 = vmatprep.mubr.bf16.mxu0 %v5561_v21  ;;  %v631_v45 = vrot.slane %v630_v1, 4  ;;  %v1329_v6 = vrot.slane %v5317_v62, 5  ;;  %4449 = vmatprep.subr.bf16.mxu0 %v4911_v4  ;;  %v641_v10 = vrot.slane %v640_v5, 4  ;;  %v1320_v50 = vsel %vm5291_vm5, %v3649_v61, %v1319_v18 }
  0x6c   : > { %v1321_v41 = vrot.slane %v1319_v18, 4  ;;  %v3651_v17 = vrot.slane %v5332_v2, 9  ;;  %v1327_v29 = vsel %vm5291_vm5, %v3650_v33, %v1326_v56  ;;  %v1328_v57 = vrot.slane %v1326_v56, 4 }
  0x6d   : > { %v636_v31 = vsel %vm5084_vm2, %v631_v45, %v635_v58  ;;  %v1333_v0 = vrot.slane %v5346_v54, 5  ;;  %v646_v62 = vsel %vm5084_vm2, %v641_v10, %v645_v8  ;;  %v1336_v28 = vrot.slane %v5353_v16, 5 }
  0x6e   : > { %v1323_v7 = vsel %vm5291_vm5, %v1321_v41, %v1322_v9  ;;  %v3652_v1 = vrot.slane %v5370_v38, 9  ;;  %4450 = vmatpush3.bf16.msra.mxu0 %v4911_v4  ;;  %v5591_v61 = vcombine.low %v636_v31, %v646_v62  ;;  %v1330_v5 = vsel %vm5291_vm5, %v1328_v57, %v1329_v6  ;;  %v4902_v57 = vld [vmem:[%s6036_s1 + $0x88] sm:$0xff]  }
  0x6f   : > { %v5593_v58 = vcombine.low %v1320_v50, %v1323_v7  ;;  %4483 = vmatprep.subr.bf16.mxu0 %v5572_v30  ;;  %v5598_v18 = vcombine.low %v1327_v29, %v1330_v5  ;;  %v1335_v33 = vrot.slane %v1333_v0, 4  ;;  %v1340_v45 = vrot.slane %v5390_v3, 5 }
  0x70   : > { %v1343_v9 = vrot.slane %v5396_v36, 5  ;;  %4192 = vmatmul.mubr.bf16.gmra.mrb[28].mxu1 %v5591_v61  ;;  %v6070_v16 = vcombine.low %v5048_v12, %v5051_v13  ;;  %v1334_v4 = vsel %vm5291_vm5, %v3651_v17, %v1333_v0  ;;  %v1347_v6 = vrot.slane %v5412_v34, 5 }
  0x71   : > { %4416 = vmatmul.mubr.bf16.gmra.mrb[12].mxu0 %v5593_v58  ;;  %v1337_v8 = vsel %vm5291_vm5, %v1335_v33, %v1336_v28  ;;  %v1342_v56 = vrot.slane %v1340_v45, 4  ;;  %v1354_v36 = vrot.slane %v5451_v63, 5  ;;  %v1341_v10 = vsel %vm5291_vm5, %v3652_v1, %v1340_v45 }
  0x72   : > { %4211 = vmatprep.mubr.bf16.mxu1 %v6070_v16  ;;  %4419 = vmatprep.mubr.bf16.mxu0 %v5598_v18  ;;  %v5618_v13 = vcombine.low %v1334_v4, %v1337_v8  ;;  %v3653_v50 = vrot.slane %v5409_v24, 9  ;;  %v1350_v41 = vrot.slane %v5436_v42, 5  ;;  %v1349_v17 = vrot.slane %v1347_v6, 4 }
  0x73   : > { %v1344_v12 = vsel %vm5291_vm5, %v1342_v56, %v1343_v9  ;;  %v3654_v31 = vrot.slane %v5448_v59, 9  ;;  %v1356_v0 = vrot.slane %v1354_v36, 4  ;;  %v1357_v62 = vrot.slane %v5458_v20, 5 }
  0x74   : > { %v5623_v29 = vcombine.low %v1341_v10, %v1344_v12  ;;  %v1348_v7 = vsel %vm5291_vm5, %v3653_v50, %v1347_v6  ;;  %v1361_v42 = vrot.slane %v5486_v49, 5  ;;  %v5636_v28 = vcombine.low %v5260_v32, %v5268_v47  ;;  %v4906_v47 = vld [vmem:[%s6036_s1 + $0x90] sm:$0xff]   ;;  %v240_v6 = vld [vmem:[%s5039_s10 + $0xc8] sm:$0x1]  ;;  %v4951_v10 = vld [vmem:[%s5039_s10 + $0x40] sm:$0xf] }
  0x75   : > { %v1351_v20 = vsel %vm5291_vm5, %v1349_v17, %v1350_v41  ;;  %v1355_v1 = vsel %vm5291_vm5, %v3654_v31, %v1354_v36  ;;  %v3655_v5 = vrot.slane %v5476_v25, 9  ;;  %v5647_v33 = vcombine.low %v5302_v40, %v5309_v53  ;;  %v4950_v36 = vld [vmem:[%s5039_s10 + $0x3c] sm:$0xf]  ;;  %v4952_v41 = vld [vmem:[%s5039_s10 + $0x48] sm:$0xf] }
  0x76   : > { %v1358_v32 = vsel %vm5291_vm5, %v1356_v0, %v1357_v62  ;;  %v5658_v45 = vcombine.low %v5332_v2, %v5346_v54  ;;  %v5662_v40 = vcombine.low %v5370_v38, %v5390_v3  ;;  %v5666_v53 = vcombine.low %v5409_v24, %v5412_v34  ;;  %v5686_v24 = vld [vmem:[%s5039_s10 + $0xc4] sm:$0xf]  ;;  %v4953_v17 = vld [vmem:[%s5039_s10 + $0x4c] sm:$0xf] }
  0x77   : > { %v5670_v9 = vcombine.low %v5448_v59, %v5451_v63  ;;  %v5674_v16 = vcombine.low %v5476_v25, %v5486_v49  ;;  %v5676_v4 = vcombine.low %v1348_v7, %v1351_v20  ;;  %v1363_v2 = vrot.slane %v1361_v42, 4  ;;  %v4910_v25 = vld [vmem:[%s6036_s1 + $0x98] sm:$0xff]  }
  0x78   : > { %4212 = vmatmul.mubr.bf16.vlgmr.msra.gmra.mrb[0].mxu1 %v5097_v43  ;;  %v1364_v54 = vrot.slane %v5501_v14, 5  ;;  %v5681_v38 = vcombine.low %v5523_v22, %v5530_v48  ;;  %v5683_v3 = vcombine.low %v1355_v1, %v1358_v32  ;;  %v3656_v34 = vrot.slane %v5523_v22, 9  ;;  %v5700_v14 = vld [vmem:[%s5039_s10 + $0xc0] sm:$0xf] }
  0x79   : > { %4420 = vmatmul.mubr.bf16.gmra.mrb[16].mxu0 %v5618_v13  ;;  %4244 = vmatpush3.bf16.msra.mxu1 %v5361_v52  ;;  %v1368_v52 = vrot.slane %v5530_v48, 5  ;;  %v1371_v63 = vrot.slane %v5540_v27, 5  ;;  %v1362_v49 = vsel %vm5291_vm5, %v3655_v5, %v1361_v42  ;;  %v2248_v48 = vrot.slane %v5686_v24, 5  ;;  %v4914_v27 = vld [vmem:[%s6036_s1 + $0xa0] sm:$0xff]  }
  0x7a   : > { %4215 = vmatprep.mubr.bf16.mxu1 %v5173_v60  ;;  %4423 = vmatprep.mubr.bf16.mxu0 %v5623_v29  ;;  %v1365_v22 = vsel %vm5291_vm5, %v1363_v2, %v1364_v54  ;;  %v5715_v12 = vcombine.low %v4950_v36, %v4951_v10  ;;  %v5721_v31 = vcombine.low %v4952_v41, %v4953_v17  ;;  %v1963_v0 = vshll.u32 %v5700_v14, 16  ;;  %v4918_v54 = vld [vmem:[%s6036_s1 + $0xa8] sm:$0xff]   ;;  %v4922_v36 = vld [vmem:[%s6036_s1 + $0xb0] sm:$0xff]   ;;  %v4955_v10 = vld [vmem:[%s5039_s10 + $0x58] sm:$0xf] }
  0x7b   : > { %4245 = vmatprep.subr.bf16.mxu1 %v4902_v57  ;;  %v1370_v59 = vrot.slane %v1368_v52, 4  ;;  %v1369_v8 = vsel %vm5291_vm5, %v3656_v34, %v1368_v52  ;;  %v5717_v50 = vcombine.low %v1362_v49, %v1365_v22  ;;  %v1969_v62 = vshll.u32 %v5686_v24, 16 }
  0x7c   : > { %v1973_v7 = vshrl.u32 %v5686_v24, 16  ;;  %v3747_v20 = vrot.slane %v5700_v14, 9  ;;  %v2250_v1 = vrot.slane %v2248_v48, 4  ;;  %v2251_v5 = vrot.slane %v240_v6, 5 }
  0x7d   : > { %4246 = vmatpush3.bf16.msra.mxu1 %v4902_v57  ;;  %v1372_v56 = vsel %vm5291_vm5, %v1370_v59, %v1371_v63  ;;  %v1960_v57 = vshrl.u32 %v5700_v14, 16  ;;  %v1971_v52 = vrot.slane %v1969_v62, 5  ;;  %v1979_v63 = vshll.u32 %v240_v6, 16  ;;  %v4954_v6 = vld [vmem:[%s5039_s10 + $0x54] sm:$0xf]  ;;  %v4928_v62 = vld [vmem:[%s6036_s1 + $0xc0] sm:$0xff]  }
  0x7e   : > { %4247 = vmatprep.subr.bf16.mxu1 %v4906_v47  ;;  %v5727_v42 = vcombine.low %v1369_v8, %v1372_v56  ;;  %v1975_v2 = vrot.slane %v1973_v7, 4  ;;  %v2252_v49 = vsel %vm5291_vm5, %v2250_v1, %v2251_v5  ;;  %v5746_v41 = vcombine.low %v4954_v6, %v4955_v10  ;;  %v4919_v7 = vld [vmem:[%s6036_s1 + $0x1c8] sm:$0xff]   ;;  %v4927_v1 = vld [vmem:[%s6036_s1 + $0x1d8] sm:$0xff]   ;;  %v4932_v6 = vld [vmem:[%s6036_s1 + $0xd0] sm:$0xff]  }
  0x7f   : > { %v1962_v32 = vrot.slane %v1960_v57, 4  ;;  %v1981_v56 = vrot.slane %v1979_v63, 5  ;;  %v4935_v10 = vld [vmem:[%s6036_s1 + $0xd8] sm:$0xff]  }
  0x80   : > { %4216 = vmatmul.mubr.bf16.gmra.mrb[4].mxu1 %v5244_v11  ;;  %v1976_v59 = vor.u32 %v1975_v2, %v1971_v52  ;;  %v4958_v2 = vld [vmem:[%s5039_s10] sm:$0xf] }
  0x81   : > { %4424 = vmatmul.mubr.bf16.gmra.mrb[20].mxu0 %v5676_v4  ;;  %4219 = vmatprep.mubr.bf16.mxu1 %v5248_v15 }
  0x82   : > { %4427 = vmatprep.mubr.bf16.mxu0 %v5683_v3  ;;  %4248 = vmatpush3.bf16.msra.mxu1 %v4906_v47  ;;  %v1965_v47 = vrot.slane %v1963_v0, 5  ;;  %v1977_v8 = vrot.slane %v1976_v59, 4  ;;  %v4926_v0 = vld [vmem:[%s6036_s1 + $0xb8] sm:$0xff]   ;;  %v4931_v59 = vld [vmem:[%s6036_s1 + $0x1e8] sm:$0xff]  }
  0x83   : > { %4249 = vmatprep.subr.bf16.mxu1 %v4910_v25 }
  0x84   : > { %v1966_v34 = vor.u32 %v1965_v47, %v1962_v32  ;;  %v4929_v32 = vld [vmem:[%s6036_s1 + $0x1e0] sm:$0xff]   ;;  %v4957_v47 = vld [vmem:[%s5039_s10 + $0x8] sm:$0x1] }
  0x86   : > { %4250 = vmatpush3.bf16.msra.mxu1 %v4910_v25  ;;  %v2249_v25 = vsel %vm5291_vm5, %v3747_v20, %v2248_v48  ;;  %v1967_v22 = vrot.slane %v1966_v34, 4  ;;  %v4923_v20 = vld [vmem:[%s6036_s1 + $0x1d0] sm:$0xff]  }
  0x87   : > { %4251 = vmatprep.subr.bf16.mxu1 %v4914_v27  ;;  %v5748_v17 = vcombine.low %v2249_v25, %v2252_v49  ;;  %v4933_v49 = vld [vmem:[%s6036_s1 + $0x1f0] sm:$0xff]  }
  0x88   : > { %4220 = vmatmul.mubr.bf16.gmra.mrb[8].mxu1 %v5715_v12  ;;  %v1972_v48 = vsel %vm5084_vm2, %v1967_v22, %v1971_v52  ;;  %v1266_v52 = vrot.slane %v4957_v47, 5  ;;  %v6073_v47 = vld [vmem:[#allocation4_spill] sm:$0xff] }
  0x89   : > { %4428 = vmatmul.mubr.bf16.gmra.mrb[24].mxu0 %v5717_v50  ;;  %4223 = vmatprep.mubr.bf16.mxu1 %v5721_v31 }
  0x8a   : > { %4431 = vmatprep.mubr.bf16.mxu0 %v5727_v42  ;;  %4252 = vmatpush3.bf16.msra.mxu1 %v4914_v27  ;;  %v1982_v27 = vsel %vm5084_vm2, %v1977_v8, %v1981_v56  ;;  %v4937_v8 = vld [vmem:[%s6036_s1 + $0x1f8] sm:$0xff]   ;;  %v4939_v56 = vld [vmem:[%s6036_s1 + $0x200] sm:$0xff]  }
  0x8b   : > { %4253 = vmatprep.subr.bf16.mxu1 %v4918_v54  ;;  %v5754_v57 = vcombine.low %v1972_v48, %v1982_v27  ;;  %v5835_v48 = vcombine.low %v5700_v14, %v5686_v24  ;;  %v4940_v27 = vld [vmem:[%s6036_s1 + $0xe8] sm:$0xff]   ;;  %v4942_v24 = vld [vmem:[%s6036_s1 + $0xf0] sm:$0xff]  }
  0x8e   : > { %4254 = vmatpush3.bf16.msra.mxu1 %v4918_v54  ;;  %v3641_v54 = vrot.slane %v4958_v2, 9  ;;  %v4946_v2 = vld [vmem:[%s6036_s1 + $0x220] sm:$0xff]  }
  0x8f   : > { %4255 = vmatprep.subr.bf16.mxu1 %v4922_v36 }
  0x90   : > { %4224 = vmatmul.mubr.bf16.gmra.mrb[12].mxu1 %v5746_v41 }
  0x91   : > { %4432 = vmatmul.mubr.bf16.gmra.mrb[28].mxu0 %v5748_v17  ;;  %4227 = vmatprep.mubr.bf16.mxu1 %v5636_v28 }
  0x92   : > { %4451 = vmatprep.mubr.bf16.mxu0 %v5173_v60  ;;  %4256 = vmatpush3.bf16.msra.mxu1 %v4922_v36  ;;  %v4930_v36 = vld [vmem:[%s6036_s1 + $0xc8] sm:$0xff]  }
  0x93   : > { %4257 = vmatprep.subr.bf16.mxu1 %v4926_v0 }
  0x96   : > { %4258 = vmatpush3.bf16.msra.mxu1 %v4926_v0  ;;  %v5845_v0 = vld [vmem:[%s5039_s10 + $0xcc] sm:$0xf] }
  0x97   : > { %4291 = vmatprep.subr.bf16.mxu1 %v4928_v62 }
  0x98   : > { %4228 = vmatmul.mubr.bf16.gmra.mrb[16].mxu1 %v5647_v33 }
  0x99   : > { %4452 = vmatmul.mubr.bf16.vlgmr.msra.gmra.mrb[0].mxu0 %v5244_v11  ;;  %4231 = vmatprep.mubr.bf16.mxu1 %v5658_v45 }
  0x9a   : > { %4484 = vmatpush3.bf16.msra.mxu0 %v5572_v30  ;;  %4455 = vmatprep.mubr.bf16.mxu0 %v5248_v15  ;;  %v4956_v30 = vld [vmem:[%s5039_s10 + $0x4] sm:$0xf] }
  0x9b   : > { %4485 = vmatprep.subr.bf16.mxu0 %v4919_v7  ;;  %v1263_v5 = vrot.slane %v4956_v30, 5  ;;  %v6071_v30 = vld [vmem:[#allocation2_spill] sm:$0xff] }
  0x9d   : > { %v1265_v34 = vrot.slane %v1263_v5, 4  ;;  %v1264_v63 = vsel %vm5291_vm5, %v3641_v54, %v1263_v5  ;;  %v4943_v5 = vld [vmem:[%s6036_s1 + $0x210] sm:$0xff]   ;;  %v4947_v54 = vld [vmem:[%s6036_s1 + $0x228] sm:$0xff]  }
  0x9e   : > { %4486 = vmatpush3.bf16.msra.mxu0 %v4919_v7  ;;  %v4944_v7 = vld [vmem:[%s6036_s1 + $0xf8] sm:$0xff]  }
  0x9f   : > { %4487 = vmatprep.subr.bf16.mxu0 %v4923_v20  ;;  %v1267_v25 = vsel %vm5291_vm5, %v1265_v34, %v1266_v52  ;;  %v6074_v52 = vld [vmem:[#allocation5_spill] sm:$0xff]  ;;  %v6075_v34 = vld [vmem:[#allocation6_spill] sm:$0xff] }
  0xa0   : > { %4232 = vmatmul.mubr.bf16.gmra.mrb[20].mxu1 %v5662_v40  ;;  %v3673_v22 = vcombine.low %v1264_v63, %v1267_v25  ;;  %v4948_v63 = vld [vmem:[%s6036_s1 + $0x230] sm:$0xff]   ;;  %v4949_v25 = vld [vmem:[%s6036_s1 + $0x238] sm:$0xff]  }
  0xa1   : > { %4456 = vmatmul.mubr.bf16.gmra.mrb[4].mxu0 %v5715_v12  ;;  %4235 = vmatprep.mubr.bf16.mxu1 %v5666_v53 }
  0xa2   : > { %4459 = vmatprep.mubr.bf16.mxu0 %v5721_v31  ;;  %4488 = vmatpush3.bf16.msra.mxu0 %v4923_v20  ;;  %v4941_v20 = vld [vmem:[%s6036_s1 + $0x208] sm:$0xff]  }
  0xa3   : > { %4489 = vmatprep.subr.bf16.mxu0 %v4927_v1 }
  0xa6   : > { %4490 = vmatpush3.bf16.msra.mxu0 %v4927_v1  ;;  %v4959_v1 = vld [vmem:[%s6036_s1 + $0x100] sm:$0xff]  }
  0xa7   : > { %4491 = vmatprep.subr.bf16.mxu0 %v4929_v32 }
  0xa8   : > { %4236 = vmatmul.mubr.bf16.gmra.mrb[24].mxu1 %v5670_v9 }
  0xa9   : > { %4460 = vmatmul.mubr.bf16.gmra.mrb[8].mxu0 %v5746_v41  ;;  %4239 = vmatprep.mubr.bf16.mxu1 %v5674_v16 }
  0xaa   : > { %4463 = vmatprep.mubr.bf16.mxu0 %v5636_v28  ;;  %4492 = vmatpush3.bf16.msra.mxu0 %v4929_v32  ;;  %v4945_v32 = vld [vmem:[%s6036_s1 + $0x218] sm:$0xff]  }
  0xab   : > { %4493 = vmatprep.subr.bf16.mxu0 %v4931_v59 }
  0xae   : > { %4494 = vmatpush3.bf16.msra.mxu0 %v4931_v59  ;;  %v6076_v59 = vld [vmem:[#allocation7_spill] sm:$0xff] }
  0xaf   : > { %4495 = vmatprep.subr.bf16.mxu0 %v4933_v49 }
  0xb0   : > { %4240 = vmatmul.mubr.bf16.gmra.mrb[28].mxu1 %v5681_v38 }
  0xb1   : > { %4464 = vmatmul.mubr.bf16.gmra.mrb[12].mxu0 %v5647_v33  ;;  %4259 = vmatprep.mubr.bf16.mxu1 %v3673_v22  ;;  %v6078_v22 = vld [vmem:[#allocation9_spill] sm:$0xff] }
  0xb2   : > { %4467 = vmatprep.mubr.bf16.mxu0 %v5658_v45  ;;  %4496 = vmatpush3.bf16.msra.mxu0 %v4933_v49  ;;  %v6077_v49 = vld [vmem:[#allocation8_spill] sm:$0xff] }
  0xb3   : > { %4497 = vmatprep.subr.bf16.mxu0 %v4937_v8 }
  0xb6   : > { %4498 = vmatpush3.bf16.msra.mxu0 %v4937_v8  ;;  %v6079_v8 = vld [vmem:[#allocation10_spill] sm:$0xff] }
  0xb7   : > { %4531 = vmatprep.subr.bf16.mxu0 %v4939_v56 }
  0xb8   : > { %4260 = vmatmul.mubr.bf16.vlgmr.msra.gmra.mrb[0].mxu1 %v5339_v39  ;;  %v4938_v39 = vld [vmem:[%s6036_s1 + $0xe0] sm:$0xff]  }
  0xb9   : > { %4468 = vmatmul.mubr.bf16.gmra.mrb[16].mxu0 %v5662_v40  ;;  %4292 = vmatpush3.bf16.msra.mxu1 %v4928_v62  ;;  %v5848_v62 = vld [vmem:[%s5039_s10 + $0xd0] sm:$0xf] }
  0xba   : > { %4263 = vmatprep.mubr.bf16.mxu1 %v5385_v26  ;;  %4471 = vmatprep.mubr.bf16.mxu0 %v5666_v53  ;;  %v3789_v14 = vcombine.low %v5845_v0, %v5848_v62 }
  0xbb   : > { %4293 = vmatprep.subr.bf16.mxu1 %v4930_v36 }
  0xbd   : > { %4294 = vmatpush3.bf16.msra.mxu1 %v4930_v36  ;;  %v2783_v36 = vshll.u32 %v5845_v0, 16 }
  0xbe   : > { %4295 = vmatprep.subr.bf16.mxu1 %v4932_v6 }
  0xc0   : > { %4264 = vmatmul.mubr.bf16.gmra.mrb[4].mxu1 %v5425_v46 }
  0xc1   : > { %4472 = vmatmul.mubr.bf16.gmra.mrb[20].mxu0 %v5670_v9  ;;  %4267 = vmatprep.mubr.bf16.mxu1 %v5462_v44 }
  0xc2   : > { %4475 = vmatprep.mubr.bf16.mxu0 %v5674_v16  ;;  %4296 = vmatpush3.bf16.msra.mxu1 %v4932_v6  ;;  %v2793_v6 = vshrl.u32 %v5848_v62, 16 }
  0xc3   : > { %4297 = vmatprep.subr.bf16.mxu1 %v4935_v10 }
  0xc6   : > { %4298 = vmatpush3.bf16.msra.mxu1 %v4935_v10  ;;  %v6080_v10 = vld [vmem:[#allocation11_spill] sm:$0xff] }
  0xc7   : > { %4299 = vmatprep.subr.bf16.mxu1 %v4938_v39 }
  0xc8   : > { %4268 = vmatmul.mubr.bf16.gmra.mrb[8].mxu1 %v5495_v19 }
  0xc9   : > { %4476 = vmatmul.mubr.bf16.gmra.mrb[24].mxu0 %v5681_v38  ;;  %4271 = vmatprep.mubr.bf16.mxu1 %v5527_v35 }
  0xca   : > { %4479 = vmatprep.mubr.bf16.mxu0 %v5835_v48  ;;  %4300 = vmatpush3.bf16.msra.mxu1 %v4938_v39 }
  0xcb   : > { %4301 = vmatprep.subr.bf16.mxu1 %v4940_v27 }
  0xce   : > { %4302 = vmatpush3.bf16.msra.mxu1 %v4940_v27  ;;  %v2785_v27 = vrot.slane %v2783_v36, 5  ;;  %v3917_v36 = vld [vmem:[%s6001_s8 + $0x10] sm:$0xff]  }
  0xcf   : > { %4303 = vmatprep.subr.bf16.mxu1 %v4942_v24 }
  0xd0   : > { %4272 = vmatmul.mubr.bf16.gmra.mrb[12].mxu1 %v5561_v21 }
  0xd1   : > { %4480 = vmatmul.mubr.bf16.gmra.mrb[28].mxu0 %v3789_v14  ;;  %4275 = vmatprep.mubr.bf16.mxu1 %v5593_v58  ;;  %v2795_v14 = vrot.slane %v2793_v6, 4 }
  0xd2   : > { %4499 = vmatprep.mubr.bf16.mxu0 %v5161_v51  ;;  %4304 = vmatpush3.bf16.msra.mxu1 %v4942_v24  ;;  %v6072_v51 = vld [vmem:[#allocation3_spill] sm:$0xff] }
  0xd3   : > { %4305 = vmatprep.subr.bf16.mxu1 %v4944_v7 }
  0xd6   : > { %4306 = vmatpush3.bf16.msra.mxu1 %v4944_v7  ;;  %v4961_v7 = vld [vmem:[%s6036_s1 + $0x110] sm:$0xff]  }
  0xd7   : > { %4579 = vmatprep.subr.bf16.mxu1 %v4959_v1 }
  0xd8   : > { %4276 = vmatmul.mubr.bf16.gmra.mrb[16].mxu1 %v5598_v18 }
  0xd9   : > { %4500 = vmatmul.mubr.bf16.vlgmr.msra.gmra.mrb[0].mxu0 %v6071_v30  ;;  %4279 = vmatprep.mubr.bf16.mxu1 %v5618_v13 }
  0xda   : > { %4532 = vmatpush3.bf16.msra.mxu0 %v4939_v56  ;;  %4503 = vmatprep.mubr.bf16.mxu0 %v6072_v51  ;;  %v2780_v56 = vshrl.u32 %v5845_v0, 16 }
  0xdb   : > { %4533 = vmatprep.subr.bf16.mxu0 %v4941_v20 }
  0xdc   : > { %v2782_v39 = vrot.slane %v2780_v56, 4 }
  0xde   : > { %4534 = vmatpush3.bf16.msra.mxu0 %v4941_v20  ;;  %v6081_v20 = vld [vmem:[#allocation12_spill] sm:$0xff] }
  0xdf   : > { %4535 = vmatprep.subr.bf16.mxu0 %v4943_v5 }
  0xe0   : > { %4280 = vmatmul.mubr.bf16.gmra.mrb[20].mxu1 %v5623_v29 }
  0xe1   : > { %4504 = vmatmul.mubr.bf16.gmra.mrb[4].mxu0 %v6073_v47  ;;  %4283 = vmatprep.mubr.bf16.mxu1 %v5676_v4 }
  0xe2   : > { %4507 = vmatprep.mubr.bf16.mxu0 %v6074_v52  ;;  %4536 = vmatpush3.bf16.msra.mxu0 %v4943_v5  ;;  %v4962_v5 = vld [vmem:[%s6036_s1 + $0x118] sm:$0xff]  }
  0xe3   : > { %4537 = vmatprep.subr.bf16.mxu0 %v4945_v32 }
  0xe6   : > { %4538 = vmatpush3.bf16.msra.mxu0 %v4945_v32 }
  0xe7   : > { %4539 = vmatprep.subr.bf16.mxu0 %v4946_v2 }
  0xe8   : > { %4284 = vmatmul.mubr.bf16.gmra.mrb[24].mxu1 %v5683_v3 }
  0xe9   : > { %4508 = vmatmul.mubr.bf16.gmra.mrb[8].mxu0 %v6075_v34  ;;  %4287 = vmatprep.mubr.bf16.mxu1 %v5717_v50 }
  0xea   : > { %4511 = vmatprep.mubr.bf16.mxu0 %v6076_v59  ;;  %4540 = vmatpush3.bf16.msra.mxu0 %v4946_v2 }
  0xeb   : > { %4541 = vmatprep.subr.bf16.mxu0 %v4947_v54 }
  0xee   : > { %4542 = vmatpush3.bf16.msra.mxu0 %v4947_v54  ;;  %v4964_v54 = vld [vmem:[%s6036_s1 + $0x128] sm:$0xff]  }
  0xef   : > { %4543 = vmatprep.subr.bf16.mxu0 %v4948_v63 }
  0xf0   : > { %4288 = vmatmul.mubr.bf16.gmra.mrb[28].mxu1 %v5727_v42 }
  0xf1   : > { %4512 = vmatmul.mubr.bf16.gmra.mrb[12].mxu0 %v6077_v49  ;;  %4307 = vmatprep.mubr.bf16.mxu1 %v5097_v43  ;;  %v2789_v43 = vshll.u32 %v5848_v62, 16 }
  0xf2   : > { %4515 = vmatprep.mubr.bf16.mxu0 %v6078_v22  ;;  %4544 = vmatpush3.bf16.msra.mxu0 %v4948_v63 }
  0xf3   : > { %4545 = vmatprep.subr.bf16.mxu0 %v4949_v25  ;;  %v2791_v24 = vrot.slane %v2789_v43, 5 }
  0xf5   : > { %v2796_v30 = vor.u32 %v2795_v14, %v2791_v24  ;;  %v3862_v14 = vunpack.c.l.bf16 %v3917_v36 }
  0xf6   : > { %4546 = vmatpush3.bf16.msra.mxu0 %v4949_v25 }
  0xf7   : > { %v2797_v47 = vrot.slane %v2796_v30, 4 }
  0xf8   : > { %4308 = vmatmul.mubr.bf16.vlgmr.msra.gmra.mrb[0].mxu1 %v5173_v60  ;;  %v4960_v60 = vld [vmem:[%s6036_s1 + $0x108] sm:$0xff]  }
  0xf9   : > { %4516 = vmatmul.mubr.bf16.gmra.mrb[16].mxu0 %v6079_v8  ;;  %4587 = vmatpush3.bf16.msra.mxu1 %v4959_v1  ;;  %v2786_v1 = vor.u32 %v2785_v27, %v2782_v39 }
  0xfa   : > { %4311 = vmatprep.mubr.bf16.mxu1 %v5244_v11  ;;  %4519 = vmatprep.mubr.bf16.mxu0 %v6080_v10  ;;  %v5916_v11 = vld [vmem:[%s5039_s10 + $0xd4] sm:$0x1] }
  0xfb   : > { %4580 = vmatprep.subr.bf16.mxu1 %v4960_v60  ;;  %v2799_v51 = vshll.u32 %v5916_v11, 16  ;;  %v2787_v32 = vrot.slane %v2786_v1, 4 }
  0xfd   : > { %4588 = vmatpush3.bf16.msra.mxu1 %v4960_v60  ;;  %v2801_v52 = vrot.slane %v2799_v51, 5 }
  0xfe   : > { %4581 = vmatprep.subr.bf16.mxu1 %v4961_v7 }
  0xff   : > { %v2802_v2 = vsel %vm5084_vm2, %v2797_v47, %v2801_v52 }
 0x100   : > { %4312 = vmatmul.mubr.bf16.gmra.mrb[4].mxu1 %v5248_v15  ;;  %v4963_v15 = vld [vmem:[%s6036_s1 + $0x120] sm:$0xff]  }
 0x101   : > { %4520 = vmatmul.mubr.bf16.gmra.mrb[20].mxu0 %v6081_v20  ;;  %4315 = vmatprep.mubr.bf16.mxu1 %v5715_v12  ;;  %v2792_v12 = vsel %vm5084_vm2, %v2787_v32, %v2791_v24  ;;  %v3863_v32 = vunpack.c.h.bf16 %v3917_v36 }
 0x102   : > { %4523 = vmatprep.mubr.bf16.mxu0 %v5557_v55  ;;  %4589 = vmatpush3.bf16.msra.mxu1 %v4961_v7  ;;  %v3814_v34 = vcombine.low %v2792_v12, %v2802_v2 }
 0x103   : > { %4582 = vmatprep.subr.bf16.mxu1 %v4962_v5 }
 0x106   : > { %4590 = vmatpush3.bf16.msra.mxu1 %v4962_v5 }
 0x107   : > { %4583 = vmatprep.subr.bf16.mxu1 %v4963_v15 }
 0x108   : > { %4316 = vmatmul.mubr.bf16.gmra.mrb[8].mxu1 %v5721_v31  ;;  %v4965_v31 = vld [vmem:[%s6036_s1 + $0x130] sm:$0xff]  }
 0x109   : > { %4524 = vmatmul.mubr.bf16.gmra.mrb[24].mxu0 %v5591_v61  ;;  %4319 = vmatprep.mubr.bf16.mxu1 %v5746_v41 }
 0x10a   : > { %4527 = vmatprep.mubr.bf16.mxu0 %v5754_v57  ;;  %4591 = vmatpush3.bf16.msra.mxu1 %v4963_v15 }
 0x10b   : > { %4584 = vmatprep.subr.bf16.mxu1 %v4964_v54 }
 0x10e   : > { %4592 = vmatpush3.bf16.msra.mxu1 %v4964_v54 }
 0x10f   : > { %4585 = vmatprep.subr.bf16.mxu1 %v4965_v31 }
 0x110   : > { %4320 = vmatmul.mubr.bf16.gmra.mrb[12].mxu1 %v5636_v28 }
 0x111   : > { %4528 = vmatmul.mubr.bf16.gmra.mrb[28].mxu0 %v3814_v34  ;;  %4323 = vmatprep.mubr.bf16.mxu1 %v5647_v33 }
 0x112   : > { %4547 = vmatprep.mubr.bf16.mxu0 %v5385_v26  ;;  %4593 = vmatpush3.bf16.msra.mxu1 %v4965_v31  ;;  %v3068_v26 = vrot.slane %v5848_v62, 5  ;;  %v3919_v31 = vld [vmem:[%s6001_s8 + $0x20] sm:$0xff]  }
 0x113   : > { %4586 = vmatprep.subr.bf16.mxu1 %v4966_v37 }
 0x116   : > { %4594 = vmatpush3.bf16.msra.mxu1 %v4966_v37 }
 0x118   : > { %4324 = vmatmul.mubr.bf16.gmra.mrb[16].mxu1 %v5658_v45 }
 0x119   : > { %4548 = vmatmul.mubr.bf16.vlgmr.msra.gmra.mrb[0].mxu0 %v5425_v46  ;;  %4327 = vmatprep.mubr.bf16.mxu1 %v5662_v40  ;;  %v3823_v46 = vrot.slane %v5845_v0, 9 }
 0x11a   : > { %4551 = vmatprep.mubr.bf16.mxu0 %v5462_v44  ;;  %v3070_v44 = vrot.slane %v3068_v26, 4 }
 0x120   : > { %4328 = vmatmul.mubr.bf16.gmra.mrb[20].mxu1 %v5666_v53 }
 0x121   : > { %4552 = vmatmul.mubr.bf16.gmra.mrb[4].mxu0 %v5495_v19  ;;  %4331 = vmatprep.mubr.bf16.mxu1 %v5670_v9  ;;  %v3071_v19 = vrot.slane %v5916_v11, 5 }
 0x122   : > { %4555 = vmatprep.mubr.bf16.mxu0 %v5527_v35  ;;  %v3069_v35 = vsel %vm5291_vm5, %v3823_v46, %v3068_v26 }
 0x128   : > { %4332 = vmatmul.mubr.bf16.gmra.mrb[24].mxu1 %v5674_v16 }
 0x129   : > { %4556 = vmatmul.mubr.bf16.gmra.mrb[8].mxu0 %v5561_v21  ;;  %4335 = vmatprep.mubr.bf16.mxu1 %v5681_v38  ;;  %v3072_v21 = vsel %vm5291_vm5, %v3070_v44, %v3071_v19  ;;  %v3920_v19 = vld [vmem:[%s6001_s8 + $0x28] sm:$0xff]  }
 0x12a   : > { %4559 = vmatprep.mubr.bf16.mxu0 %v5593_v58  ;;  %v3840_v58 = vcombine.low %v3069_v35, %v3072_v21 }
 0x130   : > { %4336 = vmatmul.mubr.bf16.gmra.mrb[28].mxu1 %v5835_v48 }
 0x131   : > { %4560 = vmatmul.mubr.bf16.gmra.mrb[12].mxu0 %v5598_v18  ;;  %4371 = vmatprep.mubr.bf16.mxu1 %v6077_v49 }
 0x132   : > { %4563 = vmatprep.mubr.bf16.mxu0 %v5618_v13 }
 0x138   : > { %4372 = vmatmul.mubr.bf16.vlgmr.msra.gmra.mrb[16].mxu1 %v6078_v22 }
 0x139   : > { %4564 = vmatmul.mubr.bf16.gmra.mrb[16].mxu0 %v5623_v29  ;;  %4375 = vmatprep.mubr.bf16.mxu1 %v6079_v8 }
 0x13a   : > { %4567 = vmatprep.mubr.bf16.mxu0 %v5676_v4 }
 0x140   : > { %4376 = vmatmul.mubr.bf16.gmra.mrb[20].mxu1 %v6080_v10  ;;  %v3918_v10 = vld [vmem:[%s6001_s8 + $0x18] sm:$0xff]  }
 0x141   : > { %4568 = vmatmul.mubr.bf16.gmra.mrb[20].mxu0 %v5683_v3  ;;  %4379 = vmatprep.mubr.bf16.mxu1 %v6081_v20  ;;  %v3866_v11 = vunpack.c.l.bf16 %v3918_v10  ;;  %v3867_v52 = vunpack.c.h.bf16 %v3918_v10 }
 0x142   : > { %4571 = vmatprep.mubr.bf16.mxu0 %v5717_v50  ;;  %v3853_v50 = vld [vmem:[%s6001_s8] sm:$0xff]  }
 0x143   : > { %v3855_v63 = vunpack.c.h.bf16 %v3853_v50 }
 0x148   : > { %4380 = vmatmul.mubr.bf16.gmra.mrb[24].mxu1 %v5557_v55 }
 0x149   : > { %4572 = vmatmul.mubr.bf16.gmra.mrb[24].mxu0 %v5727_v42  ;;  %4383 = vmatprep.mubr.bf16.mxu1 %v5591_v61  ;;  %v3916_v42 = vld [vmem:[%s6001_s8 + $0x8] sm:$0xff]  }
 0x14a   : > { %4575 = vmatprep.mubr.bf16.mxu0 %v5748_v17  ;;  %v3854_v17 = vunpack.c.l.bf16 %v3853_v50  ;;  %v3858_v0 = vunpack.c.l.bf16 %v3916_v42  ;;  %v3859_v8 = vunpack.c.h.bf16 %v3916_v42  ;;  %v3871_v42 = vunpack.c.h.bf16 %v3919_v31 }
 0x150   : > { %4384 = vmatmul.mubr.bf16.gmra.mrb[28].mxu1 %v5754_v57 }
 0x151   : > { %4576 = vmatmul.mubr.bf16.gmra.mrb[28].mxu0 %v3840_v58 }
 0x1cb   : > { %v4309_v18 = vpop.f32.mrb[0].mxu1 }
 0x1cc   : > { %v1800_v13 = vpop.f32.mrb[1].mxu1 }
 0x1cd   : > { %v4310_v55 = vpop.f32.mrb[2].mxu1 }
 0x1ce   : > { %v1803_v29 = vpop.f32.mrb[3].mxu1 }
 0x1d3   : > { %v4313_v28 = vpop.f32.mrb[4].mxu1 }
 0x1d4   : > { %v1816_v33 = vpop.f32.mrb[5].mxu1 }
 0x1d5   : > { %v4314_v61 = vpop.f32.mrb[6].mxu1 }
 0x1d6   : > { %v1819_v45 = vpop.f32.mrb[7].mxu1 }
 0x1db   : > { %v4317_v40 = vpop.f32.mrb[8].mxu1 }
 0x1dc   : > { %v5985_v53 = vpop.f32.mrb[9].mxu1 }
 0x1dd   : > { %v5987_v9 = vpop.f32.mrb[10].mxu1 }
 0x1de   : > { %v5989_v23 = vpop.f32.mrb[11].mxu1 }
 0x1e3   : > { %v5992_v16 = vpop.f32.mrb[12].mxu1 }
 0x1e4   : > { %v5994_v4 = vpop.f32.mrb[13].mxu1 }
 0x1e5   : > { %v5996_v38 = vpop.f32.mrb[14].mxu1 }
 0x1e6   : > { %v6003_v3 = vpop.f32.mrb[15].mxu1 }
 0x1ec   : > { %v4549_v41 = vpop.f32.mrb[0].mxu0 }
 0x1ed   : > { %v4595_v57 = vadd.f32 %v4549_v41, %v4309_v18  ;;  %v3176_v48 = vpop.f32.mrb[1].mxu0 }
 0x1ee   : > { %v4596_v62 = vadd.f32 %v3176_v48, %v1800_v13  ;;  %v4550_v59 = vpop.f32.mrb[2].mxu0  ;;  %v3870_v13 = vunpack.c.l.bf16 %v3919_v31 }
 0x1ef   : > { %v4597_v25 = vadd.f32 %v4550_v59, %v4310_v55  ;;  %v3179_v49 = vpop.f32.mrb[3].mxu0  ;;  %v3401_v6 = vadd.f32 %v4595_v57, %v3858_v0 }
 0x1f0   : > { %v3399_v22 = vadd.f32 %v4596_v62, %v3854_v17  ;;  %v4598_v56 = vadd.f32 %v3179_v49, %v1803_v29  ;;  %v3874_v29 = vunpack.c.l.bf16 %v3920_v19  ;;  %v3875_v17 = vunpack.c.h.bf16 %v3920_v19 }
 0x1f1   : > { %v3402_v39 = vadd.f32 %v4597_v25, %v3859_v8  ;;  %v3433_v1 = vmax.f32 %v3401_v6, 0.0  ;;  %v3922_v8 = vld [vmem:[%s6001_s8 + $0x38] sm:$0xff]  }
 0x1f2   : > { %v3400_v43 = vadd.f32 %v4598_v56, %v3855_v63  ;;  %v3431_v60 = vmax.f32 %v3399_v22, 0.0  ;;  %v3921_v63 = vld [vmem:[%s6001_s8 + $0x30] sm:$0xff]   ;;  %v3882_v10 = vunpack.c.l.bf16 %v3922_v8 }
 0x1f3   : > { %v3434_v12 = vmax.f32 %v3402_v39, 0.0 }
 0x1f4   : > { %v3432_v27 = vmax.f32 %v3400_v43, 0.0  ;;  %v4553_v24 = vpop.f32.mrb[4].mxu0  ;;  %v3878_v43 = vunpack.c.l.bf16 %v3921_v63 }
 0x1f5   : > { %v4599_v7 = vadd.f32 %v4553_v24, %v4313_v28  ;;  %v3192_v20 = vpop.f32.mrb[5].mxu0 }
 0x1f6   : > { %v3463_v30 = vadd.f32 %v3432_v27, %v3431_v60  ;;  %v4600_v51 = vadd.f32 %v3192_v20, %v1816_v33  ;;  %v4554_v5 = vpop.f32.mrb[6].mxu0 }
 0x1f7   : > { %v4601_v47 = vadd.f32 %v4554_v5, %v4314_v61  ;;  %v3195_v15 = vpop.f32.mrb[7].mxu0  ;;  %v3405_v37 = vadd.f32 %v4599_v7, %v3866_v11  ;;  %v3883_v11 = vunpack.c.h.bf16 %v3922_v8 }
 0x1f8   : > { %v3464_v2 = vadd.f32 %v3463_v30, %v3433_v1  ;;  %v3403_v54 = vadd.f32 %v4600_v51, %v3862_v14  ;;  %v4602_v34 = vadd.f32 %v3195_v15, %v1819_v45  ;;  %v3879_v14 = vunpack.c.h.bf16 %v3921_v63 }
 0x1f9   : > { %v3406_v21 = vadd.f32 %v4601_v47, %v3867_v52  ;;  %v3437_v33 = vmax.f32 %v3405_v37, 0.0 }
 0x1fa   : > { %v3435_v26 = vmax.f32 %v3403_v54, 0.0  ;;  %v3465_v46 = vadd.f32 %v3464_v2, %v3434_v12  ;;  %v3404_v44 = vadd.f32 %v4602_v34, %v3863_v32  ;;  %v3923_v32 = vld [vmem:[%s6001_s8 + $0x40] sm:$0xff]   ;;  %v3924_v12 = vld [vmem:[%s6001_s8 + $0x48] sm:$0xff]  }
 0x1fb   : > { %v3438_v48 = vmax.f32 %v3406_v21, 0.0  ;;  %v3886_v37 = vunpack.c.l.bf16 %v3923_v32 }
 0x1fc   : > { %v3466_v35 = vadd.f32 %v3465_v46, %v3435_v26  ;;  %v3436_v58 = vmax.f32 %v3404_v44, 0.0  ;;  %v4557_v18 = vpop.f32.mrb[8].mxu0  ;;  %v3890_v26 = vunpack.c.l.bf16 %v3924_v12 }
 0x1fd   : > { %v4603_v55 = vadd.f32 %v4557_v18, %v4317_v40  ;;  %v3208_v28 = vpop.f32.mrb[9].mxu0  ;;  %v3887_v18 = vunpack.c.h.bf16 %v3923_v32 }
 0x1fe   : > { %v3467_v61 = vadd.f32 %v3466_v35, %v3436_v58  ;;  %v4604_v45 = vadd.f32 %v3208_v28, %v5985_v53  ;;  %v4558_v50 = vpop.f32.mrb[10].mxu0 }
 0x1ff   : > { %v4605_v41 = vadd.f32 %v4558_v50, %v5987_v9  ;;  %v3211_v57 = vpop.f32.mrb[11].mxu0  ;;  %v3409_v40 = vadd.f32 %v4603_v55, %v3874_v29  ;;  %v3891_v55 = vunpack.c.h.bf16 %v3924_v12 }
 0x200   : > { %v3468_v0 = vadd.f32 %v3467_v61, %v3437_v33  ;;  %v3407_v62 = vadd.f32 %v4604_v45, %v3870_v13  ;;  %v4606_v59 = vadd.f32 %v3211_v57, %v5989_v23 }
 0x201   : > { %v3410_v36 = vadd.f32 %v4605_v41, %v3875_v17  ;;  %v3441_v39 = vmax.f32 %v3409_v40, 0.0 }
 0x202   : > { %v3439_v25 = vmax.f32 %v3407_v62, 0.0  ;;  %v3469_v49 = vadd.f32 %v3468_v0, %v3438_v48  ;;  %v3408_v22 = vadd.f32 %v4606_v59, %v3871_v42  ;;  %v3925_v42 = vld [vmem:[%s6001_s8 + $0x50] sm:$0xff]   ;;  %v3926_v0 = vld [vmem:[%s6001_s8 + $0x58] sm:$0xff]  }
 0x203   : > { %v3442_v1 = vmax.f32 %v3410_v36, 0.0  ;;  %v3898_v8 = vunpack.c.l.bf16 %v3926_v0 }
 0x204   : > { %v3470_v56 = vadd.f32 %v3469_v49, %v3439_v25  ;;  %v3440_v53 = vmax.f32 %v3408_v22, 0.0  ;;  %v4561_v6 = vpop.f32.mrb[12].mxu0  ;;  %v3894_v49 = vunpack.c.l.bf16 %v3925_v42 }
 0x205   : > { %v4607_v9 = vadd.f32 %v4561_v6, %v5992_v16  ;;  %v3224_v60 = vpop.f32.mrb[13].mxu0 }
 0x206   : > { %v3471_v27 = vadd.f32 %v3470_v56, %v3440_v53  ;;  %v4608_v23 = vadd.f32 %v3224_v60, %v5994_v4  ;;  %v4562_v24 = vpop.f32.mrb[14].mxu0  ;;  %v3895_v60 = vunpack.c.h.bf16 %v3925_v42 }
 0x207   : > { %v4609_v7 = vadd.f32 %v4562_v24, %v5996_v38  ;;  %v3227_v20 = vpop.f32.mrb[15].mxu0  ;;  %v3413_v16 = vadd.f32 %v4607_v9, %v3882_v10 }
 0x208   : > { %v3472_v30 = vadd.f32 %v3471_v27, %v3441_v39  ;;  %v3411_v51 = vadd.f32 %v4608_v23, %v3878_v43  ;;  %v4610_v5 = vadd.f32 %v3227_v20, %v6003_v3  ;;  %v3899_v27 = vunpack.c.h.bf16 %v3926_v0 }
 0x209   : > { %v3414_v54 = vadd.f32 %v4609_v7, %v3883_v11  ;;  %v3445_v19 = vmax.f32 %v3413_v16, 0.0  ;;  %v3928_v16 = vld [vmem:[%s6001_s8 + $0x68] sm:$0xff]  }
 0x20a   : > { %v3443_v47 = vmax.f32 %v3411_v51, 0.0  ;;  %v3473_v52 = vadd.f32 %v3472_v30, %v3442_v1  ;;  %v3412_v15 = vadd.f32 %v4610_v5, %v3879_v14  ;;  %v3927_v1 = vld [vmem:[%s6001_s8 + $0x60] sm:$0xff]  }
 0x20b   : > { %v4373_v34 = vpop.f32.mrb[16].mxu1  ;;  %v3446_v33 = vmax.f32 %v3414_v54, 0.0  ;;  %v3902_v54 = vunpack.c.l.bf16 %v3927_v1 }
 0x20c   : > { %v3474_v2 = vadd.f32 %v3473_v52, %v3443_v47  ;;  %v3444_v4 = vmax.f32 %v3412_v15, 0.0  ;;  %v4565_v31 = vpop.f32.mrb[16].mxu0  ;;  %v2150_v46 = vpop.f32.mrb[17].mxu1 }
 0x20d   : > { %v4611_v38 = vadd.f32 %v4565_v31, %v4373_v34  ;;  %v3240_v44 = vpop.f32.mrb[17].mxu0  ;;  %v4374_v21 = vpop.f32.mrb[18].mxu1  ;;  %v3906_v34 = vunpack.c.l.bf16 %v3928_v16 }
 0x20e   : > { %v3475_v35 = vadd.f32 %v3474_v2, %v3444_v4  ;;  %v4612_v3 = vadd.f32 %v3240_v44, %v2150_v46  ;;  %v4566_v58 = vpop.f32.mrb[18].mxu0  ;;  %v2153_v29 = vpop.f32.mrb[19].mxu1 }
 0x20f   : > { %v4613_v13 = vadd.f32 %v4566_v58, %v4374_v21  ;;  %v3243_v28 = vpop.f32.mrb[19].mxu0  ;;  %v3417_v41 = vadd.f32 %v4611_v38, %v3890_v26  ;;  %v3907_v21 = vunpack.c.h.bf16 %v3928_v16 }
 0x210   : > { %v3476_v61 = vadd.f32 %v3475_v35, %v3445_v19  ;;  %v3415_v45 = vadd.f32 %v4612_v3, %v3886_v37  ;;  %v4614_v50 = vadd.f32 %v3243_v28, %v2153_v29  ;;  %v3903_v35 = vunpack.c.h.bf16 %v3927_v1 }
 0x211   : > { %v3418_v59 = vadd.f32 %v4613_v13, %v3891_v55  ;;  %v3449_v53 = vmax.f32 %v3417_v41, 0.0  ;;  %v3930_v41 = vld [vmem:[%s6001_s8 + $0x78] sm:$0xff]  }
 0x212   : > { %v3447_v17 = vmax.f32 %v3415_v45, 0.0  ;;  %v3477_v57 = vadd.f32 %v3476_v61, %v3446_v33  ;;  %v3416_v48 = vadd.f32 %v4614_v50, %v3887_v18  ;;  %v3929_v33 = vld [vmem:[%s6001_s8 + $0x70] sm:$0xff]  }
 0x213   : > { %v4377_v40 = vpop.f32.mrb[20].mxu1  ;;  %v3450_v14 = vmax.f32 %v3418_v59, 0.0  ;;  %v3910_v59 = vunpack.c.l.bf16 %v3929_v33 }
 0x214   : > { %v3478_v62 = vadd.f32 %v3477_v57, %v3447_v17  ;;  %v3448_v63 = vmax.f32 %v3416_v48, 0.0  ;;  %v4569_v25 = vpop.f32.mrb[20].mxu0  ;;  %v2166_v56 = vpop.f32.mrb[21].mxu1 }
 0x215   : > { %v4615_v22 = vadd.f32 %v4569_v25, %v4377_v40  ;;  %v3256_v36 = vpop.f32.mrb[21].mxu0  ;;  %v4378_v9 = vpop.f32.mrb[22].mxu1  ;;  %v3914_v40 = vunpack.c.l.bf16 %v3930_v41 }
 0x216   : > { %v3479_v6 = vadd.f32 %v3478_v62, %v3448_v63  ;;  %v4616_v43 = vadd.f32 %v3256_v36, %v2166_v56  ;;  %v4570_v10 = vpop.f32.mrb[22].mxu0  ;;  %v2169_v23 = vpop.f32.mrb[23].mxu1 }
 0x217   : > { %v4617_v39 = vadd.f32 %v4570_v10, %v4378_v9  ;;  %v3259_v24 = vpop.f32.mrb[23].mxu0  ;;  %v3421_v30 = vadd.f32 %v4615_v22, %v3898_v8  ;;  %v3915_v9 = vunpack.c.h.bf16 %v3930_v41 }
 0x218   : > { %v3480_v7 = vadd.f32 %v3479_v6, %v3449_v53  ;;  %v3419_v11 = vadd.f32 %v4616_v43, %v3894_v49  ;;  %v4618_v20 = vadd.f32 %v3259_v24, %v2169_v23  ;;  %v3911_v6 = vunpack.c.h.bf16 %v3929_v33 }
 0x219   : > { %v3422_v52 = vadd.f32 %v4617_v39, %v3899_v27  ;;  %v3453_v38 = vmax.f32 %v3421_v30, 0.0 }
 0x21a   : > { %v3451_v51 = vmax.f32 %v3419_v11, 0.0  ;;  %v3481_v5 = vadd.f32 %v3480_v7, %v3450_v14  ;;  %v3420_v32 = vadd.f32 %v4618_v20, %v3895_v60 }
 0x21b   : > { %v4381_v12 = vpop.f32.mrb[24].mxu1  ;;  %v3454_v13 = vmax.f32 %v3422_v52, 0.0 }
 0x21c   : > { %v3482_v47 = vadd.f32 %v3481_v5, %v3451_v51  ;;  %v3452_v15 = vmax.f32 %v3420_v32, 0.0  ;;  %v4573_v2 = vpop.f32.mrb[24].mxu0  ;;  %v2182_v31 = vpop.f32.mrb[25].mxu1 }
 0x21d   : > { %v4619_v4 = vadd.f32 %v4573_v2, %v4381_v12  ;;  %v3272_v37 = vpop.f32.mrb[25].mxu0  ;;  %v4382_v44 = vpop.f32.mrb[26].mxu1 }
 0x21e   : > { %v3483_v26 = vadd.f32 %v3482_v47, %v3452_v15  ;;  %v4620_v46 = vadd.f32 %v3272_v37, %v2182_v31  ;;  %v4574_v19 = vpop.f32.mrb[26].mxu0  ;;  %v2185_v58 = vpop.f32.mrb[27].mxu1 }
 0x21f   : > { %v4621_v3 = vadd.f32 %v4574_v19, %v4382_v44  ;;  %v3275_v18 = vpop.f32.mrb[27].mxu0  ;;  %v3425_v61 = vadd.f32 %v4619_v4, %v3906_v34 }
 0x220   : > { %v3484_v55 = vadd.f32 %v3483_v26, %v3453_v38  ;;  %v3423_v29 = vadd.f32 %v4620_v46, %v3902_v54  ;;  %v4622_v28 = vadd.f32 %v3275_v18, %v2185_v58 }
 0x221   : > { %v3426_v57 = vadd.f32 %v4621_v3, %v3907_v21  ;;  %v3457_v22 = vmax.f32 %v3425_v61, 0.0 }
 0x222   : > { %v3455_v45 = vmax.f32 %v3423_v29, 0.0  ;;  %v3485_v50 = vadd.f32 %v3484_v55, %v3454_v13  ;;  %v3424_v42 = vadd.f32 %v4622_v28, %v3903_v35 }
 0x223   : > { %v4385_v0 = vpop.f32.mrb[28].mxu1  ;;  %v3458_v39 = vmax.f32 %v3426_v57, 0.0 }
 0x224   : > { %v3486_v17 = vadd.f32 %v3485_v50, %v3455_v45  ;;  %v3456_v48 = vmax.f32 %v3424_v42, 0.0  ;;  %v4577_v62 = vpop.f32.mrb[28].mxu0  ;;  %v2198_v25 = vpop.f32.mrb[29].mxu1 }
 0x225   : > { %v4623_v63 = vadd.f32 %v4577_v62, %v4385_v0  ;;  %v3288_v49 = vpop.f32.mrb[29].mxu0  ;;  %v4386_v36 = vpop.f32.mrb[30].mxu1 }
 0x226   : > { %v3487_v8 = vadd.f32 %v3486_v17, %v3456_v48  ;;  %v4624_v56 = vadd.f32 %v3288_v49, %v2198_v25  ;;  %v4578_v53 = vpop.f32.mrb[30].mxu0  ;;  %v2201_v10 = vpop.f32.mrb[31].mxu1 }
 0x227   : > { %v4625_v43 = vadd.f32 %v4578_v53, %v4386_v36  ;;  %v3291_v60 = vpop.f32.mrb[31].mxu0  ;;  %v3429_v14 = vadd.f32 %v4623_v63, %v3914_v40 }
 0x228   : > { %v3488_v27 = vadd.f32 %v3487_v8, %v3457_v22  ;;  %v3427_v23 = vadd.f32 %v4624_v56, %v3910_v59  ;;  %v4626_v24 = vadd.f32 %v3291_v60, %v2201_v10 }
 0x229   : > { %v3430_v30 = vadd.f32 %v4625_v43, %v3915_v9  ;;  %v3461_v5 = vmax.f32 %v3429_v14, 0.0 }
 0x22a   : > { %v3459_v7 = vmax.f32 %v3427_v23, 0.0  ;;  %v3489_v11 = vadd.f32 %v3488_v27, %v3458_v39  ;;  %v3428_v20 = vadd.f32 %v4626_v24, %v3911_v6 }
 0x22b   : > { %v3462_v16 = vmax.f32 %v3430_v30, 0.0 }
 0x22c   : > { %v3490_v1 = vadd.f32 %v3489_v11, %v3459_v7  ;;  %v3460_v51 = vmax.f32 %v3428_v20, 0.0 }
 0x22e   : > { %v3491_v32 = vadd.f32 %v3490_v1, %v3460_v51 }
 0x230   : > { %v3492_v47 = vadd.f32 %v3491_v32, %v3461_v5 }
 0x232   : > { %v3493_v52 = vadd.f32 %v3492_v47, %v3462_v16 }
 0x234   : > { %v3494_v15 = vrot.slane %v3493_v52, 4 }
 0x236   : > { %v3495_v12 = vadd.f32 %v3494_v15, %v3493_v52 }
 0x238   : > { %v3496_v2 = vrot.slane %v3495_v12, 2 }
 0x23a   : > { %v3497_v54 = vadd.f32 %v3496_v2, %v3495_v12 }
 0x23c   : > { %v3498_v4 = vrot.slane %v3497_v54, 1 }
 0x23e   : > { %v3499_v34 = vadd.f32 %v3498_v4, %v3497_v54 }
 0x240   : > { %v3501_v31 = vmul.f32 0.00390625, %v3499_v34 }
 0x242   : > { %3502 = vst [vmem:[%s188_s15] sm:$0xff] %v3501_v31 }
 0x243 PF: > { %s13_s12 = sadd.s32 1, %s4973_s12  }
 0x244   : > { %p10_p4 = scmp.ge.s32.totalorder %s13_s12, 4  }
 0x246   :  { %12 = sbr.rel (!%p10_p4) target bundleno = 1 (0x1), region = 73 }

</bundles_post_ra>
